<compile_context>
chip_gen: v7x
topology: tpu7x:2x2x1
jax: 0.10.0
libtpu: 0.0.40
codegen_flags: <defaults>
</compile_context>

<pallas_src>
import functools

import jax
import jax.numpy as jnp
import numpy as np
from jax import lax
from jax.experimental import pallas as pl
from jax.experimental.pallas import tpu as pltpu


def _round_up(x: int, m: int) -> int:
    return ((x + m - 1) // m) * m


def _pad_gate_cols(w, H, Hp):
    """(rows, 4H) -> (rows, 4Hp): zero-pad each of the i,f,g,o gate blocks to Hp."""
    rows = w.shape[0]
    w = w.reshape(rows, 4, H)
    w = jnp.pad(w, ((0, 0), (0, 0), (0, Hp - H)))
    return w.reshape(rows, 4 * Hp)


# ----------------------------------------------------------------------------
# Fused kernel: all LSTM layers + critic FC head for ONE batch tile.
# Grid: 1-D over batch tiles ("parallel" -> megacore split on v7x).
# ----------------------------------------------------------------------------
def _fused_lstm_critic_kernel(*refs, num_layers, T, Tc, Bt, Hp, S, A, has_seq):
    """Ref layout (matches in_specs / out_specs / scratch_shapes):

      x_ref                      (T, Bt, S)    f32, time-major batch tile
      [act_ref]     if A > 0     (Bt, A)       f32
      per layer l:  wih_l (D_l, 4Hp) bf16 ; whh_l (Hp, 4Hp) bf16 ; bias_l (1, 4Hp) f32
      fc_wh_ref                  (1, Hp)       f32
      [fc_wa_ref]   if A > 0     (1, A)        f32
      fc_b_ref                   (1, 1)        f32
      out_ref                    (Bt, 1)       f32
      scratch: gi (Tc*Bt, 4Hp) f32, [seq (T*Bt, Hp) f32 if num_layers > 1],
               h (Bt, Hp) f32, c (Bt, Hp) f32
    """
    it = iter(refs)
    x_ref = next(it)
    act_ref = next(it) if A > 0 else None
    layers = [(next(it), next(it), next(it)) for _ in range(num_layers)]
    fc_wh_ref = next(it)
    fc_wa_ref = next(it) if A > 0 else None
    fc_b_ref = next(it)
    out_ref = next(it)
    gi_scr = next(it)
    seq_scr = next(it) if has_seq else None
    h_scr = next(it)
    c_scr = next(it)

    n_chunks = -(-T // Tc)

    for layer, (wih_ref, whh_ref, b_ref) in enumerate(layers):
        h_scr[...] = jnp.zeros_like(h_scr)
        c_scr[...] = jnp.zeros_like(c_scr)
        write_seq = has_seq and (layer < num_layers - 1)  # last layer: final h only

        for chunk in range(n_chunks):
            t0 = chunk * Tc
            cur = min(Tc, T - t0)

            # ---- hoisted input projection over the time chunk: one bf16 MXU
            #      GEMM with f32 accumulation (chunking caps VMEM vs. full-T).
            if layer == 0:
                x_blk = x_ref[t0:t0 + cur, :, :].reshape(cur * Bt, S)
            else:
                x_blk = seq_scr[t0 * Bt:(t0 + cur) * Bt, :]
            gi_scr[0:cur * Bt, :] = (
                jnp.dot(x_blk.astype(jnp.bfloat16), wih_ref[...],
                        preferred_element_type=jnp.float32)
                + b_ref[...]
            )

            # ---- serial recurrence over the chunk: bf16 MXU for h @ Whh,
            #      f32 elementwise state and gate nonlinearities.
            def step(t, carry, whh_ref=whh_ref, base=t0, write_seq=write_seq):
                row = t * Bt
                if not isinstance(row, (int, np.integer)):
                    row = pl.multiple_of(row, Bt)   # Bt is a multiple of 8 sublanes
                gates = gi_scr[pl.ds(row, Bt), :] + jnp.dot(
                    h_scr[...].astype(jnp.bfloat16), whh_ref[...],
                    preferred_element_type=jnp.float32)
                # PyTorch gate order: i, f, g, o -- each a full 128-lane slab (Hp).
                i_g = jax.nn.sigmoid(gates[:, 0 * Hp:1 * Hp])
                f_g = jax.nn.sigmoid(gates[:, 1 * Hp:2 * Hp])
                g_g = jnp.tanh(gates[:, 2 * Hp:3 * Hp])
                o_g = jax.nn.sigmoid(gates[:, 3 * Hp:4 * Hp])
                c_new = f_g * c_scr[...] + i_g * g_g
                h_new = o_g * jnp.tanh(c_new)
                c_scr[...] = c_new
                h_scr[...] = h_new
                if write_seq:
                    srow = base * Bt + row
                    if not isinstance(srow, (int, np.integer)):
                        srow = pl.multiple_of(srow, Bt)
                    seq_scr[pl.ds(srow, Bt), :] = h_new
                return carry

            unroll = True if cur <= 16 else 4
            lax.fori_loop(0, cur, step, 0, unroll=unroll)

    # ---- fused critic head: VPU multiply + cross-lane reduce (an N=1 MXU
    #      matmul wastes a full weight push).  Padded H lanes carry zero
    #      weights, so they contribute nothing.
    out = jnp.sum(h_scr[...] * fc_wh_ref[...], axis=-1, keepdims=True) \
        + fc_b_ref[...]
    if A > 0:
        out = out + jnp.sum(act_ref[...] * fc_wa_ref[...], axis=-1, keepdims=True)
    out_ref[...] = out.astype(out_ref.dtype)


# ----------------------------------------------------------------------------
# Module wrapper (parameter setup + glue in plain JAX)
# ----------------------------------------------------------------------------
class RecurrentCriticPallas:
    def __init__(self, layer_num, state_shape, action_shape=(0,),
                 hidden_layer_size=128, key=None):
        self.layer_num = layer_num
        self.state_dim = int(np.prod(state_shape))
        self.action_dim = int(np.prod(action_shape))
        self.hidden = hidden_layer_size
        self.hidden_pad = _round_up(hidden_layer_size, 128)  # lane-aligned gates
        if key is None:
            key = jax.random.PRNGKey(42)

        H, Hp = self.hidden, self.hidden_pad
        bound = 1.0 / np.sqrt(H)  # PyTorch LSTM / Linear default uniform bound
        self.lstm_params = []     # unpadded f32 (pure-JAX reference)
        self.kernel_lstm = []     # padded, gate-aligned, bf16 (kernel operands)
        for layer in range(layer_num):
            in_dim = self.state_dim if layer == 0 else H
            in_pad = self.state_dim if layer == 0 else Hp
            key, k1, k2, k3, k4 = jax.random.split(key, 5)
            w_ih = jax.random.uniform(k1, (4 * H, in_dim), jnp.float32, -bound, bound)
            w_hh = jax.random.uniform(k2, (4 * H, H), jnp.float32, -bound, bound)
            b_ih = jax.random.uniform(k3, (4 * H,), jnp.float32, -bound, bound)
            b_hh = jax.random.uniform(k4, (4 * H,), jnp.float32, -bound, bound)
            wih_t = w_ih.T                                 # (in_dim, 4H)
            whh_t = w_hh.T                                 # (H, 4H)
            bias = (b_ih + b_hh).reshape(1, 4 * H)         # (1, 4H)
            self.lstm_params.append(dict(wih_t=wih_t, whh_t=whh_t, bias=bias))

            # Kernel layout: gate blocks zero-padded H -> Hp (padded hidden
            # lanes provably stay 0 through the recurrence: zero weight cols,
            # zero bias, c0 = 0  =>  c_pad = 0, h_pad = 0 for all t).
            wih_k = _pad_gate_cols(wih_t, H, Hp)                          # (in_dim, 4Hp)
            wih_k = jnp.pad(wih_k, ((0, in_pad - in_dim), (0, 0)))        # (in_pad, 4Hp)
            whh_k = _pad_gate_cols(whh_t, H, Hp)                          # (H, 4Hp)
            whh_k = jnp.pad(whh_k, ((0, Hp - H), (0, 0)))                 # (Hp, 4Hp)
            bias_k = _pad_gate_cols(bias, H, Hp)                          # (1, 4Hp)
            self.kernel_lstm.append(dict(
                wih=wih_k.astype(jnp.bfloat16),
                whh=whh_k.astype(jnp.bfloat16),
                bias=bias_k.astype(jnp.float32),
            ))

        fc_in = H + self.action_dim
        fc_bound = 1.0 / np.sqrt(fc_in)
        key, k5, k6 = jax.random.split(key, 3)
        w_fc = jax.random.uniform(k5, (1, fc_in), jnp.float32, -fc_bound, fc_bound)
        b_fc = jax.random.uniform(k6, (1,), jnp.float32, -fc_bound, fc_bound)
        self.fc_w_t = w_fc.T                               # (H+A, 1) reference
        self.fc_b = b_fc.reshape(1, 1)                     # (1, 1)
        # Kernel layout: row vectors for VPU multiply + lane reduce.
        self.k_fc_wh = jnp.pad(w_fc[:, :H], ((0, 0), (0, Hp - H)))        # (1, Hp)
        self.k_fc_wa = w_fc[:, H:] if self.action_dim > 0 else None       # (1, A)
        self.k_fc_b = self.fc_b

    # ---------------------------------------------------------------- forward
    def __call__(self, obs, act=None):
        obs = jnp.asarray(obs, jnp.float32)
        assert obs.ndim == 3, "obs must be (batch, seq_len, state_dim)"
        B, T, S = obs.shape
        assert S == self.state_dim
        H, Hp, A, L = self.hidden, self.hidden_pad, self.action_dim, self.layer_num

        # Batch tiling: <=64 rows per grid program (bounded vreg live set);
        # >=2 tiles whenever possible so v7x's two TensorCores split the batch.
        B8 = _round_up(B, 8)
        if B8 >= 16:
            Bt = min(64, _round_up((B8 + 1) // 2, 8))
        else:
            Bt = B8
        n_tiles = -(-B8 // Bt)
        BP = n_tiles * Bt
        Tc = min(T, 32)  # time-chunked gate hoisting caps the gi scratch

        # Time-major, batch-padded obs so per-timestep slices are sublane aligned.
        # TODO(synk): DMA obs time-chunks straight from HBM (memory_space=pl.ANY)
        # inside the kernel to drop this host-side transpose/pad pass.
        x = jnp.transpose(obs, (1, 0, 2))                  # (T, B, S)
        if BP != B:
            x = jnp.pad(x, ((0, 0), (0, BP - B), (0, 0)))  # padded rows independent

        inputs = [x]
        in_specs = [pl.BlockSpec((T, Bt, S), lambda b: (0, b, 0))]
        if A > 0:
            assert act is not None, "action required when action_shape != (0,)"
            a = jnp.asarray(act, jnp.float32)
            if BP != B:
                a = jnp.pad(a, ((0, BP - B), (0, 0)))
            inputs.append(a)
            in_specs.append(pl.BlockSpec((Bt, A), lambda b: (b, 0)))

        def full_spec(arr):
            nd = arr.ndim
            return pl.BlockSpec(arr.shape, lambda b, _nd=nd: (0,) * _nd)

        for p in self.kernel_lstm:
            for w in (p["wih"], p["whh"], p["bias"]):
                inputs.append(w)
                in_specs.append(full_spec(w))
        tail = [self.k_fc_wh] + ([self.k_fc_wa] if A > 0 else []) + [self.k_fc_b]
        for w in tail:
            inputs.append(w)
            in_specs.append(full_spec(w))

        out_spec = pl.BlockSpec((Bt, 1), lambda b: (b, 0))

        has_seq = L > 1
        scratch = [pltpu.VMEM((Tc * Bt, 4 * Hp), jnp.float32)]     # gi chunk
        if has_seq:
            scratch.append(pltpu.VMEM((T * Bt, Hp), jnp.float32))  # inter-layer seq
        scratch += [pltpu.VMEM((Bt, Hp), jnp.float32),             # h carry
                    pltpu.VMEM((Bt, Hp), jnp.float32)]             # c carry

        kernel = functools.partial(
            _fused_lstm_critic_kernel,
            num_layers=L, T=T, Tc=Tc, Bt=Bt, Hp=Hp, S=S, A=A, has_seq=has_seq)

        vmem_limit = self._vmem_limit(T, Tc, Bt, Hp, S, A, L, has_seq)

        out = pl.pallas_call(
            kernel,
            out_shape=jax.ShapeDtypeStruct((BP, 1), jnp.float32),
            grid_spec=pltpu.PrefetchScalarGridSpec(
                num_scalar_prefetch=0,
                grid=(n_tiles,),
                in_specs=in_specs,
                out_specs=out_spec,
                scratch_shapes=scratch),
            compiler_params=pltpu.CompilerParams(
                dimension_semantics=("parallel",),
                vmem_limit_bytes=vmem_limit),
        )(*inputs)
        return out[:B]  # (B, 1)

    @staticmethod
    def _vmem_limit(T, Tc, Bt, Hp, S, A, L, has_seq):
        def padded(shape, itemsize, sub=8):
            s = list(shape)
            s[-1] = _round_up(s[-1], 128)
            if len(s) >= 2:
                s[-2] = _round_up(s[-2], sub)
            return int(np.prod(s)) * itemsize

        est = 2 * padded((T, Bt, S), 4)              # x tile, double-buffered
        if A > 0:
            est += 2 * padded((Bt, A), 4)
        est += 2 * padded((Bt, 1), 4)                # out tile
        for layer in range(L):
            d = S if layer == 0 else Hp
            est += padded((d, 4 * Hp), 2, sub=16)    # wih bf16
            est += padded((Hp, 4 * Hp), 2, sub=16)   # whh bf16
            est += padded((1, 4 * Hp), 4)            # bias
        est += padded((1, Hp), 4) + padded((1, max(A, 1)), 4) + padded((1, 1), 4)
        est += padded((Tc * Bt, 4 * Hp), 4)          # gi scratch
        if has_seq:
            est += padded((T * Bt, Hp), 4)           # seq scratch
        est += 2 * padded((Bt, Hp), 4)               # h, c
        # 2x headroom; capped at 64 MiB (v7x physical VMEM), floor 8 MiB.
        return int(min(max(2 * est, 8 * 1024 * 1024), 64 * 1024 * 1024))

    # ---------------------------------------------------- pure-JAX reference
    def reference(self, obs, act=None):
        x = jnp.transpose(jnp.asarray(obs, jnp.float32), (1, 0, 2))
        H = self.hidden
        for p in self.lstm_params:
            def step(carry, x_t, p=p):
                h, c = carry
                gates = x_t @ p["wih_t"] + h @ p["whh_t"] + p["bias"]
                i = jax.nn.sigmoid(gates[:, 0 * H:1 * H])
                f = jax.nn.sigmoid(gates[:, 1 * H:2 * H])
                g = jnp.tanh(gates[:, 2 * H:3 * H])
                o = jax.nn.sigmoid(gates[:, 3 * H:4 * H])
                c = f * c + i * g
                h = o * jnp.tanh(c)
                return (h, c), h
            Bsz = x.shape[1]
            init = (jnp.zeros((Bsz, H), jnp.float32),
                    jnp.zeros((Bsz, H), jnp.float32))
            _, x = jax.lax.scan(step, init, x)
        last = x[-1]
        if act is not None and self.action_dim > 0:
            last = jnp.concatenate([last, jnp.asarray(act, jnp.float32)], axis=1)
        return last @ self.fc_w_t + self.fc_b


# ----------------------------------------------------------------------------
if __name__ == "__main__":
    layer_num = 2
    state_shape = (4,)
    action_shape = (2,)
    hidden = 32
    B, T = 2, 8

    key = jax.random.PRNGKey(0)
    k_obs, k_act, k_param = jax.random.split(key, 3)
    obs = jax.random.normal(k_obs, (B, T, int(np.prod(state_shape))), jnp.float32)
    act = jax.random.normal(k_act, (B, int(np.prod(action_shape))), jnp.float32)

    model = RecurrentCriticPallas(layer_num, state_shape, action_shape,
                                  hidden_layer_size=hidden, key=k_param)

    out = jax.block_until_ready(model(obs, act))
    assert out.shape == (B, 1)

    ref = jax.block_until_ready(model.reference(obs, act))
    # bf16 MXU operands (f32 accumulation) => looser tolerance than pure f32.
    np.testing.assert_allclose(np.asarray(out), np.asarray(ref),
                               rtol=2e-2, atol=2e-2)

    print("KERNEL_OK")
</pallas_src>

<mosaic_0001>
module attributes {stable_mosaic.version = 11 : i64} {
  func.func @_fused_lstm_critic_kernel(%arg0: i32, %arg1: memref<8x8x4xf32, #tpu.memory_space<vmem>>, %arg2: memref<8x2xf32, #tpu.memory_space<vmem>>, %arg3: memref<4x512xbf16, #tpu.memory_space<vmem>>, %arg4: memref<128x512xbf16, #tpu.memory_space<vmem>>, %arg5: memref<1x512xf32, #tpu.memory_space<vmem>>, %arg6: memref<128x512xbf16, #tpu.memory_space<vmem>>, %arg7: memref<128x512xbf16, #tpu.memory_space<vmem>>, %arg8: memref<1x512xf32, #tpu.memory_space<vmem>>, %arg9: memref<1x128xf32, #tpu.memory_space<vmem>>, %arg10: memref<1x2xf32, #tpu.memory_space<vmem>>, %arg11: memref<1x1xf32, #tpu.memory_space<vmem>>, %arg12: memref<8x1xf32, #tpu.memory_space<vmem>>, %arg13: memref<64x512xf32, #tpu.memory_space<vmem>>, %arg14: memref<64x128xf32, #tpu.memory_space<vmem>>, %arg15: memref<8x128xf32, #tpu.memory_space<vmem>>, %arg16: memref<8x128xf32, #tpu.memory_space<vmem>>) attributes {dimension_semantics = [#tpu.dimension_semantics<parallel>], iteration_bounds = array<i64: 1>, scalar_prefetch = 0 : i64, scratch_operands = 4 : i64, tpu.core_type = #tpu.core_type<tc>, window_params = [{transform_indices = @transform_0, window_bounds = array<i64: 8, 8, 4>}, {transform_indices = @transform_1, window_bounds = array<i64: 8, 2>}, {pipeline_mode = #tpu.pipeline_mode<synchronous>, transform_indices = @transform_2, window_bounds = array<i64: 4, 512>}, {pipeline_mode = #tpu.pipeline_mode<synchronous>, transform_indices = @transform_3, window_bounds = array<i64: 128, 512>}, {pipeline_mode = #tpu.pipeline_mode<synchronous>, transform_indices = @transform_4, window_bounds = array<i64: 1, 512>}, {pipeline_mode = #tpu.pipeline_mode<synchronous>, transform_indices = @transform_5, window_bounds = array<i64: 128, 512>}, {pipeline_mode = #tpu.pipeline_mode<synchronous>, transform_indices = @transform_6, window_bounds = array<i64: 128, 512>}, {pipeline_mode = #tpu.pipeline_mode<synchronous>, transform_indices = @transform_7, window_bounds = array<i64: 1, 512>}, {pipeline_mode = #tpu.pipeline_mode<synchronous>, transform_indices = @transform_8, window_bounds = array<i64: 1, 128>}, {pipeline_mode = #tpu.pipeline_mode<synchronous>, transform_indices = @transform_9, window_bounds = array<i64: 1, 2>}, {pipeline_mode = #tpu.pipeline_mode<synchronous>, transform_indices = @transform_10, window_bounds = array<i64: 1, 1>}, {transform_indices = @transform_11, window_bounds = array<i64: 8, 1>}]} {
    %cst = arith.constant 0.000000e+00 : f32
    %0 = vector.broadcast %cst : f32 to vector<8x128xf32>
    %c0 = arith.constant 0 : index
    %c0_0 = arith.constant 0 : index
    %1 = vector.load %arg15[%c0, %c0_0] : memref<8x128xf32, #tpu.memory_space<vmem>>, vector<8x128xf32>
    tpu.vector_store %arg15[%c0, %c0_0], %0 {strides = array<i32>} : memref<8x128xf32, #tpu.memory_space<vmem>>, vector<8x128xf32>,
    %cst_1 = arith.constant 0.000000e+00 : f32
    %2 = vector.broadcast %cst_1 : f32 to vector<8x128xf32>
    %c0_2 = arith.constant 0 : index
    %c0_3 = arith.constant 0 : index
    %3 = vector.load %arg16[%c0_2, %c0_3] : memref<8x128xf32, #tpu.memory_space<vmem>>, vector<8x128xf32>
    tpu.vector_store %arg16[%c0_2, %c0_3], %2 {strides = array<i32>} : memref<8x128xf32, #tpu.memory_space<vmem>>, vector<8x128xf32>,
    %c0_4 = arith.constant 0 : index
    %c0_5 = arith.constant 0 : index
    %c0_6 = arith.constant 0 : index
    %4 = vector.load %arg1[%c0_4, %c0_5, %c0_6] : memref<8x8x4xf32, #tpu.memory_space<vmem>>, vector<8x8x4xf32>
    %5 = vector.shape_cast %4 : vector<8x8x4xf32> to vector<64x4xf32>
    %6 = arith.truncf %5 : vector<64x4xf32> to vector<64x4xbf16>
    %c0_7 = arith.constant 0 : index
    %c0_8 = arith.constant 0 : index
    %7 = vector.load %arg3[%c0_7, %c0_8] : memref<4x512xbf16, #tpu.memory_space<vmem>>, vector<4x512xbf16>
    %cst_9 = arith.constant dense<0.000000e+00> : vector<64x512xf32>
    %8 = tpu.matmul %6, %7, %cst_9 {dimension_numbers = #tpu.dot_dimension_numbers<[1], [0], [0], [1], [0, 0, 1, 1], [], []>} : vector<64x4xbf16>, vector<4x512xbf16>, vector<64x512xf32> -> vector<64x512xf32>
    %c0_10 = arith.constant 0 : index
    %c0_11 = arith.constant 0 : index
    %9 = vector.load %arg5[%c0_10, %c0_11] : memref<1x512xf32, #tpu.memory_space<vmem>>, vector<1x512xf32>
    %10 = vector.broadcast %9 : vector<1x512xf32> to vector<64x512xf32>
    %11 = arith.addf %8, %10 : vector<64x512xf32>
    %c0_12 = arith.constant 0 : index
    %c0_13 = arith.constant 0 : index
    %12 = vector.load %arg13[%c0_12, %c0_13] : memref<64x512xf32, #tpu.memory_space<vmem>>, vector<64x512xf32>
    tpu.vector_store %arg13[%c0_12, %c0_13], %11 {strides = array<i32>} : memref<64x512xf32, #tpu.memory_space<vmem>>, vector<64x512xf32>,
    %c0_i32 = arith.constant 0 : i32
    %c8_i32 = arith.constant 8 : i32
    %13 = arith.muli %c0_i32, %c8_i32 : i32
    %14 = tpu.assume_multiple %13, 8 : i32
    %15 = arith.index_cast %14 : i32 to index
    %c0_14 = arith.constant 0 : index
    %16 = vector.load %arg13[%15, %c0_14] : memref<64x512xf32, #tpu.memory_space<vmem>>, vector<8x512xf32>
    %c0_15 = arith.constant 0 : index
    %c0_16 = arith.constant 0 : index
    %17 = vector.load %arg15[%c0_15, %c0_16] : memref<8x128xf32, #tpu.memory_space<vmem>>, vector<8x128xf32>
    %18 = arith.truncf %17 : vector<8x128xf32> to vector<8x128xbf16>
    %c0_17 = arith.constant 0 : index
    %c0_18 = arith.constant 0 : index
    %19 = vector.load %arg4[%c0_17, %c0_18] : memref<128x512xbf16, #tpu.memory_space<vmem>>, vector<128x512xbf16>
    %cst_19 = arith.constant dense<0.000000e+00> : vector<8x512xf32>
    %20 = tpu.matmul %18, %19, %cst_19 {dimension_numbers = #tpu.dot_dimension_numbers<[1], [0], [0], [1], [0, 0, 1, 1], [], []>} : vector<8x128xbf16>, vector<128x512xbf16>, vector<8x512xf32> -> vector<8x512xf32>
    %21 = arith.addf %16, %20 : vector<8x512xf32>
    %22 = vector.extract_strided_slice %21 {offsets = [0, 0], sizes = [8, 128], strides = [1, 1]} : vector<8x512xf32> to vector<8x128xf32>
    %23 = arith.negf %22 : vector<8x128xf32>
    %24 = math.exp %23 : vector<8x128xf32>
    %cst_20 = arith.constant 1.000000e+00 : f32
    %25 = vector.broadcast %cst_20 : f32 to vector<8x128xf32>
    %26 = arith.addf %25, %24 : vector<8x128xf32>
    %27 = arith.divf %25, %26 : vector<8x128xf32>
    %28 = vector.extract_strided_slice %21 {offsets = [0, 128], sizes = [8, 128], strides = [1, 1]} : vector<8x512xf32> to vector<8x128xf32>
    %29 = arith.negf %28 : vector<8x128xf32>
    %30 = math.exp %29 : vector<8x128xf32>
    %cst_21 = arith.constant 1.000000e+00 : f32
    %31 = vector.broadcast %cst_21 : f32 to vector<8x128xf32>
    %32 = arith.addf %31, %30 : vector<8x128xf32>
    %33 = arith.divf %31, %32 : vector<8x128xf32>
    %34 = vector.extract_strided_slice %21 {offsets = [0, 256], sizes = [8, 128], strides = [1, 1]} : vector<8x512xf32> to vector<8x128xf32>
    %35 = math.tanh %34 : vector<8x128xf32>
    %36 = vector.extract_strided_slice %21 {offsets = [0, 384], sizes = [8, 128], strides = [1, 1]} : vector<8x512xf32> to vector<8x128xf32>
    %37 = arith.negf %36 : vector<8x128xf32>
    %38 = math.exp %37 : vector<8x128xf32>
    %cst_22 = arith.constant 1.000000e+00 : f32
    %39 = vector.broadcast %cst_22 : f32 to vector<8x128xf32>
    %40 = arith.addf %39, %38 : vector<8x128xf32>
    %41 = arith.divf %39, %40 : vector<8x128xf32>
    %c0_23 = arith.constant 0 : index
    %c0_24 = arith.constant 0 : index
    %42 = vector.load %arg16[%c0_23, %c0_24] : memref<8x128xf32, #tpu.memory_space<vmem>>, vector<8x128xf32>
    %43 = arith.mulf %33, %42 : vector<8x128xf32>
    %44 = arith.mulf %27, %35 : vector<8x128xf32>
    %45 = arith.addf %43, %44 : vector<8x128xf32>
    %46 = math.tanh %45 : vector<8x128xf32>
    %47 = arith.mulf %41, %46 : vector<8x128xf32>
    %c0_25 = arith.constant 0 : index
    %c0_26 = arith.constant 0 : index
    %48 = vector.load %arg16[%c0_25, %c0_26] : memref<8x128xf32, #tpu.memory_space<vmem>>, vector<8x128xf32>
    tpu.vector_store %arg16[%c0_25, %c0_26], %45 {strides = array<i32>} : memref<8x128xf32, #tpu.memory_space<vmem>>, vector<8x128xf32>,
    %c0_27 = arith.constant 0 : index
    %c0_28 = arith.constant 0 : index
    %49 = vector.load %arg15[%c0_27, %c0_28] : memref<8x128xf32, #tpu.memory_space<vmem>>, vector<8x128xf32>
    tpu.vector_store %arg15[%c0_27, %c0_28], %47 {strides = array<i32>} : memref<8x128xf32, #tpu.memory_space<vmem>>, vector<8x128xf32>,
    %c0_i32_29 = arith.constant 0 : i32
    %50 = arith.addi %c0_i32_29, %14 : i32
    %51 = tpu.assume_multiple %50, 8 : i32
    %52 = arith.index_cast %51 : i32 to index
    %c0_30 = arith.constant 0 : index
    %53 = vector.load %arg14[%52, %c0_30] : memref<64x128xf32, #tpu.memory_space<vmem>>, vector<8x128xf32>
    tpu.vector_store %arg14[%52, %c0_30], %47 {strides = array<i32>} : memref<64x128xf32, #tpu.memory_space<vmem>>, vector<8x128xf32>,
    %c1_i32 = arith.constant 1 : i32
    %c8_i32_31 = arith.constant 8 : i32
    %54 = arith.muli %c1_i32, %c8_i32_31 : i32
    %55 = tpu.assume_multiple %54, 8 : i32
    %56 = arith.index_cast %55 : i32 to index
    %c0_32 = arith.constant 0 : index
    %57 = vector.load %arg13[%56, %c0_32] : memref<64x512xf32, #tpu.memory_space<vmem>>, vector<8x512xf32>
    %c0_33 = arith.constant 0 : index
    %c0_34 = arith.constant 0 : index
    %58 = vector.load %arg15[%c0_33, %c0_34] : memref<8x128xf32, #tpu.memory_space<vmem>>, vector<8x128xf32>
    %59 = arith.truncf %58 : vector<8x128xf32> to vector<8x128xbf16>
    %c0_35 = arith.constant 0 : index
    %c0_36 = arith.constant 0 : index
    %60 = vector.load %arg4[%c0_35, %c0_36] : memref<128x512xbf16, #tpu.memory_space<vmem>>, vector<128x512xbf16>
    %cst_37 = arith.constant dense<0.000000e+00> : vector<8x512xf32>
    %61 = tpu.matmul %59, %60, %cst_37 {dimension_numbers = #tpu.dot_dimension_numbers<[1], [0], [0], [1], [0, 0, 1, 1], [], []>} : vector<8x128xbf16>, vector<128x512xbf16>, vector<8x512xf32> -> vector<8x512xf32>
    %62 = arith.addf %57, %61 : vector<8x512xf32>
    %63 = vector.extract_strided_slice %62 {offsets = [0, 0], sizes = [8, 128], strides = [1, 1]} : vector<8x512xf32> to vector<8x128xf32>
    %64 = arith.negf %63 : vector<8x128xf32>
    %65 = math.exp %64 : vector<8x128xf32>
    %cst_38 = arith.constant 1.000000e+00 : f32
    %66 = vector.broadcast %cst_38 : f32 to vector<8x128xf32>
    %67 = arith.addf %66, %65 : vector<8x128xf32>
    %68 = arith.divf %66, %67 : vector<8x128xf32>
    %69 = vector.extract_strided_slice %62 {offsets = [0, 128], sizes = [8, 128], strides = [1, 1]} : vector<8x512xf32> to vector<8x128xf32>
    %70 = arith.negf %69 : vector<8x128xf32>
    %71 = math.exp %70 : vector<8x128xf32>
    %cst_39 = arith.constant 1.000000e+00 : f32
    %72 = vector.broadcast %cst_39 : f32 to vector<8x128xf32>
    %73 = arith.addf %72, %71 : vector<8x128xf32>
    %74 = arith.divf %72, %73 : vector<8x128xf32>
    %75 = vector.extract_strided_slice %62 {offsets = [0, 256], sizes = [8, 128], strides = [1, 1]} : vector<8x512xf32> to vector<8x128xf32>
    %76 = math.tanh %75 : vector<8x128xf32>
    %77 = vector.extract_strided_slice %62 {offsets = [0, 384], sizes = [8, 128], strides = [1, 1]} : vector<8x512xf32> to vector<8x128xf32>
    %78 = arith.negf %77 : vector<8x128xf32>
    %79 = math.exp %78 : vector<8x128xf32>
    %cst_40 = arith.constant 1.000000e+00 : f32
    %80 = vector.broadcast %cst_40 : f32 to vector<8x128xf32>
    %81 = arith.addf %80, %79 : vector<8x128xf32>
    %82 = arith.divf %80, %81 : vector<8x128xf32>
    %c0_41 = arith.constant 0 : index
    %c0_42 = arith.constant 0 : index
    %83 = vector.load %arg16[%c0_41, %c0_42] : memref<8x128xf32, #tpu.memory_space<vmem>>, vector<8x128xf32>
    %84 = arith.mulf %74, %83 : vector<8x128xf32>
    %85 = arith.mulf %68, %76 : vector<8x128xf32>
    %86 = arith.addf %84, %85 : vector<8x128xf32>
    %87 = math.tanh %86 : vector<8x128xf32>
    %88 = arith.mulf %82, %87 : vector<8x128xf32>
    %c0_43 = arith.constant 0 : index
    %c0_44 = arith.constant 0 : index
    %89 = vector.load %arg16[%c0_43, %c0_44] : memref<8x128xf32, #tpu.memory_space<vmem>>, vector<8x128xf32>
    tpu.vector_store %arg16[%c0_43, %c0_44], %86 {strides = array<i32>} : memref<8x128xf32, #tpu.memory_space<vmem>>, vector<8x128xf32>,
    %c0_45 = arith.constant 0 : index
    %c0_46 = arith.constant 0 : index
    %90 = vector.load %arg15[%c0_45, %c0_46] : memref<8x128xf32, #tpu.memory_space<vmem>>, vector<8x128xf32>
    tpu.vector_store %arg15[%c0_45, %c0_46], %88 {strides = array<i32>} : memref<8x128xf32, #tpu.memory_space<vmem>>, vector<8x128xf32>,
    %c0_i32_47 = arith.constant 0 : i32
    %91 = arith.addi %c0_i32_47, %55 : i32
    %92 = tpu.assume_multiple %91, 8 : i32
    %93 = arith.index_cast %92 : i32 to index
    %c0_48 = arith.constant 0 : index
    %94 = vector.load %arg14[%93, %c0_48] : memref<64x128xf32, #tpu.memory_space<vmem>>, vector<8x128xf32>
    tpu.vector_store %arg14[%93, %c0_48], %88 {strides = array<i32>} : memref<64x128xf32, #tpu.memory_space<vmem>>, vector<8x128xf32>,
    %c2_i32 = arith.constant 2 : i32
    %c8_i32_49 = arith.constant 8 : i32
    %95 = arith.muli %c2_i32, %c8_i32_49 : i32
    %96 = tpu.assume_multiple %95, 8 : i32
    %97 = arith.index_cast %96 : i32 to index
    %c0_50 = arith.constant 0 : index
    %98 = vector.load %arg13[%97, %c0_50] : memref<64x512xf32, #tpu.memory_space<vmem>>, vector<8x512xf32>
    %c0_51 = arith.constant 0 : index
    %c0_52 = arith.constant 0 : index
    %99 = vector.load %arg15[%c0_51, %c0_52] : memref<8x128xf32, #tpu.memory_space<vmem>>, vector<8x128xf32>
    %100 = arith.truncf %99 : vector<8x128xf32> to vector<8x128xbf16>
    %c0_53 = arith.constant 0 : index
    %c0_54 = arith.constant 0 : index
    %101 = vector.load %arg4[%c0_53, %c0_54] : memref<128x512xbf16, #tpu.memory_space<vmem>>, vector<128x512xbf16>
    %cst_55 = arith.constant dense<0.000000e+00> : vector<8x512xf32>
    %102 = tpu.matmul %100, %101, %cst_55 {dimension_numbers = #tpu.dot_dimension_numbers<[1], [0], [0], [1], [0, 0, 1, 1], [], []>} : vector<8x128xbf16>, vector<128x512xbf16>, vector<8x512xf32> -> vector<8x512xf32>
    %103 = arith.addf %98, %102 : vector<8x512xf32>
    %104 = vector.extract_strided_slice %103 {offsets = [0, 0], sizes = [8, 128], strides = [1, 1]} : vector<8x512xf32> to vector<8x128xf32>
    %105 = arith.negf %104 : vector<8x128xf32>
    %106 = math.exp %105 : vector<8x128xf32>
    %cst_56 = arith.constant 1.000000e+00 : f32
    %107 = vector.broadcast %cst_56 : f32 to vector<8x128xf32>
    %108 = arith.addf %107, %106 : vector<8x128xf32>
    %109 = arith.divf %107, %108 : vector<8x128xf32>
    %110 = vector.extract_strided_slice %103 {offsets = [0, 128], sizes = [8, 128], strides = [1, 1]} : vector<8x512xf32> to vector<8x128xf32>
    %111 = arith.negf %110 : vector<8x128xf32>
    %112 = math.exp %111 : vector<8x128xf32>
    %cst_57 = arith.constant 1.000000e+00 : f32
    %113 = vector.broadcast %cst_57 : f32 to vector<8x128xf32>
    %114 = arith.addf %113, %112 : vector<8x128xf32>
    %115 = arith.divf %113, %114 : vector<8x128xf32>
    %116 = vector.extract_strided_slice %103 {offsets = [0, 256], sizes = [8, 128], strides = [1, 1]} : vector<8x512xf32> to vector<8x128xf32>
    %117 = math.tanh %116 : vector<8x128xf32>
    %118 = vector.extract_strided_slice %103 {offsets = [0, 384], sizes = [8, 128], strides = [1, 1]} : vector<8x512xf32> to vector<8x128xf32>
    %119 = arith.negf %118 : vector<8x128xf32>
    %120 = math.exp %119 : vector<8x128xf32>
    %cst_58 = arith.constant 1.000000e+00 : f32
    %121 = vector.broadcast %cst_58 : f32 to vector<8x128xf32>
    %122 = arith.addf %121, %120 : vector<8x128xf32>
    %123 = arith.divf %121, %122 : vector<8x128xf32>
    %c0_59 = arith.constant 0 : index
    %c0_60 = arith.constant 0 : index
    %124 = vector.load %arg16[%c0_59, %c0_60] : memref<8x128xf32, #tpu.memory_space<vmem>>, vector<8x128xf32>
    %125 = arith.mulf %115, %124 : vector<8x128xf32>
    %126 = arith.mulf %109, %117 : vector<8x128xf32>
    %127 = arith.addf %125, %126 : vector<8x128xf32>
    %128 = math.tanh %127 : vector<8x128xf32>
    %129 = arith.mulf %123, %128 : vector<8x128xf32>
    %c0_61 = arith.constant 0 : index
    %c0_62 = arith.constant 0 : index
    %130 = vector.load %arg16[%c0_61, %c0_62] : memref<8x128xf32, #tpu.memory_space<vmem>>, vector<8x128xf32>
    tpu.vector_store %arg16[%c0_61, %c0_62], %127 {strides = array<i32>} : memref<8x128xf32, #tpu.memory_space<vmem>>, vector<8x128xf32>,
    %c0_63 = arith.constant 0 : index
    %c0_64 = arith.constant 0 : index
    %131 = vector.load %arg15[%c0_63, %c0_64] : memref<8x128xf32, #tpu.memory_space<vmem>>, vector<8x128xf32>
    tpu.vector_store %arg15[%c0_63, %c0_64], %129 {strides = array<i32>} : memref<8x128xf32, #tpu.memory_space<vmem>>, vector<8x128xf32>,
    %c0_i32_65 = arith.constant 0 : i32
    %132 = arith.addi %c0_i32_65, %96 : i32
    %133 = tpu.assume_multiple %132, 8 : i32
    %134 = arith.index_cast %133 : i32 to index
    %c0_66 = arith.constant 0 : index
    %135 = vector.load %arg14[%134, %c0_66] : memref<64x128xf32, #tpu.memory_space<vmem>>, vector<8x128xf32>
    tpu.vector_store %arg14[%134, %c0_66], %129 {strides = array<i32>} : memref<64x128xf32, #tpu.memory_space<vmem>>, vector<8x128xf32>,
    %c3_i32 = arith.constant 3 : i32
    %c8_i32_67 = arith.constant 8 : i32
    %136 = arith.muli %c3_i32, %c8_i32_67 : i32
    %137 = tpu.assume_multiple %136, 8 : i32
    %138 = arith.index_cast %137 : i32 to index
    %c0_68 = arith.constant 0 : index
    %139 = vector.load %arg13[%138, %c0_68] : memref<64x512xf32, #tpu.memory_space<vmem>>, vector<8x512xf32>
    %c0_69 = arith.constant 0 : index
    %c0_70 = arith.constant 0 : index
    %140 = vector.load %arg15[%c0_69, %c0_70] : memref<8x128xf32, #tpu.memory_space<vmem>>, vector<8x128xf32>
    %141 = arith.truncf %140 : vector<8x128xf32> to vector<8x128xbf16>
    %c0_71 = arith.constant 0 : index
    %c0_72 = arith.constant 0 : index
    %142 = vector.load %arg4[%c0_71, %c0_72] : memref<128x512xbf16, #tpu.memory_space<vmem>>, vector<128x512xbf16>
    %cst_73 = arith.constant dense<0.000000e+00> : vector<8x512xf32>
    %143 = tpu.matmul %141, %142, %cst_73 {dimension_numbers = #tpu.dot_dimension_numbers<[1], [0], [0], [1], [0, 0, 1, 1], [], []>} : vector<8x128xbf16>, vector<128x512xbf16>, vector<8x512xf32> -> vector<8x512xf32>
    %144 = arith.addf %139, %143 : vector<8x512xf32>
    %145 = vector.extract_strided_slice %144 {offsets = [0, 0], sizes = [8, 128], strides = [1, 1]} : vector<8x512xf32> to vector<8x128xf32>
    %146 = arith.negf %145 : vector<8x128xf32>
    %147 = math.exp %146 : vector<8x128xf32>
    %cst_74 = arith.constant 1.000000e+00 : f32
    %148 = vector.broadcast %cst_74 : f32 to vector<8x128xf32>
    %149 = arith.addf %148, %147 : vector<8x128xf32>
    %150 = arith.divf %148, %149 : vector<8x128xf32>
    %151 = vector.extract_strided_slice %144 {offsets = [0, 128], sizes = [8, 128], strides = [1, 1]} : vector<8x512xf32> to vector<8x128xf32>
    %152 = arith.negf %151 : vector<8x128xf32>
    %153 = math.exp %152 : vector<8x128xf32>
    %cst_75 = arith.constant 1.000000e+00 : f32
    %154 = vector.broadcast %cst_75 : f32 to vector<8x128xf32>
    %155 = arith.addf %154, %153 : vector<8x128xf32>
    %156 = arith.divf %154, %155 : vector<8x128xf32>
    %157 = vector.extract_strided_slice %144 {offsets = [0, 256], sizes = [8, 128], strides = [1, 1]} : vector<8x512xf32> to vector<8x128xf32>
    %158 = math.tanh %157 : vector<8x128xf32>
    %159 = vector.extract_strided_slice %144 {offsets = [0, 384], sizes = [8, 128], strides = [1, 1]} : vector<8x512xf32> to vector<8x128xf32>
    %160 = arith.negf %159 : vector<8x128xf32>
    %161 = math.exp %160 : vector<8x128xf32>
    %cst_76 = arith.constant 1.000000e+00 : f32
    %162 = vector.broadcast %cst_76 : f32 to vector<8x128xf32>
    %163 = arith.addf %162, %161 : vector<8x128xf32>
    %164 = arith.divf %162, %163 : vector<8x128xf32>
    %c0_77 = arith.constant 0 : index
    %c0_78 = arith.constant 0 : index
    %165 = vector.load %arg16[%c0_77, %c0_78] : memref<8x128xf32, #tpu.memory_space<vmem>>, vector<8x128xf32>
    %166 = arith.mulf %156, %165 : vector<8x128xf32>
    %167 = arith.mulf %150, %158 : vector<8x128xf32>
    %168 = arith.addf %166, %167 : vector<8x128xf32>
    %169 = math.tanh %168 : vector<8x128xf32>
    %170 = arith.mulf %164, %169 : vector<8x128xf32>
    %c0_79 = arith.constant 0 : index
    %c0_80 = arith.constant 0 : index
    %171 = vector.load %arg16[%c0_79, %c0_80] : memref<8x128xf32, #tpu.memory_space<vmem>>, vector<8x128xf32>
    tpu.vector_store %arg16[%c0_79, %c0_80], %168 {strides = array<i32>} : memref<8x128xf32, #tpu.memory_space<vmem>>, vector<8x128xf32>,
    %c0_81 = arith.constant 0 : index
    %c0_82 = arith.constant 0 : index
    %172 = vector.load %arg15[%c0_81, %c0_82] : memref<8x128xf32, #tpu.memory_space<vmem>>, vector<8x128xf32>
    tpu.vector_store %arg15[%c0_81, %c0_82], %170 {strides = array<i32>} : memref<8x128xf32, #tpu.memory_space<vmem>>, vector<8x128xf32>,
    %c0_i32_83 = arith.constant 0 : i32
    %173 = arith.addi %c0_i32_83, %137 : i32
    %174 = tpu.assume_multiple %173, 8 : i32
    %175 = arith.index_cast %174 : i32 to index
    %c0_84 = arith.constant 0 : index
    %176 = vector.load %arg14[%175, %c0_84] : memref<64x128xf32, #tpu.memory_space<vmem>>, vector<8x128xf32>
    tpu.vector_store %arg14[%175, %c0_84], %170 {strides = array<i32>} : memref<64x128xf32, #tpu.memory_space<vmem>>, vector<8x128xf32>,
    %c4_i32 = arith.constant 4 : i32
    %c8_i32_85 = arith.constant 8 : i32
    %177 = arith.muli %c4_i32, %c8_i32_85 : i32
    %178 = tpu.assume_multiple %177, 8 : i32
    %179 = arith.index_cast %178 : i32 to index
    %c0_86 = arith.constant 0 : index
    %180 = vector.load %arg13[%179, %c0_86] : memref<64x512xf32, #tpu.memory_space<vmem>>, vector<8x512xf32>
    %c0_87 = arith.constant 0 : index
    %c0_88 = arith.constant 0 : index
    %181 = vector.load %arg15[%c0_87, %c0_88] : memref<8x128xf32, #tpu.memory_space<vmem>>, vector<8x128xf32>
    %182 = arith.truncf %181 : vector<8x128xf32> to vector<8x128xbf16>
    %c0_89 = arith.constant 0 : index
    %c0_90 = arith.constant 0 : index
    %183 = vector.load %arg4[%c0_89, %c0_90] : memref<128x512xbf16, #tpu.memory_space<vmem>>, vector<128x512xbf16>
    %cst_91 = arith.constant dense<0.000000e+00> : vector<8x512xf32>
    %184 = tpu.matmul %182, %183, %cst_91 {dimension_numbers = #tpu.dot_dimension_numbers<[1], [0], [0], [1], [0, 0, 1, 1], [], []>} : vector<8x128xbf16>, vector<128x512xbf16>, vector<8x512xf32> -> vector<8x512xf32>
    %185 = arith.addf %180, %184 : vector<8x512xf32>
    %186 = vector.extract_strided_slice %185 {offsets = [0, 0], sizes = [8, 128], strides = [1, 1]} : vector<8x512xf32> to vector<8x128xf32>
    %187 = arith.negf %186 : vector<8x128xf32>
    %188 = math.exp %187 : vector<8x128xf32>
    %cst_92 = arith.constant 1.000000e+00 : f32
    %189 = vector.broadcast %cst_92 : f32 to vector<8x128xf32>
    %190 = arith.addf %189, %188 : vector<8x128xf32>
    %191 = arith.divf %189, %190 : vector<8x128xf32>
    %192 = vector.extract_strided_slice %185 {offsets = [0, 128], sizes = [8, 128], strides = [1, 1]} : vector<8x512xf32> to vector<8x128xf32>
    %193 = arith.negf %192 : vector<8x128xf32>
    %194 = math.exp %193 : vector<8x128xf32>
    %cst_93 = arith.constant 1.000000e+00 : f32
    %195 = vector.broadcast %cst_93 : f32 to vector<8x128xf32>
    %196 = arith.addf %195, %194 : vector<8x128xf32>
    %197 = arith.divf %195, %196 : vector<8x128xf32>
    %198 = vector.extract_strided_slice %185 {offsets = [0, 256], sizes = [8, 128], strides = [1, 1]} : vector<8x512xf32> to vector<8x128xf32>
    %199 = math.tanh %198 : vector<8x128xf32>
    %200 = vector.extract_strided_slice %185 {offsets = [0, 384], sizes = [8, 128], strides = [1, 1]} : vector<8x512xf32> to vector<8x128xf32>
    %201 = arith.negf %200 : vector<8x128xf32>
    %202 = math.exp %201 : vector<8x128xf32>
    %cst_94 = arith.constant 1.000000e+00 : f32
    %203 = vector.broadcast %cst_94 : f32 to vector<8x128xf32>
    %204 = arith.addf %203, %202 : vector<8x128xf32>
    %205 = arith.divf %203, %204 : vector<8x128xf32>
    %c0_95 = arith.constant 0 : index
    %c0_96 = arith.constant 0 : index
    %206 = vector.load %arg16[%c0_95, %c0_96] : memref<8x128xf32, #tpu.memory_space<vmem>>, vector<8x128xf32>
    %207 = arith.mulf %197, %206 : vector<8x128xf32>
    %208 = arith.mulf %191, %199 : vector<8x128xf32>
    %209 = arith.addf %207, %208 : vector<8x128xf32>
    %210 = math.tanh %209 : vector<8x128xf32>
    %211 = arith.mulf %205, %210 : vector<8x128xf32>
    %c0_97 = arith.constant 0 : index
    %c0_98 = arith.constant 0 : index
    %212 = vector.load %arg16[%c0_97, %c0_98] : memref<8x128xf32, #tpu.memory_space<vmem>>, vector<8x128xf32>
    tpu.vector_store %arg16[%c0_97, %c0_98], %209 {strides = array<i32>} : memref<8x128xf32, #tpu.memory_space<vmem>>, vector<8x128xf32>,
    %c0_99 = arith.constant 0 : index
    %c0_100 = arith.constant 0 : index
    %213 = vector.load %arg15[%c0_99, %c0_100] : memref<8x128xf32, #tpu.memory_space<vmem>>, vector<8x128xf32>
    tpu.vector_store %arg15[%c0_99, %c0_100], %211 {strides = array<i32>} : memref<8x128xf32, #tpu.memory_space<vmem>>, vector<8x128xf32>,
    %c0_i32_101 = arith.constant 0 : i32
    %214 = arith.addi %c0_i32_101, %178 : i32
    %215 = tpu.assume_multiple %214, 8 : i32
    %216 = arith.index_cast %215 : i32 to index
    %c0_102 = arith.constant 0 : index
    %217 = vector.load %arg14[%216, %c0_102] : memref<64x128xf32, #tpu.memory_space<vmem>>, vector<8x128xf32>
    tpu.vector_store %arg14[%216, %c0_102], %211 {strides = array<i32>} : memref<64x128xf32, #tpu.memory_space<vmem>>, vector<8x128xf32>,
    %c5_i32 = arith.constant 5 : i32
    %c8_i32_103 = arith.constant 8 : i32
    %218 = arith.muli %c5_i32, %c8_i32_103 : i32
    %219 = tpu.assume_multiple %218, 8 : i32
    %220 = arith.index_cast %219 : i32 to index
    %c0_104 = arith.constant 0 : index
    %221 = vector.load %arg13[%220, %c0_104] : memref<64x512xf32, #tpu.memory_space<vmem>>, vector<8x512xf32>
    %c0_105 = arith.constant 0 : index
    %c0_106 = arith.constant 0 : index
    %222 = vector.load %arg15[%c0_105, %c0_106] : memref<8x128xf32, #tpu.memory_space<vmem>>, vector<8x128xf32>
    %223 = arith.truncf %222 : vector<8x128xf32> to vector<8x128xbf16>
    %c0_107 = arith.constant 0 : index
    %c0_108 = arith.constant 0 : index
    %224 = vector.load %arg4[%c0_107, %c0_108] : memref<128x512xbf16, #tpu.memory_space<vmem>>, vector<128x512xbf16>
    %cst_109 = arith.constant dense<0.000000e+00> : vector<8x512xf32>
    %225 = tpu.matmul %223, %224, %cst_109 {dimension_numbers = #tpu.dot_dimension_numbers<[1], [0], [0], [1], [0, 0, 1, 1], [], []>} : vector<8x128xbf16>, vector<128x512xbf16>, vector<8x512xf32> -> vector<8x512xf32>
    %226 = arith.addf %221, %225 : vector<8x512xf32>
    %227 = vector.extract_strided_slice %226 {offsets = [0, 0], sizes = [8, 128], strides = [1, 1]} : vector<8x512xf32> to vector<8x128xf32>
    %228 = arith.negf %227 : vector<8x128xf32>
    %229 = math.exp %228 : vector<8x128xf32>
    %cst_110 = arith.constant 1.000000e+00 : f32
    %230 = vector.broadcast %cst_110 : f32 to vector<8x128xf32>
    %231 = arith.addf %230, %229 : vector<8x128xf32>
    %232 = arith.divf %230, %231 : vector<8x128xf32>
    %233 = vector.extract_strided_slice %226 {offsets = [0, 128], sizes = [8, 128], strides = [1, 1]} : vector<8x512xf32> to vector<8x128xf32>
    %234 = arith.negf %233 : vector<8x128xf32>
    %235 = math.exp %234 : vector<8x128xf32>
    %cst_111 = arith.constant 1.000000e+00 : f32
    %236 = vector.broadcast %cst_111 : f32 to vector<8x128xf32>
    %237 = arith.addf %236, %235 : vector<8x128xf32>
    %238 = arith.divf %236, %237 : vector<8x128xf32>
    %239 = vector.extract_strided_slice %226 {offsets = [0, 256], sizes = [8, 128], strides = [1, 1]} : vector<8x512xf32> to vector<8x128xf32>
    %240 = math.tanh %239 : vector<8x128xf32>
    %241 = vector.extract_strided_slice %226 {offsets = [0, 384], sizes = [8, 128], strides = [1, 1]} : vector<8x512xf32> to vector<8x128xf32>
    %242 = arith.negf %241 : vector<8x128xf32>
    %243 = math.exp %242 : vector<8x128xf32>
    %cst_112 = arith.constant 1.000000e+00 : f32
    %244 = vector.broadcast %cst_112 : f32 to vector<8x128xf32>
    %245 = arith.addf %244, %243 : vector<8x128xf32>
    %246 = arith.divf %244, %245 : vector<8x128xf32>
    %c0_113 = arith.constant 0 : index
    %c0_114 = arith.constant 0 : index
    %247 = vector.load %arg16[%c0_113, %c0_114] : memref<8x128xf32, #tpu.memory_space<vmem>>, vector<8x128xf32>
    %248 = arith.mulf %238, %247 : vector<8x128xf32>
    %249 = arith.mulf %232, %240 : vector<8x128xf32>
    %250 = arith.addf %248, %249 : vector<8x128xf32>
    %251 = math.tanh %250 : vector<8x128xf32>
    %252 = arith.mulf %246, %251 : vector<8x128xf32>
    %c0_115 = arith.constant 0 : index
    %c0_116 = arith.constant 0 : index
    %253 = vector.load %arg16[%c0_115, %c0_116] : memref<8x128xf32, #tpu.memory_space<vmem>>, vector<8x128xf32>
    tpu.vector_store %arg16[%c0_115, %c0_116], %250 {strides = array<i32>} : memref<8x128xf32, #tpu.memory_space<vmem>>, vector<8x128xf32>,
    %c0_117 = arith.constant 0 : index
    %c0_118 = arith.constant 0 : index
    %254 = vector.load %arg15[%c0_117, %c0_118] : memref<8x128xf32, #tpu.memory_space<vmem>>, vector<8x128xf32>
    tpu.vector_store %arg15[%c0_117, %c0_118], %252 {strides = array<i32>} : memref<8x128xf32, #tpu.memory_space<vmem>>, vector<8x128xf32>,
    %c0_i32_119 = arith.constant 0 : i32
    %255 = arith.addi %c0_i32_119, %219 : i32
    %256 = tpu.assume_multiple %255, 8 : i32
    %257 = arith.index_cast %256 : i32 to index
    %c0_120 = arith.constant 0 : index
    %258 = vector.load %arg14[%257, %c0_120] : memref<64x128xf32, #tpu.memory_space<vmem>>, vector<8x128xf32>
    tpu.vector_store %arg14[%257, %c0_120], %252 {strides = array<i32>} : memref<64x128xf32, #tpu.memory_space<vmem>>, vector<8x128xf32>,
    %c6_i32 = arith.constant 6 : i32
    %c8_i32_121 = arith.constant 8 : i32
    %259 = arith.muli %c6_i32, %c8_i32_121 : i32
    %260 = tpu.assume_multiple %259, 8 : i32
    %261 = arith.index_cast %260 : i32 to index
    %c0_122 = arith.constant 0 : index
    %262 = vector.load %arg13[%261, %c0_122] : memref<64x512xf32, #tpu.memory_space<vmem>>, vector<8x512xf32>
    %c0_123 = arith.constant 0 : index
    %c0_124 = arith.constant 0 : index
    %263 = vector.load %arg15[%c0_123, %c0_124] : memref<8x128xf32, #tpu.memory_space<vmem>>, vector<8x128xf32>
    %264 = arith.truncf %263 : vector<8x128xf32> to vector<8x128xbf16>
    %c0_125 = arith.constant 0 : index
    %c0_126 = arith.constant 0 : index
    %265 = vector.load %arg4[%c0_125, %c0_126] : memref<128x512xbf16, #tpu.memory_space<vmem>>, vector<128x512xbf16>
    %cst_127 = arith.constant dense<0.000000e+00> : vector<8x512xf32>
    %266 = tpu.matmul %264, %265, %cst_127 {dimension_numbers = #tpu.dot_dimension_numbers<[1], [0], [0], [1], [0, 0, 1, 1], [], []>} : vector<8x128xbf16>, vector<128x512xbf16>, vector<8x512xf32> -> vector<8x512xf32>
    %267 = arith.addf %262, %266 : vector<8x512xf32>
    %268 = vector.extract_strided_slice %267 {offsets = [0, 0], sizes = [8, 128], strides = [1, 1]} : vector<8x512xf32> to vector<8x128xf32>
    %269 = arith.negf %268 : vector<8x128xf32>
    %270 = math.exp %269 : vector<8x128xf32>
    %cst_128 = arith.constant 1.000000e+00 : f32
    %271 = vector.broadcast %cst_128 : f32 to vector<8x128xf32>
    %272 = arith.addf %271, %270 : vector<8x128xf32>
    %273 = arith.divf %271, %272 : vector<8x128xf32>
    %274 = vector.extract_strided_slice %267 {offsets = [0, 128], sizes = [8, 128], strides = [1, 1]} : vector<8x512xf32> to vector<8x128xf32>
    %275 = arith.negf %274 : vector<8x128xf32>
    %276 = math.exp %275 : vector<8x128xf32>
    %cst_129 = arith.constant 1.000000e+00 : f32
    %277 = vector.broadcast %cst_129 : f32 to vector<8x128xf32>
    %278 = arith.addf %277, %276 : vector<8x128xf32>
    %279 = arith.divf %277, %278 : vector<8x128xf32>
    %280 = vector.extract_strided_slice %267 {offsets = [0, 256], sizes = [8, 128], strides = [1, 1]} : vector<8x512xf32> to vector<8x128xf32>
    %281 = math.tanh %280 : vector<8x128xf32>
    %282 = vector.extract_strided_slice %267 {offsets = [0, 384], sizes = [8, 128], strides = [1, 1]} : vector<8x512xf32> to vector<8x128xf32>
    %283 = arith.negf %282 : vector<8x128xf32>
    %284 = math.exp %283 : vector<8x128xf32>
    %cst_130 = arith.constant 1.000000e+00 : f32
    %285 = vector.broadcast %cst_130 : f32 to vector<8x128xf32>
    %286 = arith.addf %285, %284 : vector<8x128xf32>
    %287 = arith.divf %285, %286 : vector<8x128xf32>
    %c0_131 = arith.constant 0 : index
    %c0_132 = arith.constant 0 : index
    %288 = vector.load %arg16[%c0_131, %c0_132] : memref<8x128xf32, #tpu.memory_space<vmem>>, vector<8x128xf32>
    %289 = arith.mulf %279, %288 : vector<8x128xf32>
    %290 = arith.mulf %273, %281 : vector<8x128xf32>
    %291 = arith.addf %289, %290 : vector<8x128xf32>
    %292 = math.tanh %291 : vector<8x128xf32>
    %293 = arith.mulf %287, %292 : vector<8x128xf32>
    %c0_133 = arith.constant 0 : index
    %c0_134 = arith.constant 0 : index
    %294 = vector.load %arg16[%c0_133, %c0_134] : memref<8x128xf32, #tpu.memory_space<vmem>>, vector<8x128xf32>
    tpu.vector_store %arg16[%c0_133, %c0_134], %291 {strides = array<i32>} : memref<8x128xf32, #tpu.memory_space<vmem>>, vector<8x128xf32>,
    %c0_135 = arith.constant 0 : index
    %c0_136 = arith.constant 0 : index
    %295 = vector.load %arg15[%c0_135, %c0_136] : memref<8x128xf32, #tpu.memory_space<vmem>>, vector<8x128xf32>
    tpu.vector_store %arg15[%c0_135, %c0_136], %293 {strides = array<i32>} : memref<8x128xf32, #tpu.memory_space<vmem>>, vector<8x128xf32>,
    %c0_i32_137 = arith.constant 0 : i32
    %296 = arith.addi %c0_i32_137, %260 : i32
    %297 = tpu.assume_multiple %296, 8 : i32
    %298 = arith.index_cast %297 : i32 to index
    %c0_138 = arith.constant 0 : index
    %299 = vector.load %arg14[%298, %c0_138] : memref<64x128xf32, #tpu.memory_space<vmem>>, vector<8x128xf32>
    tpu.vector_store %arg14[%298, %c0_138], %293 {strides = array<i32>} : memref<64x128xf32, #tpu.memory_space<vmem>>, vector<8x128xf32>,
    %c7_i32 = arith.constant 7 : i32
    %c8_i32_139 = arith.constant 8 : i32
    %300 = arith.muli %c7_i32, %c8_i32_139 : i32
    %301 = tpu.assume_multiple %300, 8 : i32
    %302 = arith.index_cast %301 : i32 to index
    %c0_140 = arith.constant 0 : index
    %303 = vector.load %arg13[%302, %c0_140] : memref<64x512xf32, #tpu.memory_space<vmem>>, vector<8x512xf32>
    %c0_141 = arith.constant 0 : index
    %c0_142 = arith.constant 0 : index
    %304 = vector.load %arg15[%c0_141, %c0_142] : memref<8x128xf32, #tpu.memory_space<vmem>>, vector<8x128xf32>
    %305 = arith.truncf %304 : vector<8x128xf32> to vector<8x128xbf16>
    %c0_143 = arith.constant 0 : index
    %c0_144 = arith.constant 0 : index
    %306 = vector.load %arg4[%c0_143, %c0_144] : memref<128x512xbf16, #tpu.memory_space<vmem>>, vector<128x512xbf16>
    %cst_145 = arith.constant dense<0.000000e+00> : vector<8x512xf32>
    %307 = tpu.matmul %305, %306, %cst_145 {dimension_numbers = #tpu.dot_dimension_numbers<[1], [0], [0], [1], [0, 0, 1, 1], [], []>} : vector<8x128xbf16>, vector<128x512xbf16>, vector<8x512xf32> -> vector<8x512xf32>
    %308 = arith.addf %303, %307 : vector<8x512xf32>
    %309 = vector.extract_strided_slice %308 {offsets = [0, 0], sizes = [8, 128], strides = [1, 1]} : vector<8x512xf32> to vector<8x128xf32>
    %310 = arith.negf %309 : vector<8x128xf32>
    %311 = math.exp %310 : vector<8x128xf32>
    %cst_146 = arith.constant 1.000000e+00 : f32
    %312 = vector.broadcast %cst_146 : f32 to vector<8x128xf32>
    %313 = arith.addf %312, %311 : vector<8x128xf32>
    %314 = arith.divf %312, %313 : vector<8x128xf32>
    %315 = vector.extract_strided_slice %308 {offsets = [0, 128], sizes = [8, 128], strides = [1, 1]} : vector<8x512xf32> to vector<8x128xf32>
    %316 = arith.negf %315 : vector<8x128xf32>
    %317 = math.exp %316 : vector<8x128xf32>
    %cst_147 = arith.constant 1.000000e+00 : f32
    %318 = vector.broadcast %cst_147 : f32 to vector<8x128xf32>
    %319 = arith.addf %318, %317 : vector<8x128xf32>
    %320 = arith.divf %318, %319 : vector<8x128xf32>
    %321 = vector.extract_strided_slice %308 {offsets = [0, 256], sizes = [8, 128], strides = [1, 1]} : vector<8x512xf32> to vector<8x128xf32>
    %322 = math.tanh %321 : vector<8x128xf32>
    %323 = vector.extract_strided_slice %308 {offsets = [0, 384], sizes = [8, 128], strides = [1, 1]} : vector<8x512xf32> to vector<8x128xf32>
    %324 = arith.negf %323 : vector<8x128xf32>
    %325 = math.exp %324 : vector<8x128xf32>
    %cst_148 = arith.constant 1.000000e+00 : f32
    %326 = vector.broadcast %cst_148 : f32 to vector<8x128xf32>
    %327 = arith.addf %326, %325 : vector<8x128xf32>
    %328 = arith.divf %326, %327 : vector<8x128xf32>
    %c0_149 = arith.constant 0 : index
    %c0_150 = arith.constant 0 : index
    %329 = vector.load %arg16[%c0_149, %c0_150] : memref<8x128xf32, #tpu.memory_space<vmem>>, vector<8x128xf32>
    %330 = arith.mulf %320, %329 : vector<8x128xf32>
    %331 = arith.mulf %314, %322 : vector<8x128xf32>
    %332 = arith.addf %330, %331 : vector<8x128xf32>
    %333 = math.tanh %332 : vector<8x128xf32>
    %334 = arith.mulf %328, %333 : vector<8x128xf32>
    %c0_151 = arith.constant 0 : index
    %c0_152 = arith.constant 0 : index
    %335 = vector.load %arg16[%c0_151, %c0_152] : memref<8x128xf32, #tpu.memory_space<vmem>>, vector<8x128xf32>
    tpu.vector_store %arg16[%c0_151, %c0_152], %332 {strides = array<i32>} : memref<8x128xf32, #tpu.memory_space<vmem>>, vector<8x128xf32>,
    %c0_153 = arith.constant 0 : index
    %c0_154 = arith.constant 0 : index
    %336 = vector.load %arg15[%c0_153, %c0_154] : memref<8x128xf32, #tpu.memory_space<vmem>>, vector<8x128xf32>
    tpu.vector_store %arg15[%c0_153, %c0_154], %334 {strides = array<i32>} : memref<8x128xf32, #tpu.memory_space<vmem>>, vector<8x128xf32>,
    %c0_i32_155 = arith.constant 0 : i32
    %337 = arith.addi %c0_i32_155, %301 : i32
    %338 = tpu.assume_multiple %337, 8 : i32
    %339 = arith.index_cast %338 : i32 to index
    %c0_156 = arith.constant 0 : index
    %340 = vector.load %arg14[%339, %c0_156] : memref<64x128xf32, #tpu.memory_space<vmem>>, vector<8x128xf32>
    tpu.vector_store %arg14[%339, %c0_156], %334 {strides = array<i32>} : memref<64x128xf32, #tpu.memory_space<vmem>>, vector<8x128xf32>,
    %c8_i32_157 = arith.constant 8 : i32
    %cst_158 = arith.constant 0.000000e+00 : f32
    %341 = vector.broadcast %cst_158 : f32 to vector<8x128xf32>
    %c0_159 = arith.constant 0 : index
    %c0_160 = arith.constant 0 : index
    %342 = vector.load %arg15[%c0_159, %c0_160] : memref<8x128xf32, #tpu.memory_space<vmem>>, vector<8x128xf32>
    tpu.vector_store %arg15[%c0_159, %c0_160], %341 {strides = array<i32>} : memref<8x128xf32, #tpu.memory_space<vmem>>, vector<8x128xf32>,
    %cst_161 = arith.constant 0.000000e+00 : f32
    %343 = vector.broadcast %cst_161 : f32 to vector<8x128xf32>
    %c0_162 = arith.constant 0 : index
    %c0_163 = arith.constant 0 : index
    %344 = vector.load %arg16[%c0_162, %c0_163] : memref<8x128xf32, #tpu.memory_space<vmem>>, vector<8x128xf32>
    tpu.vector_store %arg16[%c0_162, %c0_163], %343 {strides = array<i32>} : memref<8x128xf32, #tpu.memory_space<vmem>>, vector<8x128xf32>,
    %c0_164 = arith.constant 0 : index
    %c0_165 = arith.constant 0 : index
    %345 = vector.load %arg14[%c0_164, %c0_165] : memref<64x128xf32, #tpu.memory_space<vmem>>, vector<64x128xf32>
    %346 = arith.truncf %345 : vector<64x128xf32> to vector<64x128xbf16>
    %c0_166 = arith.constant 0 : index
    %c0_167 = arith.constant 0 : index
    %347 = vector.load %arg6[%c0_166, %c0_167] : memref<128x512xbf16, #tpu.memory_space<vmem>>, vector<128x512xbf16>
    %cst_168 = arith.constant dense<0.000000e+00> : vector<64x512xf32>
    %348 = tpu.matmul %346, %347, %cst_168 {dimension_numbers = #tpu.dot_dimension_numbers<[1], [0], [0], [1], [0, 0, 1, 1], [], []>} : vector<64x128xbf16>, vector<128x512xbf16>, vector<64x512xf32> -> vector<64x512xf32>
    %c0_169 = arith.constant 0 : index
    %c0_170 = arith.constant 0 : index
    %349 = vector.load %arg8[%c0_169, %c0_170] : memref<1x512xf32, #tpu.memory_space<vmem>>, vector<1x512xf32>
    %350 = vector.broadcast %349 : vector<1x512xf32> to vector<64x512xf32>
    %351 = arith.addf %348, %350 : vector<64x512xf32>
    %c0_171 = arith.constant 0 : index
    %c0_172 = arith.constant 0 : index
    %352 = vector.load %arg13[%c0_171, %c0_172] : memref<64x512xf32, #tpu.memory_space<vmem>>, vector<64x512xf32>
    tpu.vector_store %arg13[%c0_171, %c0_172], %351 {strides = array<i32>} : memref<64x512xf32, #tpu.memory_space<vmem>>, vector<64x512xf32>,
    %c0_i32_173 = arith.constant 0 : i32
    %c8_i32_174 = arith.constant 8 : i32
    %353 = arith.muli %c0_i32_173, %c8_i32_174 : i32
    %354 = tpu.assume_multiple %353, 8 : i32
    %355 = arith.index_cast %354 : i32 to index
    %c0_175 = arith.constant 0 : index
    %356 = vector.load %arg13[%355, %c0_175] : memref<64x512xf32, #tpu.memory_space<vmem>>, vector<8x512xf32>
    %c0_176 = arith.constant 0 : index
    %c0_177 = arith.constant 0 : index
    %357 = vector.load %arg15[%c0_176, %c0_177] : memref<8x128xf32, #tpu.memory_space<vmem>>, vector<8x128xf32>
    %358 = arith.truncf %357 : vector<8x128xf32> to vector<8x128xbf16>
    %c0_178 = arith.constant 0 : index
    %c0_179 = arith.constant 0 : index
    %359 = vector.load %arg7[%c0_178, %c0_179] : memref<128x512xbf16, #tpu.memory_space<vmem>>, vector<128x512xbf16>
    %cst_180 = arith.constant dense<0.000000e+00> : vector<8x512xf32>
    %360 = tpu.matmul %358, %359, %cst_180 {dimension_numbers = #tpu.dot_dimension_numbers<[1], [0], [0], [1], [0, 0, 1, 1], [], []>} : vector<8x128xbf16>, vector<128x512xbf16>, vector<8x512xf32> -> vector<8x512xf32>
    %361 = arith.addf %356, %360 : vector<8x512xf32>
    %362 = vector.extract_strided_slice %361 {offsets = [0, 0], sizes = [8, 128], strides = [1, 1]} : vector<8x512xf32> to vector<8x128xf32>
    %363 = arith.negf %362 : vector<8x128xf32>
    %364 = math.exp %363 : vector<8x128xf32>
    %cst_181 = arith.constant 1.000000e+00 : f32
    %365 = vector.broadcast %cst_181 : f32 to vector<8x128xf32>
    %366 = arith.addf %365, %364 : vector<8x128xf32>
    %367 = arith.divf %365, %366 : vector<8x128xf32>
    %368 = vector.extract_strided_slice %361 {offsets = [0, 128], sizes = [8, 128], strides = [1, 1]} : vector<8x512xf32> to vector<8x128xf32>
    %369 = arith.negf %368 : vector<8x128xf32>
    %370 = math.exp %369 : vector<8x128xf32>
    %cst_182 = arith.constant 1.000000e+00 : f32
    %371 = vector.broadcast %cst_182 : f32 to vector<8x128xf32>
    %372 = arith.addf %371, %370 : vector<8x128xf32>
    %373 = arith.divf %371, %372 : vector<8x128xf32>
    %374 = vector.extract_strided_slice %361 {offsets = [0, 256], sizes = [8, 128], strides = [1, 1]} : vector<8x512xf32> to vector<8x128xf32>
    %375 = math.tanh %374 : vector<8x128xf32>
    %376 = vector.extract_strided_slice %361 {offsets = [0, 384], sizes = [8, 128], strides = [1, 1]} : vector<8x512xf32> to vector<8x128xf32>
    %377 = arith.negf %376 : vector<8x128xf32>
    %378 = math.exp %377 : vector<8x128xf32>
    %cst_183 = arith.constant 1.000000e+00 : f32
    %379 = vector.broadcast %cst_183 : f32 to vector<8x128xf32>
    %380 = arith.addf %379, %378 : vector<8x128xf32>
    %381 = arith.divf %379, %380 : vector<8x128xf32>
    %c0_184 = arith.constant 0 : index
    %c0_185 = arith.constant 0 : index
    %382 = vector.load %arg16[%c0_184, %c0_185] : memref<8x128xf32, #tpu.memory_space<vmem>>, vector<8x128xf32>
    %383 = arith.mulf %373, %382 : vector<8x128xf32>
    %384 = arith.mulf %367, %375 : vector<8x128xf32>
    %385 = arith.addf %383, %384 : vector<8x128xf32>
    %386 = math.tanh %385 : vector<8x128xf32>
    %387 = arith.mulf %381, %386 : vector<8x128xf32>
    %c0_186 = arith.constant 0 : index
    %c0_187 = arith.constant 0 : index
    %388 = vector.load %arg16[%c0_186, %c0_187] : memref<8x128xf32, #tpu.memory_space<vmem>>, vector<8x128xf32>
    tpu.vector_store %arg16[%c0_186, %c0_187], %385 {strides = array<i32>} : memref<8x128xf32, #tpu.memory_space<vmem>>, vector<8x128xf32>,
    %c0_188 = arith.constant 0 : index
    %c0_189 = arith.constant 0 : index
    %389 = vector.load %arg15[%c0_188, %c0_189] : memref<8x128xf32, #tpu.memory_space<vmem>>, vector<8x128xf32>
    tpu.vector_store %arg15[%c0_188, %c0_189], %387 {strides = array<i32>} : memref<8x128xf32, #tpu.memory_space<vmem>>, vector<8x128xf32>,
    %c1_i32_190 = arith.constant 1 : i32
    %c8_i32_191 = arith.constant 8 : i32
    %390 = arith.muli %c1_i32_190, %c8_i32_191 : i32
    %391 = tpu.assume_multiple %390, 8 : i32
    %392 = arith.index_cast %391 : i32 to index
    %c0_192 = arith.constant 0 : index
    %393 = vector.load %arg13[%392, %c0_192] : memref<64x512xf32, #tpu.memory_space<vmem>>, vector<8x512xf32>
    %c0_193 = arith.constant 0 : index
    %c0_194 = arith.constant 0 : index
    %394 = vector.load %arg15[%c0_193, %c0_194] : memref<8x128xf32, #tpu.memory_space<vmem>>, vector<8x128xf32>
    %395 = arith.truncf %394 : vector<8x128xf32> to vector<8x128xbf16>
    %c0_195 = arith.constant 0 : index
    %c0_196 = arith.constant 0 : index
    %396 = vector.load %arg7[%c0_195, %c0_196] : memref<128x512xbf16, #tpu.memory_space<vmem>>, vector<128x512xbf16>
    %cst_197 = arith.constant dense<0.000000e+00> : vector<8x512xf32>
    %397 = tpu.matmul %395, %396, %cst_197 {dimension_numbers = #tpu.dot_dimension_numbers<[1], [0], [0], [1], [0, 0, 1, 1], [], []>} : vector<8x128xbf16>, vector<128x512xbf16>, vector<8x512xf32> -> vector<8x512xf32>
    %398 = arith.addf %393, %397 : vector<8x512xf32>
    %399 = vector.extract_strided_slice %398 {offsets = [0, 0], sizes = [8, 128], strides = [1, 1]} : vector<8x512xf32> to vector<8x128xf32>
    %400 = arith.negf %399 : vector<8x128xf32>
    %401 = math.exp %400 : vector<8x128xf32>
    %cst_198 = arith.constant 1.000000e+00 : f32
    %402 = vector.broadcast %cst_198 : f32 to vector<8x128xf32>
    %403 = arith.addf %402, %401 : vector<8x128xf32>
    %404 = arith.divf %402, %403 : vector<8x128xf32>
    %405 = vector.extract_strided_slice %398 {offsets = [0, 128], sizes = [8, 128], strides = [1, 1]} : vector<8x512xf32> to vector<8x128xf32>
    %406 = arith.negf %405 : vector<8x128xf32>
    %407 = math.exp %406 : vector<8x128xf32>
    %cst_199 = arith.constant 1.000000e+00 : f32
    %408 = vector.broadcast %cst_199 : f32 to vector<8x128xf32>
    %409 = arith.addf %408, %407 : vector<8x128xf32>
    %410 = arith.divf %408, %409 : vector<8x128xf32>
    %411 = vector.extract_strided_slice %398 {offsets = [0, 256], sizes = [8, 128], strides = [1, 1]} : vector<8x512xf32> to vector<8x128xf32>
    %412 = math.tanh %411 : vector<8x128xf32>
    %413 = vector.extract_strided_slice %398 {offsets = [0, 384], sizes = [8, 128], strides = [1, 1]} : vector<8x512xf32> to vector<8x128xf32>
    %414 = arith.negf %413 : vector<8x128xf32>
    %415 = math.exp %414 : vector<8x128xf32>
    %cst_200 = arith.constant 1.000000e+00 : f32
    %416 = vector.broadcast %cst_200 : f32 to vector<8x128xf32>
    %417 = arith.addf %416, %415 : vector<8x128xf32>
    %418 = arith.divf %416, %417 : vector<8x128xf32>
    %c0_201 = arith.constant 0 : index
    %c0_202 = arith.constant 0 : index
    %419 = vector.load %arg16[%c0_201, %c0_202] : memref<8x128xf32, #tpu.memory_space<vmem>>, vector<8x128xf32>
    %420 = arith.mulf %410, %419 : vector<8x128xf32>
    %421 = arith.mulf %404, %412 : vector<8x128xf32>
    %422 = arith.addf %420, %421 : vector<8x128xf32>
    %423 = math.tanh %422 : vector<8x128xf32>
    %424 = arith.mulf %418, %423 : vector<8x128xf32>
    %c0_203 = arith.constant 0 : index
    %c0_204 = arith.constant 0 : index
    %425 = vector.load %arg16[%c0_203, %c0_204] : memref<8x128xf32, #tpu.memory_space<vmem>>, vector<8x128xf32>
    tpu.vector_store %arg16[%c0_203, %c0_204], %422 {strides = array<i32>} : memref<8x128xf32, #tpu.memory_space<vmem>>, vector<8x128xf32>,
    %c0_205 = arith.constant 0 : index
    %c0_206 = arith.constant 0 : index
    %426 = vector.load %arg15[%c0_205, %c0_206] : memref<8x128xf32, #tpu.memory_space<vmem>>, vector<8x128xf32>
    tpu.vector_store %arg15[%c0_205, %c0_206], %424 {strides = array<i32>} : memref<8x128xf32, #tpu.memory_space<vmem>>, vector<8x128xf32>,
    %c2_i32_207 = arith.constant 2 : i32
    %c8_i32_208 = arith.constant 8 : i32
    %427 = arith.muli %c2_i32_207, %c8_i32_208 : i32
    %428 = tpu.assume_multiple %427, 8 : i32
    %429 = arith.index_cast %428 : i32 to index
    %c0_209 = arith.constant 0 : index
    %430 = vector.load %arg13[%429, %c0_209] : memref<64x512xf32, #tpu.memory_space<vmem>>, vector<8x512xf32>
    %c0_210 = arith.constant 0 : index
    %c0_211 = arith.constant 0 : index
    %431 = vector.load %arg15[%c0_210, %c0_211] : memref<8x128xf32, #tpu.memory_space<vmem>>, vector<8x128xf32>
    %432 = arith.truncf %431 : vector<8x128xf32> to vector<8x128xbf16>
    %c0_212 = arith.constant 0 : index
    %c0_213 = arith.constant 0 : index
    %433 = vector.load %arg7[%c0_212, %c0_213] : memref<128x512xbf16, #tpu.memory_space<vmem>>, vector<128x512xbf16>
    %cst_214 = arith.constant dense<0.000000e+00> : vector<8x512xf32>
    %434 = tpu.matmul %432, %433, %cst_214 {dimension_numbers = #tpu.dot_dimension_numbers<[1], [0], [0], [1], [0, 0, 1, 1], [], []>} : vector<8x128xbf16>, vector<128x512xbf16>, vector<8x512xf32> -> vector<8x512xf32>
    %435 = arith.addf %430, %434 : vector<8x512xf32>
    %436 = vector.extract_strided_slice %435 {offsets = [0, 0], sizes = [8, 128], strides = [1, 1]} : vector<8x512xf32> to vector<8x128xf32>
    %437 = arith.negf %436 : vector<8x128xf32>
    %438 = math.exp %437 : vector<8x128xf32>
    %cst_215 = arith.constant 1.000000e+00 : f32
    %439 = vector.broadcast %cst_215 : f32 to vector<8x128xf32>
    %440 = arith.addf %439, %438 : vector<8x128xf32>
    %441 = arith.divf %439, %440 : vector<8x128xf32>
    %442 = vector.extract_strided_slice %435 {offsets = [0, 128], sizes = [8, 128], strides = [1, 1]} : vector<8x512xf32> to vector<8x128xf32>
    %443 = arith.negf %442 : vector<8x128xf32>
    %444 = math.exp %443 : vector<8x128xf32>
    %cst_216 = arith.constant 1.000000e+00 : f32
    %445 = vector.broadcast %cst_216 : f32 to vector<8x128xf32>
    %446 = arith.addf %445, %444 : vector<8x128xf32>
    %447 = arith.divf %445, %446 : vector<8x128xf32>
    %448 = vector.extract_strided_slice %435 {offsets = [0, 256], sizes = [8, 128], strides = [1, 1]} : vector<8x512xf32> to vector<8x128xf32>
    %449 = math.tanh %448 : vector<8x128xf32>
    %450 = vector.extract_strided_slice %435 {offsets = [0, 384], sizes = [8, 128], strides = [1, 1]} : vector<8x512xf32> to vector<8x128xf32>
    %451 = arith.negf %450 : vector<8x128xf32>
    %452 = math.exp %451 : vector<8x128xf32>
    %cst_217 = arith.constant 1.000000e+00 : f32
    %453 = vector.broadcast %cst_217 : f32 to vector<8x128xf32>
    %454 = arith.addf %453, %452 : vector<8x128xf32>
    %455 = arith.divf %453, %454 : vector<8x128xf32>
    %c0_218 = arith.constant 0 : index
    %c0_219 = arith.constant 0 : index
    %456 = vector.load %arg16[%c0_218, %c0_219] : memref<8x128xf32, #tpu.memory_space<vmem>>, vector<8x128xf32>
    %457 = arith.mulf %447, %456 : vector<8x128xf32>
    %458 = arith.mulf %441, %449 : vector<8x128xf32>
    %459 = arith.addf %457, %458 : vector<8x128xf32>
    %460 = math.tanh %459 : vector<8x128xf32>
    %461 = arith.mulf %455, %460 : vector<8x128xf32>
    %c0_220 = arith.constant 0 : index
    %c0_221 = arith.constant 0 : index
    %462 = vector.load %arg16[%c0_220, %c0_221] : memref<8x128xf32, #tpu.memory_space<vmem>>, vector<8x128xf32>
    tpu.vector_store %arg16[%c0_220, %c0_221], %459 {strides = array<i32>} : memref<8x128xf32, #tpu.memory_space<vmem>>, vector<8x128xf32>,
    %c0_222 = arith.constant 0 : index
    %c0_223 = arith.constant 0 : index
    %463 = vector.load %arg15[%c0_222, %c0_223] : memref<8x128xf32, #tpu.memory_space<vmem>>, vector<8x128xf32>
    tpu.vector_store %arg15[%c0_222, %c0_223], %461 {strides = array<i32>} : memref<8x128xf32, #tpu.memory_space<vmem>>, vector<8x128xf32>,
    %c3_i32_224 = arith.constant 3 : i32
    %c8_i32_225 = arith.constant 8 : i32
    %464 = arith.muli %c3_i32_224, %c8_i32_225 : i32
    %465 = tpu.assume_multiple %464, 8 : i32
    %466 = arith.index_cast %465 : i32 to index
    %c0_226 = arith.constant 0 : index
    %467 = vector.load %arg13[%466, %c0_226] : memref<64x512xf32, #tpu.memory_space<vmem>>, vector<8x512xf32>
    %c0_227 = arith.constant 0 : index
    %c0_228 = arith.constant 0 : index
    %468 = vector.load %arg15[%c0_227, %c0_228] : memref<8x128xf32, #tpu.memory_space<vmem>>, vector<8x128xf32>
    %469 = arith.truncf %468 : vector<8x128xf32> to vector<8x128xbf16>
    %c0_229 = arith.constant 0 : index
    %c0_230 = arith.constant 0 : index
    %470 = vector.load %arg7[%c0_229, %c0_230] : memref<128x512xbf16, #tpu.memory_space<vmem>>, vector<128x512xbf16>
    %cst_231 = arith.constant dense<0.000000e+00> : vector<8x512xf32>
    %471 = tpu.matmul %469, %470, %cst_231 {dimension_numbers = #tpu.dot_dimension_numbers<[1], [0], [0], [1], [0, 0, 1, 1], [], []>} : vector<8x128xbf16>, vector<128x512xbf16>, vector<8x512xf32> -> vector<8x512xf32>
    %472 = arith.addf %467, %471 : vector<8x512xf32>
    %473 = vector.extract_strided_slice %472 {offsets = [0, 0], sizes = [8, 128], strides = [1, 1]} : vector<8x512xf32> to vector<8x128xf32>
    %474 = arith.negf %473 : vector<8x128xf32>
    %475 = math.exp %474 : vector<8x128xf32>
    %cst_232 = arith.constant 1.000000e+00 : f32
    %476 = vector.broadcast %cst_232 : f32 to vector<8x128xf32>
    %477 = arith.addf %476, %475 : vector<8x128xf32>
    %478 = arith.divf %476, %477 : vector<8x128xf32>
    %479 = vector.extract_strided_slice %472 {offsets = [0, 128], sizes = [8, 128], strides = [1, 1]} : vector<8x512xf32> to vector<8x128xf32>
    %480 = arith.negf %479 : vector<8x128xf32>
    %481 = math.exp %480 : vector<8x128xf32>
    %cst_233 = arith.constant 1.000000e+00 : f32
    %482 = vector.broadcast %cst_233 : f32 to vector<8x128xf32>
    %483 = arith.addf %482, %481 : vector<8x128xf32>
    %484 = arith.divf %482, %483 : vector<8x128xf32>
    %485 = vector.extract_strided_slice %472 {offsets = [0, 256], sizes = [8, 128], strides = [1, 1]} : vector<8x512xf32> to vector<8x128xf32>
    %486 = math.tanh %485 : vector<8x128xf32>
    %487 = vector.extract_strided_slice %472 {offsets = [0, 384], sizes = [8, 128], strides = [1, 1]} : vector<8x512xf32> to vector<8x128xf32>
    %488 = arith.negf %487 : vector<8x128xf32>
    %489 = math.exp %488 : vector<8x128xf32>
    %cst_234 = arith.constant 1.000000e+00 : f32
    %490 = vector.broadcast %cst_234 : f32 to vector<8x128xf32>
    %491 = arith.addf %490, %489 : vector<8x128xf32>
    %492 = arith.divf %490, %491 : vector<8x128xf32>
    %c0_235 = arith.constant 0 : index
    %c0_236 = arith.constant 0 : index
    %493 = vector.load %arg16[%c0_235, %c0_236] : memref<8x128xf32, #tpu.memory_space<vmem>>, vector<8x128xf32>
    %494 = arith.mulf %484, %493 : vector<8x128xf32>
    %495 = arith.mulf %478, %486 : vector<8x128xf32>
    %496 = arith.addf %494, %495 : vector<8x128xf32>
    %497 = math.tanh %496 : vector<8x128xf32>
    %498 = arith.mulf %492, %497 : vector<8x128xf32>
    %c0_237 = arith.constant 0 : index
    %c0_238 = arith.constant 0 : index
    %499 = vector.load %arg16[%c0_237, %c0_238] : memref<8x128xf32, #tpu.memory_space<vmem>>, vector<8x128xf32>
    tpu.vector_store %arg16[%c0_237, %c0_238], %496 {strides = array<i32>} : memref<8x128xf32, #tpu.memory_space<vmem>>, vector<8x128xf32>,
    %c0_239 = arith.constant 0 : index
    %c0_240 = arith.constant 0 : index
    %500 = vector.load %arg15[%c0_239, %c0_240] : memref<8x128xf32, #tpu.memory_space<vmem>>, vector<8x128xf32>
    tpu.vector_store %arg15[%c0_239, %c0_240], %498 {strides = array<i32>} : memref<8x128xf32, #tpu.memory_space<vmem>>, vector<8x128xf32>,
    %c4_i32_241 = arith.constant 4 : i32
    %c8_i32_242 = arith.constant 8 : i32
    %501 = arith.muli %c4_i32_241, %c8_i32_242 : i32
    %502 = tpu.assume_multiple %501, 8 : i32
    %503 = arith.index_cast %502 : i32 to index
    %c0_243 = arith.constant 0 : index
    %504 = vector.load %arg13[%503, %c0_243] : memref<64x512xf32, #tpu.memory_space<vmem>>, vector<8x512xf32>
    %c0_244 = arith.constant 0 : index
    %c0_245 = arith.constant 0 : index
    %505 = vector.load %arg15[%c0_244, %c0_245] : memref<8x128xf32, #tpu.memory_space<vmem>>, vector<8x128xf32>
    %506 = arith.truncf %505 : vector<8x128xf32> to vector<8x128xbf16>
    %c0_246 = arith.constant 0 : index
    %c0_247 = arith.constant 0 : index
    %507 = vector.load %arg7[%c0_246, %c0_247] : memref<128x512xbf16, #tpu.memory_space<vmem>>, vector<128x512xbf16>
    %cst_248 = arith.constant dense<0.000000e+00> : vector<8x512xf32>
    %508 = tpu.matmul %506, %507, %cst_248 {dimension_numbers = #tpu.dot_dimension_numbers<[1], [0], [0], [1], [0, 0, 1, 1], [], []>} : vector<8x128xbf16>, vector<128x512xbf16>, vector<8x512xf32> -> vector<8x512xf32>
    %509 = arith.addf %504, %508 : vector<8x512xf32>
    %510 = vector.extract_strided_slice %509 {offsets = [0, 0], sizes = [8, 128], strides = [1, 1]} : vector<8x512xf32> to vector<8x128xf32>
    %511 = arith.negf %510 : vector<8x128xf32>
    %512 = math.exp %511 : vector<8x128xf32>
    %cst_249 = arith.constant 1.000000e+00 : f32
    %513 = vector.broadcast %cst_249 : f32 to vector<8x128xf32>
    %514 = arith.addf %513, %512 : vector<8x128xf32>
    %515 = arith.divf %513, %514 : vector<8x128xf32>
    %516 = vector.extract_strided_slice %509 {offsets = [0, 128], sizes = [8, 128], strides = [1, 1]} : vector<8x512xf32> to vector<8x128xf32>
    %517 = arith.negf %516 : vector<8x128xf32>
    %518 = math.exp %517 : vector<8x128xf32>
    %cst_250 = arith.constant 1.000000e+00 : f32
    %519 = vector.broadcast %cst_250 : f32 to vector<8x128xf32>
    %520 = arith.addf %519, %518 : vector<8x128xf32>
    %521 = arith.divf %519, %520 : vector<8x128xf32>
    %522 = vector.extract_strided_slice %509 {offsets = [0, 256], sizes = [8, 128], strides = [1, 1]} : vector<8x512xf32> to vector<8x128xf32>
    %523 = math.tanh %522 : vector<8x128xf32>
    %524 = vector.extract_strided_slice %509 {offsets = [0, 384], sizes = [8, 128], strides = [1, 1]} : vector<8x512xf32> to vector<8x128xf32>
    %525 = arith.negf %524 : vector<8x128xf32>
    %526 = math.exp %525 : vector<8x128xf32>
    %cst_251 = arith.constant 1.000000e+00 : f32
    %527 = vector.broadcast %cst_251 : f32 to vector<8x128xf32>
    %528 = arith.addf %527, %526 : vector<8x128xf32>
    %529 = arith.divf %527, %528 : vector<8x128xf32>
    %c0_252 = arith.constant 0 : index
    %c0_253 = arith.constant 0 : index
    %530 = vector.load %arg16[%c0_252, %c0_253] : memref<8x128xf32, #tpu.memory_space<vmem>>, vector<8x128xf32>
    %531 = arith.mulf %521, %530 : vector<8x128xf32>
    %532 = arith.mulf %515, %523 : vector<8x128xf32>
    %533 = arith.addf %531, %532 : vector<8x128xf32>
    %534 = math.tanh %533 : vector<8x128xf32>
    %535 = arith.mulf %529, %534 : vector<8x128xf32>
    %c0_254 = arith.constant 0 : index
    %c0_255 = arith.constant 0 : index
    %536 = vector.load %arg16[%c0_254, %c0_255] : memref<8x128xf32, #tpu.memory_space<vmem>>, vector<8x128xf32>
    tpu.vector_store %arg16[%c0_254, %c0_255], %533 {strides = array<i32>} : memref<8x128xf32, #tpu.memory_space<vmem>>, vector<8x128xf32>,
    %c0_256 = arith.constant 0 : index
    %c0_257 = arith.constant 0 : index
    %537 = vector.load %arg15[%c0_256, %c0_257] : memref<8x128xf32, #tpu.memory_space<vmem>>, vector<8x128xf32>
    tpu.vector_store %arg15[%c0_256, %c0_257], %535 {strides = array<i32>} : memref<8x128xf32, #tpu.memory_space<vmem>>, vector<8x128xf32>,
    %c5_i32_258 = arith.constant 5 : i32
    %c8_i32_259 = arith.constant 8 : i32
    %538 = arith.muli %c5_i32_258, %c8_i32_259 : i32
    %539 = tpu.assume_multiple %538, 8 : i32
    %540 = arith.index_cast %539 : i32 to index
    %c0_260 = arith.constant 0 : index
    %541 = vector.load %arg13[%540, %c0_260] : memref<64x512xf32, #tpu.memory_space<vmem>>, vector<8x512xf32>
    %c0_261 = arith.constant 0 : index
    %c0_262 = arith.constant 0 : index
    %542 = vector.load %arg15[%c0_261, %c0_262] : memref<8x128xf32, #tpu.memory_space<vmem>>, vector<8x128xf32>
    %543 = arith.truncf %542 : vector<8x128xf32> to vector<8x128xbf16>
    %c0_263 = arith.constant 0 : index
    %c0_264 = arith.constant 0 : index
    %544 = vector.load %arg7[%c0_263, %c0_264] : memref<128x512xbf16, #tpu.memory_space<vmem>>, vector<128x512xbf16>
    %cst_265 = arith.constant dense<0.000000e+00> : vector<8x512xf32>
    %545 = tpu.matmul %543, %544, %cst_265 {dimension_numbers = #tpu.dot_dimension_numbers<[1], [0], [0], [1], [0, 0, 1, 1], [], []>} : vector<8x128xbf16>, vector<128x512xbf16>, vector<8x512xf32> -> vector<8x512xf32>
    %546 = arith.addf %541, %545 : vector<8x512xf32>
    %547 = vector.extract_strided_slice %546 {offsets = [0, 0], sizes = [8, 128], strides = [1, 1]} : vector<8x512xf32> to vector<8x128xf32>
    %548 = arith.negf %547 : vector<8x128xf32>
    %549 = math.exp %548 : vector<8x128xf32>
    %cst_266 = arith.constant 1.000000e+00 : f32
    %550 = vector.broadcast %cst_266 : f32 to vector<8x128xf32>
    %551 = arith.addf %550, %549 : vector<8x128xf32>
    %552 = arith.divf %550, %551 : vector<8x128xf32>
    %553 = vector.extract_strided_slice %546 {offsets = [0, 128], sizes = [8, 128], strides = [1, 1]} : vector<8x512xf32> to vector<8x128xf32>
    %554 = arith.negf %553 : vector<8x128xf32>
    %555 = math.exp %554 : vector<8x128xf32>
    %cst_267 = arith.constant 1.000000e+00 : f32
    %556 = vector.broadcast %cst_267 : f32 to vector<8x128xf32>
    %557 = arith.addf %556, %555 : vector<8x128xf32>
    %558 = arith.divf %556, %557 : vector<8x128xf32>
    %559 = vector.extract_strided_slice %546 {offsets = [0, 256], sizes = [8, 128], strides = [1, 1]} : vector<8x512xf32> to vector<8x128xf32>
    %560 = math.tanh %559 : vector<8x128xf32>
    %561 = vector.extract_strided_slice %546 {offsets = [0, 384], sizes = [8, 128], strides = [1, 1]} : vector<8x512xf32> to vector<8x128xf32>
    %562 = arith.negf %561 : vector<8x128xf32>
    %563 = math.exp %562 : vector<8x128xf32>
    %cst_268 = arith.constant 1.000000e+00 : f32
    %564 = vector.broadcast %cst_268 : f32 to vector<8x128xf32>
    %565 = arith.addf %564, %563 : vector<8x128xf32>
    %566 = arith.divf %564, %565 : vector<8x128xf32>
    %c0_269 = arith.constant 0 : index
    %c0_270 = arith.constant 0 : index
    %567 = vector.load %arg16[%c0_269, %c0_270] : memref<8x128xf32, #tpu.memory_space<vmem>>, vector<8x128xf32>
    %568 = arith.mulf %558, %567 : vector<8x128xf32>
    %569 = arith.mulf %552, %560 : vector<8x128xf32>
    %570 = arith.addf %568, %569 : vector<8x128xf32>
    %571 = math.tanh %570 : vector<8x128xf32>
    %572 = arith.mulf %566, %571 : vector<8x128xf32>
    %c0_271 = arith.constant 0 : index
    %c0_272 = arith.constant 0 : index
    %573 = vector.load %arg16[%c0_271, %c0_272] : memref<8x128xf32, #tpu.memory_space<vmem>>, vector<8x128xf32>
    tpu.vector_store %arg16[%c0_271, %c0_272], %570 {strides = array<i32>} : memref<8x128xf32, #tpu.memory_space<vmem>>, vector<8x128xf32>,
    %c0_273 = arith.constant 0 : index
    %c0_274 = arith.constant 0 : index
    %574 = vector.load %arg15[%c0_273, %c0_274] : memref<8x128xf32, #tpu.memory_space<vmem>>, vector<8x128xf32>
    tpu.vector_store %arg15[%c0_273, %c0_274], %572 {strides = array<i32>} : memref<8x128xf32, #tpu.memory_space<vmem>>, vector<8x128xf32>,
    %c6_i32_275 = arith.constant 6 : i32
    %c8_i32_276 = arith.constant 8 : i32
    %575 = arith.muli %c6_i32_275, %c8_i32_276 : i32
    %576 = tpu.assume_multiple %575, 8 : i32
    %577 = arith.index_cast %576 : i32 to index
    %c0_277 = arith.constant 0 : index
    %578 = vector.load %arg13[%577, %c0_277] : memref<64x512xf32, #tpu.memory_space<vmem>>, vector<8x512xf32>
    %c0_278 = arith.constant 0 : index
    %c0_279 = arith.constant 0 : index
    %579 = vector.load %arg15[%c0_278, %c0_279] : memref<8x128xf32, #tpu.memory_space<vmem>>, vector<8x128xf32>
    %580 = arith.truncf %579 : vector<8x128xf32> to vector<8x128xbf16>
    %c0_280 = arith.constant 0 : index
    %c0_281 = arith.constant 0 : index
    %581 = vector.load %arg7[%c0_280, %c0_281] : memref<128x512xbf16, #tpu.memory_space<vmem>>, vector<128x512xbf16>
    %cst_282 = arith.constant dense<0.000000e+00> : vector<8x512xf32>
    %582 = tpu.matmul %580, %581, %cst_282 {dimension_numbers = #tpu.dot_dimension_numbers<[1], [0], [0], [1], [0, 0, 1, 1], [], []>} : vector<8x128xbf16>, vector<128x512xbf16>, vector<8x512xf32> -> vector<8x512xf32>
    %583 = arith.addf %578, %582 : vector<8x512xf32>
    %584 = vector.extract_strided_slice %583 {offsets = [0, 0], sizes = [8, 128], strides = [1, 1]} : vector<8x512xf32> to vector<8x128xf32>
    %585 = arith.negf %584 : vector<8x128xf32>
    %586 = math.exp %585 : vector<8x128xf32>
    %cst_283 = arith.constant 1.000000e+00 : f32
    %587 = vector.broadcast %cst_283 : f32 to vector<8x128xf32>
    %588 = arith.addf %587, %586 : vector<8x128xf32>
    %589 = arith.divf %587, %588 : vector<8x128xf32>
    %590 = vector.extract_strided_slice %583 {offsets = [0, 128], sizes = [8, 128], strides = [1, 1]} : vector<8x512xf32> to vector<8x128xf32>
    %591 = arith.negf %590 : vector<8x128xf32>
    %592 = math.exp %591 : vector<8x128xf32>
    %cst_284 = arith.constant 1.000000e+00 : f32
    %593 = vector.broadcast %cst_284 : f32 to vector<8x128xf32>
    %594 = arith.addf %593, %592 : vector<8x128xf32>
    %595 = arith.divf %593, %594 : vector<8x128xf32>
    %596 = vector.extract_strided_slice %583 {offsets = [0, 256], sizes = [8, 128], strides = [1, 1]} : vector<8x512xf32> to vector<8x128xf32>
    %597 = math.tanh %596 : vector<8x128xf32>
    %598 = vector.extract_strided_slice %583 {offsets = [0, 384], sizes = [8, 128], strides = [1, 1]} : vector<8x512xf32> to vector<8x128xf32>
    %599 = arith.negf %598 : vector<8x128xf32>
    %600 = math.exp %599 : vector<8x128xf32>
    %cst_285 = arith.constant 1.000000e+00 : f32
    %601 = vector.broadcast %cst_285 : f32 to vector<8x128xf32>
    %602 = arith.addf %601, %600 : vector<8x128xf32>
    %603 = arith.divf %601, %602 : vector<8x128xf32>
    %c0_286 = arith.constant 0 : index
    %c0_287 = arith.constant 0 : index
    %604 = vector.load %arg16[%c0_286, %c0_287] : memref<8x128xf32, #tpu.memory_space<vmem>>, vector<8x128xf32>
    %605 = arith.mulf %595, %604 : vector<8x128xf32>
    %606 = arith.mulf %589, %597 : vector<8x128xf32>
    %607 = arith.addf %605, %606 : vector<8x128xf32>
    %608 = math.tanh %607 : vector<8x128xf32>
    %609 = arith.mulf %603, %608 : vector<8x128xf32>
    %c0_288 = arith.constant 0 : index
    %c0_289 = arith.constant 0 : index
    %610 = vector.load %arg16[%c0_288, %c0_289] : memref<8x128xf32, #tpu.memory_space<vmem>>, vector<8x128xf32>
    tpu.vector_store %arg16[%c0_288, %c0_289], %607 {strides = array<i32>} : memref<8x128xf32, #tpu.memory_space<vmem>>, vector<8x128xf32>,
    %c0_290 = arith.constant 0 : index
    %c0_291 = arith.constant 0 : index
    %611 = vector.load %arg15[%c0_290, %c0_291] : memref<8x128xf32, #tpu.memory_space<vmem>>, vector<8x128xf32>
    tpu.vector_store %arg15[%c0_290, %c0_291], %609 {strides = array<i32>} : memref<8x128xf32, #tpu.memory_space<vmem>>, vector<8x128xf32>,
    %c7_i32_292 = arith.constant 7 : i32
    %c8_i32_293 = arith.constant 8 : i32
    %612 = arith.muli %c7_i32_292, %c8_i32_293 : i32
    %613 = tpu.assume_multiple %612, 8 : i32
    %614 = arith.index_cast %613 : i32 to index
    %c0_294 = arith.constant 0 : index
    %615 = vector.load %arg13[%614, %c0_294] : memref<64x512xf32, #tpu.memory_space<vmem>>, vector<8x512xf32>
    %c0_295 = arith.constant 0 : index
    %c0_296 = arith.constant 0 : index
    %616 = vector.load %arg15[%c0_295, %c0_296] : memref<8x128xf32, #tpu.memory_space<vmem>>, vector<8x128xf32>
    %617 = arith.truncf %616 : vector<8x128xf32> to vector<8x128xbf16>
    %c0_297 = arith.constant 0 : index
    %c0_298 = arith.constant 0 : index
    %618 = vector.load %arg7[%c0_297, %c0_298] : memref<128x512xbf16, #tpu.memory_space<vmem>>, vector<128x512xbf16>
    %cst_299 = arith.constant dense<0.000000e+00> : vector<8x512xf32>
    %619 = tpu.matmul %617, %618, %cst_299 {dimension_numbers = #tpu.dot_dimension_numbers<[1], [0], [0], [1], [0, 0, 1, 1], [], []>} : vector<8x128xbf16>, vector<128x512xbf16>, vector<8x512xf32> -> vector<8x512xf32>
    %620 = arith.addf %615, %619 : vector<8x512xf32>
    %621 = vector.extract_strided_slice %620 {offsets = [0, 0], sizes = [8, 128], strides = [1, 1]} : vector<8x512xf32> to vector<8x128xf32>
    %622 = arith.negf %621 : vector<8x128xf32>
    %623 = math.exp %622 : vector<8x128xf32>
    %cst_300 = arith.constant 1.000000e+00 : f32
    %624 = vector.broadcast %cst_300 : f32 to vector<8x128xf32>
    %625 = arith.addf %624, %623 : vector<8x128xf32>
    %626 = arith.divf %624, %625 : vector<8x128xf32>
    %627 = vector.extract_strided_slice %620 {offsets = [0, 128], sizes = [8, 128], strides = [1, 1]} : vector<8x512xf32> to vector<8x128xf32>
    %628 = arith.negf %627 : vector<8x128xf32>
    %629 = math.exp %628 : vector<8x128xf32>
    %cst_301 = arith.constant 1.000000e+00 : f32
    %630 = vector.broadcast %cst_301 : f32 to vector<8x128xf32>
    %631 = arith.addf %630, %629 : vector<8x128xf32>
    %632 = arith.divf %630, %631 : vector<8x128xf32>
    %633 = vector.extract_strided_slice %620 {offsets = [0, 256], sizes = [8, 128], strides = [1, 1]} : vector<8x512xf32> to vector<8x128xf32>
    %634 = math.tanh %633 : vector<8x128xf32>
    %635 = vector.extract_strided_slice %620 {offsets = [0, 384], sizes = [8, 128], strides = [1, 1]} : vector<8x512xf32> to vector<8x128xf32>
    %636 = arith.negf %635 : vector<8x128xf32>
    %637 = math.exp %636 : vector<8x128xf32>
    %cst_302 = arith.constant 1.000000e+00 : f32
    %638 = vector.broadcast %cst_302 : f32 to vector<8x128xf32>
    %639 = arith.addf %638, %637 : vector<8x128xf32>
    %640 = arith.divf %638, %639 : vector<8x128xf32>
    %c0_303 = arith.constant 0 : index
    %c0_304 = arith.constant 0 : index
    %641 = vector.load %arg16[%c0_303, %c0_304] : memref<8x128xf32, #tpu.memory_space<vmem>>, vector<8x128xf32>
    %642 = arith.mulf %632, %641 : vector<8x128xf32>
    %643 = arith.mulf %626, %634 : vector<8x128xf32>
    %644 = arith.addf %642, %643 : vector<8x128xf32>
    %645 = math.tanh %644 : vector<8x128xf32>
    %646 = arith.mulf %640, %645 : vector<8x128xf32>
    %c0_305 = arith.constant 0 : index
    %c0_306 = arith.constant 0 : index
    %647 = vector.load %arg16[%c0_305, %c0_306] : memref<8x128xf32, #tpu.memory_space<vmem>>, vector<8x128xf32>
    tpu.vector_store %arg16[%c0_305, %c0_306], %644 {strides = array<i32>} : memref<8x128xf32, #tpu.memory_space<vmem>>, vector<8x128xf32>,
    %c0_307 = arith.constant 0 : index
    %c0_308 = arith.constant 0 : index
    %648 = vector.load %arg15[%c0_307, %c0_308] : memref<8x128xf32, #tpu.memory_space<vmem>>, vector<8x128xf32>
    tpu.vector_store %arg15[%c0_307, %c0_308], %646 {strides = array<i32>} : memref<8x128xf32, #tpu.memory_space<vmem>>, vector<8x128xf32>,
    %c8_i32_309 = arith.constant 8 : i32
    %c0_310 = arith.constant 0 : index
    %c0_311 = arith.constant 0 : index
    %649 = vector.load %arg15[%c0_310, %c0_311] : memref<8x128xf32, #tpu.memory_space<vmem>>, vector<8x128xf32>
    %c0_312 = arith.constant 0 : index
    %c0_313 = arith.constant 0 : index
    %650 = vector.load %arg9[%c0_312, %c0_313] : memref<1x128xf32, #tpu.memory_space<vmem>>, vector<1x128xf32>
    %651 = vector.broadcast %650 : vector<1x128xf32> to vector<8x128xf32>
    %652 = arith.mulf %649, %651 : vector<8x128xf32>
    %cst_314 = arith.constant dense<0.000000e+00> : vector<8xf32>
    %653 = vector.multi_reduction <add>, %652, %cst_314 [1] : vector<8x128xf32> to vector<8xf32>
    %654 = vector.shape_cast %653 : vector<8xf32> to vector<8x1xf32>
    %c0_315 = arith.constant 0 : index
    %c0_316 = arith.constant 0 : index
    %655 = vector.load %arg11[%c0_315, %c0_316] : memref<1x1xf32, #tpu.memory_space<vmem>>, vector<1x1xf32>
    %656 = vector.broadcast %655 : vector<1x1xf32> to vector<8x1xf32>
    %657 = arith.addf %654, %656 : vector<8x1xf32>
    %c0_317 = arith.constant 0 : index
    %c0_318 = arith.constant 0 : index
    %658 = vector.load %arg2[%c0_317, %c0_318] : memref<8x2xf32, #tpu.memory_space<vmem>>, vector<8x2xf32>
    %c0_319 = arith.constant 0 : index
    %c0_320 = arith.constant 0 : index
    %659 = vector.load %arg10[%c0_319, %c0_320] : memref<1x2xf32, #tpu.memory_space<vmem>>, vector<1x2xf32>
    %660 = vector.broadcast %659 : vector<1x2xf32> to vector<8x2xf32>
    %661 = arith.mulf %658, %660 : vector<8x2xf32>
    %cst_321 = arith.constant dense<0.000000e+00> : vector<8xf32>
    %662 = vector.multi_reduction <add>, %661, %cst_321 [1] : vector<8x2xf32> to vector<8xf32>
    %663 = vector.shape_cast %662 : vector<8xf32> to vector<8x1xf32>
    %664 = arith.addf %657, %663 : vector<8x1xf32>
    %c0_322 = arith.constant 0 : index
    %c0_323 = arith.constant 0 : index
    %665 = vector.load %arg12[%c0_322, %c0_323] : memref<8x1xf32, #tpu.memory_space<vmem>>, vector<8x1xf32>
    tpu.vector_store %arg12[%c0_322, %c0_323], %664 {strides = array<i32>} : memref<8x1xf32, #tpu.memory_space<vmem>>, vector<8x1xf32>,
    return
  }
  func.func @transform_0(%arg0: i32) -> (i32, i32, i32) {
    %c0_i32 = arith.constant 0 : i32
    %c0_i32_0 = arith.constant 0 : i32
    %c0_i32_1 = arith.constant 0 : i32
    return %c0_i32, %arg0, %c0_i32_0 : i32, i32, i32
  }
  func.func @transform_1(%arg0: i32) -> (i32, i32) {
    %c0_i32 = arith.constant 0 : i32
    %c0_i32_0 = arith.constant 0 : i32
    return %arg0, %c0_i32 : i32, i32
  }
  func.func @transform_2(%arg0: i32) -> (i32, i32) {
    %c0_i32 = arith.constant 0 : i32
    %c0_i32_0 = arith.constant 0 : i32
    %c0_i32_1 = arith.constant 0 : i32
    return %c0_i32, %c0_i32_0 : i32, i32
  }
  func.func @transform_3(%arg0: i32) -> (i32, i32) {
    %c0_i32 = arith.constant 0 : i32
    %c0_i32_0 = arith.constant 0 : i32
    %c0_i32_1 = arith.constant 0 : i32
    return %c0_i32, %c0_i32_0 : i32, i32
  }
  func.func @transform_4(%arg0: i32) -> (i32, i32) {
    %c0_i32 = arith.constant 0 : i32
    %c0_i32_0 = arith.constant 0 : i32
    %c0_i32_1 = arith.constant 0 : i32
    return %c0_i32, %c0_i32_0 : i32, i32
  }
  func.func @transform_5(%arg0: i32) -> (i32, i32) {
    %c0_i32 = arith.constant 0 : i32
    %c0_i32_0 = arith.constant 0 : i32
    %c0_i32_1 = arith.constant 0 : i32
    return %c0_i32, %c0_i32_0 : i32, i32
  }
  func.func @transform_6(%arg0: i32) -> (i32, i32) {
    %c0_i32 = arith.constant 0 : i32
    %c0_i32_0 = arith.constant 0 : i32
    %c0_i32_1 = arith.constant 0 : i32
    return %c0_i32, %c0_i32_0 : i32, i32
  }
  func.func @transform_7(%arg0: i32) -> (i32, i32) {
    %c0_i32 = arith.constant 0 : i32
    %c0_i32_0 = arith.constant 0 : i32
    %c0_i32_1 = arith.constant 0 : i32
    return %c0_i32, %c0_i32_0 : i32, i32
  }
  func.func @transform_8(%arg0: i32) -> (i32, i32) {
    %c0_i32 = arith.constant 0 : i32
    %c0_i32_0 = arith.constant 0 : i32
    %c0_i32_1 = arith.constant 0 : i32
    return %c0_i32, %c0_i32_0 : i32, i32
  }
  func.func @transform_9(%arg0: i32) -> (i32, i32) {
    %c0_i32 = arith.constant 0 : i32
    %c0_i32_0 = arith.constant 0 : i32
    %c0_i32_1 = arith.constant 0 : i32
    return %c0_i32, %c0_i32_0 : i32, i32
  }
  func.func @transform_10(%arg0: i32) -> (i32, i32) {
    %c0_i32 = arith.constant 0 : i32
    %c0_i32_0 = arith.constant 0 : i32
    %c0_i32_1 = arith.constant 0 : i32
    return %c0_i32, %c0_i32_0 : i32, i32
  }
  func.func @transform_11(%arg0: i32) -> (i32, i32) {
    %c0_i32 = arith.constant 0 : i32
    %c0_i32_0 = arith.constant 0 : i32
    return %arg0, %c0_i32 : i32, i32
  }
}

</mosaic_0001>

<bundles_post_ra>
// kernel: tpu_custom_call.1
= control target key start
LH: loop header
LB: loop body
LE: loop exit
PB: predicated region body
PF: predicated region fallthrough
CT: control target
= control target key end

     0   :  { %s8356_s0 = inlined_call_operand.vmem [shape: f32[8,8,4], index: 0, kind: input, shape index: {}]   ;;  %s8357_s1 = inlined_call_operand.vmem [shape: f32[8,2], index: 1, kind: input, shape index: {}]   ;;  %s8358_s2 = inlined_call_operand.vmem [shape: bf16[4,512], index: 2, kind: input, shape index: {}]   ;;  %s8359_s3 = inlined_call_operand.hbm [shape: bf16[128,512], index: 3, kind: input, shape index: {}]   ;;  %s8360_s4 = inlined_call_operand.vmem [shape: f32[1,512], index: 4, kind: input, shape index: {}]   ;;  %s8361_s5 = inlined_call_operand.hbm [shape: bf16[128,512], index: 5, kind: input, shape index: {}]   ;;  %s8362_s6 = inlined_call_operand.hbm [shape: bf16[128,512], index: 6, kind: input, shape index: {}]   ;;  %s8363_s7 = inlined_call_operand.vmem [shape: f32[1,512], index: 7, kind: input, shape index: {}]   ;;  %s8364_s8 = inlined_call_operand.vmem [shape: f32[1,128], index: 8, kind: input, shape index: {}]   ;;  %s8365_s9 = inlined_call_operand.vmem [shape: f32[1,2], index: 9, kind: input, shape index: {}]   ;;  %s8366_s10 = inlined_call_operand.<no memory space> [shape: f32[1,1], index: 10, kind: input, shape index: {}]   ;;  %s8367_s11 = inlined_call_operand.vmem [shape: f32[8,1], index: 11, kind: output, shape index: {}]  }
   0x1   :  { %v16_v0 = vstv %s8366_s10 }
   0x2   :  { %17 = vst [vmem:[#allocation6] sm:$0x1] %v16_v0 }
   0x3   :  { %18 = vsyncpa [#allocation8], 0 }
   0x4   :  { %19 = vsyncpa [#allocation10], 0  ;;  %s6990_s19 = smov [#allocation9]   ;;  %s6991_s21 = smov [#allocation7]  }
   0x5   :  { %s45_s20 = sshll.u32 %s6990_s19, 4  ;;  %s31_s22 = sshll.u32 %s6991_s21, 4  ;;  %s46_s20 = int_to_ptr.vmem [resolvable:$true] %s45_s20  ;;  %s7061_s22 = int_to_ptr.vmem [resolvable:$true] %s31_s22 }
   0x6   :  { %s6920_s25 = scalar_lea.hbm %s8361_s5, 4096 }
   0x7   :  { %p6921_p0 = scmp.ne.s32.totalorder %s8361_s5, %s6920_s25  ;;  %p6924_p1 = scmp.lt.u32.totalorder %s6920_s25, %s8361_s5 }
   0x9   :  { %p6926_p2 = pnand %p6924_p1, %p6921_p0 }
   0xb   :  { %6929 = shalt.err (!%p6926_p2)
}
   0xc   :  { %s6930_s29 = scalar_lea.vmem %s46_s20, 4096  ;;  %p6935_p4 = scmp.lt.s32.totalorder %s46_s20, %s46_s20 }
   0xd   :  { %p6931_p3 = scmp.ne.s32.totalorder %s46_s20, %s6930_s29  ;;  %p6936_p5 = scmp.lt.s32.totalorder %s6930_s29, %s6930_s29 }
   0xf   :  { %p6937_p6 = por %p6936_p5, %p6935_p4 }
  0x11   :  { %p6938_p7 = pnand %p6937_p6, %p6931_p3 }
  0x13   :  { %6941 = shalt.err (!%p6938_p7)
}
  0x14   :  { %s6992_s30 = smov 256   ;;  %s6993_s12 = smov 16  }
  0x15   :  { %51 = dma.hbm_to_vmem [thread:$0]  %s8361_s5, 4096, %s46_s20, [#allocation10], %s6992_s30, %s6992_s30, %s6993_s12  }
  0x16   :  { %s6942_s17 = scalar_lea.hbm %s8359_s3, 4096 }
  0x17   :  { %p6943_p8 = scmp.ne.s32.totalorder %s8359_s3, %s6942_s17  ;;  %p6946_p9 = scmp.lt.u32.totalorder %s6942_s17, %s8359_s3 }
  0x19   :  { %p6948_p10 = pnand %p6946_p9, %p6943_p8 }
  0x1b   :  { %6951 = shalt.err (!%p6948_p10)
}
  0x1c   :  { %s6952_s24 = scalar_lea.vmem %s7061_s22, 4096  ;;  %p6957_p12 = scmp.lt.s32.totalorder %s7061_s22, %s7061_s22 }
  0x1d   :  { %p6953_p11 = scmp.ne.s32.totalorder %s7061_s22, %s6952_s24  ;;  %p6958_p13 = scmp.lt.s32.totalorder %s6952_s24, %s6952_s24 }
  0x1f   :  { %p6959_p0 = por %p6958_p13, %p6957_p12 }
  0x21   :  { %p6960_p1 = pnand %p6959_p0, %p6953_p11 }
  0x23   :  { %6963 = shalt.err (!%p6960_p1)
}
  0x24   :  { %37 = dma.hbm_to_vmem [thread:$0]  %s8359_s3, 4096, %s7061_s22, [#allocation8], %s6992_s30, %s6992_s30, %s6993_s12  }
  0x25   :  { %s6994_s25 = smov [#allocation11]   ;;  %s6964_s10 = scalar_lea.hbm %s8362_s6, 4096 }
  0x26   :  { %s57_s26 = sshll.u32 %s6994_s25, 4  ;;  %p6965_p2 = scmp.ne.s32.totalorder %s8362_s6, %s6964_s10  ;;  %s58_s26 = int_to_ptr.vmem [resolvable:$true] %s57_s26 }
  0x27   :  { %p6968_p3 = scmp.lt.u32.totalorder %s6964_s10, %s8362_s6 }
  0x29   :  { %p6970_p4 = pnand %p6968_p3, %p6965_p2 }
  0x2b   :  { %6973 = shalt.err (!%p6970_p4)
}
  0x2c   :  { %s6974_s16 = scalar_lea.vmem %s58_s26, 4096  ;;  %p6979_p6 = scmp.lt.s32.totalorder %s58_s26, %s58_s26 }
  0x2d   :  { %p6975_p5 = scmp.ne.s32.totalorder %s58_s26, %s6974_s16  ;;  %p6980_p7 = scmp.lt.s32.totalorder %s6974_s16, %s6974_s16 }
  0x2f   :  { %p6981_p8 = por %p6980_p7, %p6979_p6 }
  0x31   :  { %p6982_p9 = pnand %p6981_p8, %p6975_p5 }
  0x33   :  { %6985 = shalt.err (!%p6982_p9)
}
  0x34   :  { %63 = dma.hbm_to_vmem [thread:$0]  %s8362_s6, 4096, %s58_s26, [#allocation10], %s6992_s30, %s6992_s30, %s6993_s12  }
  0x35   :  { %6986 = dma.done.wait [#allocation8], 4096  }
  0x36   :  { %6987 = vsyncadd [#allocation8], 4294963200 }
  0x37   :  { %6988 = dma.done.wait [#allocation10], 8192  }
  0x38   :  { %6989 = vsyncadd [#allocation10], 4294959104  ;;  %v99_v1 = vlaneseq  ;;  %v6995_v2 = vmov 1983009808   ;;  %v8374_v4 = vmov 0   ;;  %v96_v8 = vld [vmem:[%s8358_s2] sm:$0xff] }
  0x39   :  { %v122_v3 = vunpack.c.l.s4 %v6995_v2  ;;  %195 = vmatprep.mubr.bf16.mxu0 %v8374_v4  ;;  %268 = vmatprep.mubr.bf16.mxu1 %v8374_v4  ;;  %vm150_vm0 = vcmask 1041408   ;;  %v120_v10 = vcombine.high %v96_v8, %v96_v8  ;;  %v84_v11 = vld [vmem:[%s8356_s0] sm:$0xff]  ;;  %v85_v12 = vld [vmem:[%s8356_s0 + $0x8] sm:$0xff]  ;;  %vm137_vm1 = vcmask 31744   ;;  %v86_v26 = vld [vmem:[%s8356_s0 + $0x10] sm:$0xff] }
  0x3a   :  { %v7115_v5 = vshrl.u32 %v99_v1, 7  ;;  %v7128_v16 = vld [vmem:[#allocation7 + $0x4] ss:$16 sps:$4 sm:$0xff]   ;;  %v92_v19 = vpack.c.bf16 %v85_v12, %v84_v11  ;;  %v7132_v20 = vld [vmem:[#allocation7 + $0xc] ss:$16 sps:$4 sm:$0xff]   ;;  %v8372_v60 = vmov 0.0|0.0  }
  0x3b   :  { %v123_v6 = vunpack.c.0.s8 %v122_v3  ;;  %v7134_v21 = vld [vmem:[#allocation7] ss:$16 sps:$4 sm:$0xff]   ;;  %v7138_v22 = vld [vmem:[#allocation7 + $0x24] ss:$16 sps:$4 sm:$0xff]   ;;  %v7140_v23 = vld [vmem:[#allocation7 + $0x8] ss:$16 sps:$4 sm:$0xff]  }
  0x3c   :  { %8378 = vst [vmem:[#allocation14_spill] sm:$0xff] %v7115_v5  ;;  %v7144_v24 = vld [vmem:[#allocation7 + $0x20] ss:$16 sps:$4 sm:$0xff]   ;;  %v7146_v25 = vld [vmem:[#allocation7 + $0x2c] ss:$16 sps:$4 sm:$0xff]   ;;  %v8371_v61 = vsub.s32 0, %v7115_v5 }
  0x3d   :  { %v126_v7 = vsub.s32 %v123_v6, %v7115_v5  ;;  %v87_v27 = vld [vmem:[%s8356_s0 + $0x18] sm:$0xff]  ;;  %v7168_v32 = vld [vmem:[#allocation7 + $0x40] ss:$16 sps:$4 sm:$0xff]   ;;  %v89_v38 = vld [vmem:[%s8356_s0 + $0x28] sm:$0xff]  ;;  %v8370_v62 = vsub.s32 2, %v7115_v5  ;;  %v8369_v0 = vsub.s32 1, %v7115_v5 }
  0x3e   :  { %v7158_v28 = vld [vmem:[#allocation7 + $0x44] ss:$16 sps:$4 sm:$0xff]   ;;  %v7161_v29 = vld [vmem:[#allocation7 + $0x28] ss:$16 sps:$4 sm:$0xff]   ;;  %v93_v30 = vpack.c.bf16 %v87_v27, %v86_v26  ;;  %v7165_v31 = vld [vmem:[#allocation7 + $0x4c] ss:$16 sps:$4 sm:$0xff]  }
  0x3f   :  { %v127_v9 = vrot.slane %v96_v8, %v126_v7  ;;  %v134_v15 = vrot.slane %v120_v10, %v126_v7  ;;  %v7171_v33 = vld [vmem:[#allocation7 + $0x64] ss:$16 sps:$4 sm:$0xff]   ;;  %v7174_v34 = vld [vmem:[#allocation7 + $0x48] ss:$16 sps:$4 sm:$0xff]   ;;  %v7178_v35 = vld [vmem:[#allocation7 + $0x6c] ss:$16 sps:$4 sm:$0xff]  }
  0x40   :  { %v7181_v36 = vld [vmem:[#allocation7 + $0x60] ss:$16 sps:$4 sm:$0xff]   ;;  %v7192_v39 = vld [vmem:[#allocation7 + $0x84] ss:$16 sps:$4 sm:$0xff]   ;;  %v7195_v40 = vld [vmem:[#allocation7 + $0x68] ss:$16 sps:$4 sm:$0xff]  }
  0x41   :  { %v135_v13 = vcombine.high %v127_v9, %v127_v9  ;;  %v152_v14 = vsel %vm150_vm0, %v127_v9, 0  ;;  %v136_v17 = vcombine.high %v134_v15, %v134_v15  ;;  %v158_v18 = vsel %vm150_vm0, %v134_v15, 0  ;;  %v88_v37 = vld [vmem:[%s8356_s0 + $0x20] sm:$0xff]  ;;  %v7204_v44 = vld [vmem:[#allocation7 + $0x88] ss:$16 sps:$4 sm:$0xff]   ;;  %v90_v48 = vld [vmem:[%s8356_s0 + $0x30] sm:$0xff] }
  0x42   :  { %v94_v41 = vpack.c.bf16 %v89_v38, %v88_v37  ;;  %v7199_v42 = vld [vmem:[#allocation7 + $0x80] ss:$16 sps:$4 sm:$0xff]   ;;  %v7201_v43 = vld [vmem:[#allocation7 + $0x8c] ss:$16 sps:$4 sm:$0xff]   ;;  %v7206_v45 = vld [vmem:[#allocation7 + $0xa4] ss:$16 sps:$4 sm:$0xff]  }
  0x43   :  { %5810 = vmatprep.subr.msk.bf16.mxu0 %vm150_vm0, %v135_v13  ;;  %5815 = vmatprep.subr.msk.bf16.mxu1 %vm150_vm0, %v136_v17  ;;  %v7209_v46 = vld [vmem:[#allocation7 + $0xac] ss:$16 sps:$4 sm:$0xff]   ;;  %v7212_v47 = vld [vmem:[#allocation7 + $0xa0] ss:$16 sps:$4 sm:$0xff]   ;;  %v7222_v50 = vld [vmem:[#allocation7 + $0xc4] ss:$16 sps:$4 sm:$0xff]  }
  0x44   :  { %164 = vmatpush1.bf16.msra.mxu0 %v152_v14  ;;  %237 = vmatpush1.bf16.msra.mxu1 %v158_v18  ;;  %v91_v49 = vld [vmem:[%s8356_s0 + $0x38] sm:$0xff]  ;;  %v7233_v53 = vld [vmem:[#allocation7 + $0xc0] ss:$16 sps:$4 sm:$0xff]   ;;  %v8368_v1 = vsub.s32 3, %v7115_v5  ;;  %vm5790_vm2 = vcmask 15360   ;;  %vm5795_vm3 = vcmask 7168  }
  0x45   :  { %542 = vmatprep.subr.bf16.mxu0 %v7128_v16  ;;  %583 = vmatprep.subr.bf16.mxu1 %v7132_v20  ;;  %v7225_v51 = vld [vmem:[#allocation7 + $0xa8] ss:$16 sps:$4 sm:$0xff]   ;;  %v7230_v52 = vld [vmem:[#allocation7 + $0xcc] ss:$16 sps:$4 sm:$0xff]   ;;  %v95_v54 = vpack.c.bf16 %v91_v49, %v90_v48  ;;  %v7237_v55 = vld [vmem:[#allocation7 + $0xe4] ss:$16 sps:$4 sm:$0xff]  }
  0x46   :  { %v7240_v56 = vld [vmem:[#allocation7 + $0xc8] ss:$16 sps:$4 sm:$0xff]   ;;  %v7243_v57 = vld [vmem:[#allocation7 + $0xec] ss:$16 sps:$4 sm:$0xff]   ;;  %v7246_v58 = vld [vmem:[#allocation7 + $0xe0] ss:$16 sps:$4 sm:$0xff]  }
  0x47   :  { %5811 = vmatmul.mubr.msk.bf16.vlgmr.msra.gmra.mrb[0].mxu0 %vm137_vm1, %v92_v19  ;;  %5816 = vmatmul.mubr.msk.bf16.vlgmr.msra.gmra.mrb[0].mxu1 %vm137_vm1, %v92_v19  ;;  %v7251_v59 = vld [vmem:[#allocation7 + $0xe8] ss:$16 sps:$4 sm:$0xff]   ;;  %v97_v63 = vld [vmem:[%s8360_s4] sm:$0xf] }
  0x48   :  { %543 = vmatpush1.bf16.msra.mxu0 %v7134_v21  ;;  %205 = vmatprep.mubr.bf16.mxu0 %v8374_v4  ;;  %v7310_v3 = vrot.slane %v97_v63, %v8371_v61  ;;  %v7316_v7 = vrot.slane %v97_v63, %v8370_v62  ;;  %v106_v8 = vrot.slane %v97_v63, %v8369_v0 }
  0x49   :  { %544 = vmatprep.subr.bf16.mxu0 %v7138_v22  ;;  %584 = vmatpush1.bf16.msra.mxu1 %v7140_v23  ;;  %v7322_v11 = vrot.slane %v97_v63, %v8368_v1 }
  0x4a   :  { %278 = vmatprep.mubr.bf16.mxu1 %v8374_v4  ;;  %585 = vmatprep.subr.bf16.mxu1 %v7146_v25 }
  0x4c   :  { %545 = vmatpush1.bf16.msra.mxu0 %v7144_v24 }
  0x4d   :  { %546 = vmatprep.subr.bf16.mxu0 %v7158_v28  ;;  %586 = vmatpush1.bf16.msra.mxu1 %v7161_v29 }
  0x4e   :  { %587 = vmatprep.subr.bf16.mxu1 %v7165_v31 }
  0x4f   :  { %5812 = vmatmul.mubr.msk.bf16.gmra.mrb[4].mxu0 %vm137_vm1, %v93_v30  ;;  %5817 = vmatmul.mubr.msk.bf16.gmra.mrb[4].mxu1 %vm137_vm1, %v93_v30 }
  0x50   :  { %547 = vmatpush1.bf16.msra.mxu0 %v7168_v32  ;;  %215 = vmatprep.mubr.bf16.mxu0 %v8374_v4 }
  0x51   :  { %548 = vmatprep.subr.bf16.mxu0 %v7171_v33  ;;  %588 = vmatpush1.bf16.msra.mxu1 %v7174_v34 }
  0x52   :  { %288 = vmatprep.mubr.bf16.mxu1 %v8374_v4  ;;  %589 = vmatprep.subr.bf16.mxu1 %v7178_v35 }
  0x54   :  { %549 = vmatpush1.bf16.msra.mxu0 %v7181_v36 }
  0x55   :  { %550 = vmatprep.subr.bf16.mxu0 %v7192_v39  ;;  %590 = vmatpush1.bf16.msra.mxu1 %v7195_v40 }
  0x56   :  { %591 = vmatprep.subr.bf16.mxu1 %v7201_v43 }
  0x57   :  { %5813 = vmatmul.mubr.msk.bf16.gmra.mrb[8].mxu0 %vm137_vm1, %v94_v41  ;;  %5818 = vmatmul.mubr.msk.bf16.gmra.mrb[8].mxu1 %vm137_vm1, %v94_v41 }
  0x58   :  { %551 = vmatpush1.bf16.msra.mxu0 %v7199_v42  ;;  %225 = vmatprep.mubr.bf16.mxu0 %v8374_v4 }
  0x59   :  { %552 = vmatprep.subr.bf16.mxu0 %v7206_v45  ;;  %592 = vmatpush1.bf16.msra.mxu1 %v7204_v44 }
  0x5a   :  { %298 = vmatprep.mubr.bf16.mxu1 %v8374_v4  ;;  %593 = vmatprep.subr.bf16.mxu1 %v7209_v46 }
  0x5c   :  { %553 = vmatpush1.bf16.msra.mxu0 %v7212_v47 }
  0x5d   :  { %554 = vmatprep.subr.bf16.mxu0 %v7222_v50  ;;  %594 = vmatpush1.bf16.msra.mxu1 %v7225_v51 }
  0x5e   :  { %595 = vmatprep.subr.bf16.mxu1 %v7230_v52 }
  0x5f   :  { %5814 = vmatmul.mubr.msk.bf16.gmra.mrb[12].mxu0 %vm137_vm1, %v95_v54  ;;  %5819 = vmatmul.mubr.msk.bf16.gmra.mrb[12].mxu1 %vm137_vm1, %v95_v54 }
  0x60   :  { %555 = vmatpush1.bf16.msra.mxu0 %v7233_v53  ;;  %574 = vmatprep.mubr.bf16.mxu0 %v8374_v4 }
  0x61   :  { %556 = vmatprep.subr.bf16.mxu0 %v7237_v55  ;;  %596 = vmatpush1.bf16.msra.mxu1 %v7240_v56 }
  0x62   :  { %615 = vmatprep.mubr.bf16.mxu1 %v8374_v4  ;;  %597 = vmatprep.subr.bf16.mxu1 %v7243_v57 }
  0x64   :  { %557 = vmatpush1.bf16.msra.mxu0 %v7246_v58 }
  0x65   :  { %857 = vmatprep.subr.bf16.mxu0 %v7128_v16  ;;  %598 = vmatpush1.bf16.msra.mxu1 %v7251_v59 }
  0x66   :  { %898 = vmatprep.subr.bf16.mxu1 %v7132_v20 }
  0x67   :  { %575 = vmatmul.mubr.bf16.vlgmr.msra.gmra.mrb[16].mxu0 %v8372_v60 }
  0x68   :  { %858 = vmatpush1.bf16.msra.mxu0 %v7134_v21  ;;  %889 = vmatprep.mubr.bf16.mxu0 %v8374_v4 }
  0x69   :  { %616 = vmatmul.mubr.bf16.vlgmr.msra.gmra.mrb[16].mxu1 %v8372_v60  ;;  %859 = vmatprep.subr.bf16.mxu0 %v7138_v22 }
  0x6a   :  { %899 = vmatpush1.bf16.msra.mxu1 %v7140_v23  ;;  %930 = vmatprep.mubr.bf16.mxu1 %v8374_v4 }
  0x6b   :  { %900 = vmatprep.subr.bf16.mxu1 %v7146_v25 }
  0x6c   :  { %860 = vmatpush1.bf16.msra.mxu0 %v7144_v24 }
  0x6d   :  { %861 = vmatprep.subr.bf16.mxu0 %v7158_v28 }
  0x6e   :  { %901 = vmatpush1.bf16.msra.mxu1 %v7161_v29 }
  0x6f   :  { %902 = vmatprep.subr.bf16.mxu1 %v7165_v31 }
  0x70   :  { %862 = vmatpush1.bf16.msra.mxu0 %v7168_v32 }
  0x71   :  { %863 = vmatprep.subr.bf16.mxu0 %v7171_v33 }
  0x72   :  { %903 = vmatpush1.bf16.msra.mxu1 %v7174_v34 }
  0x73   :  { %904 = vmatprep.subr.bf16.mxu1 %v7178_v35 }
  0x74   :  { %864 = vmatpush1.bf16.msra.mxu0 %v7181_v36 }
  0x75   :  { %865 = vmatprep.subr.bf16.mxu0 %v7192_v39 }
  0x76   :  { %905 = vmatpush1.bf16.msra.mxu1 %v7195_v40 }
  0x77   :  { %906 = vmatprep.subr.bf16.mxu1 %v7201_v43 }
  0x78   :  { %866 = vmatpush1.bf16.msra.mxu0 %v7199_v42 }
  0x79   :  { %867 = vmatprep.subr.bf16.mxu0 %v7206_v45 }
  0x7a   :  { %907 = vmatpush1.bf16.msra.mxu1 %v7204_v44 }
  0x7b   :  { %908 = vmatprep.subr.bf16.mxu1 %v7209_v46 }
  0x7c   :  { %868 = vmatpush1.bf16.msra.mxu0 %v7212_v47 }
  0x7d   :  { %869 = vmatprep.subr.bf16.mxu0 %v7222_v50 }
  0x7e   :  { %909 = vmatpush1.bf16.msra.mxu1 %v7225_v51 }
  0x7f   :  { %910 = vmatprep.subr.bf16.mxu1 %v7230_v52 }
  0x80   :  { %870 = vmatpush1.bf16.msra.mxu0 %v7233_v53 }
  0x81   :  { %871 = vmatprep.subr.bf16.mxu0 %v7237_v55 }
  0x82   :  { %911 = vmatpush1.bf16.msra.mxu1 %v7240_v56 }
  0x83   :  { %912 = vmatprep.subr.bf16.mxu1 %v7243_v57 }
  0x84   :  { %872 = vmatpush1.bf16.msra.mxu0 %v7246_v58 }
  0x85   :  { %1173 = vmatprep.subr.bf16.mxu0 %v7128_v16 }
  0x86   :  { %913 = vmatpush1.bf16.msra.mxu1 %v7251_v59 }
  0x87   :  { %1214 = vmatprep.subr.bf16.mxu1 %v7132_v20 }
 0x11a   :  { %v7306_v2 = vpop.f32.mrb[0].mxu0  ;;  %v270_v10 = vpop.f32.mrb[0].mxu1 }
 0x11b   :  { %v7312_v6 = vpop.f32.mrb[1].mxu0  ;;  %v272_v14 = vpop.f32.mrb[1].mxu1 }
 0x11c   :  { %v201_v9 = vpop.f32.mrb[2].mxu0  ;;  %v274_v17 = vpop.f32.mrb[2].mxu1 }
 0x11d   :  { %v7325_v12 = vadd.f32 %v201_v9, %v7310_v3  ;;  %v203_v13 = vpop.f32.mrb[3].mxu0  ;;  %v7330_v18 = vadd.f32 %v274_v17, %v7316_v7  ;;  %v276_v19 = vpop.f32.mrb[3].mxu1 }
 0x11e   :  { %v7327_v15 = vadd.f32 %v203_v13, %v106_v8  ;;  %v7333_v26 = vadd.f32 %v276_v19, %v7322_v11 }
 0x122   :  { %v207_v27 = vpop.f32.mrb[4].mxu0  ;;  %v280_v48 = vpop.f32.mrb[4].mxu1 }
 0x123   :  { %v7336_v30 = vadd.f32 %v207_v27, %v7310_v3  ;;  %v209_v37 = vpop.f32.mrb[5].mxu0  ;;  %v7344_v63 = vadd.f32 %v280_v48, %v7316_v7  ;;  %v282_v9 = vpop.f32.mrb[5].mxu1 }
 0x124   :  { %v7338_v38 = vadd.f32 %v209_v37, %v106_v8  ;;  %v211_v41 = vpop.f32.mrb[6].mxu0  ;;  %v7349_v17 = vadd.f32 %v282_v9, %v7322_v11  ;;  %v284_v19 = vpop.f32.mrb[6].mxu1 }
 0x125   :  { %v7341_v49 = vadd.f32 %v211_v41, %v7310_v3  ;;  %v213_v54 = vpop.f32.mrb[7].mxu0  ;;  %v7352_v27 = vadd.f32 %v284_v19, %v7316_v7  ;;  %v286_v37 = vpop.f32.mrb[7].mxu1 }
 0x126   :  { %v7346_v13 = vadd.f32 %v213_v54, %v106_v8  ;;  %8381 = vst [vmem:[#allocation17_spill] sm:$0xff] %v7349_v17  ;;  %v7355_v1 = vadd.f32 %v286_v37, %v7322_v11 }
 0x127   :  { %8379 = vst [vmem:[#allocation15_spill] sm:$0xff] %v7341_v49  ;;  %8382 = vst [vmem:[#allocation18_spill] sm:$0xff] %v7352_v27 }
 0x128   :  { %8380 = vst [vmem:[#allocation16_spill] sm:$0xff] %v7346_v13  ;;  %8383 = vst [vmem:[#allocation19_spill] sm:$0xff] %v7355_v1 }
 0x12a   :  { %v217_v41 = vpop.f32.mrb[8].mxu0  ;;  %v290_v61 = vpop.f32.mrb[8].mxu1 }
 0x12b   :  { %v7358_v0 = vadd.f32 %v217_v41, %v7310_v3  ;;  %v219_v48 = vpop.f32.mrb[9].mxu0  ;;  %v7366_v19 = vadd.f32 %v290_v61, %v7316_v7  ;;  %v292_v4 = vpop.f32.mrb[9].mxu1 }
 0x12c   :  { %v7360_v62 = vadd.f32 %v219_v48, %v106_v8  ;;  %v221_v54 = vpop.f32.mrb[10].mxu0  ;;  %v7371_v37 = vadd.f32 %v292_v4, %v7322_v11  ;;  %v294_v41 = vpop.f32.mrb[10].mxu1 }
 0x12d   :  { %8384 = vst [vmem:[#allocation20_spill] sm:$0xff] %v7358_v0  ;;  %v7363_v9 = vadd.f32 %v221_v54, %v7310_v3  ;;  %v223_v60 = vpop.f32.mrb[11].mxu0  ;;  %8387 = vst [vmem:[#allocation23_spill] sm:$0xff] %v7366_v19  ;;  %v7374_v0 = vadd.f32 %v294_v41, %v7316_v7  ;;  %v296_v48 = vpop.f32.mrb[11].mxu1 }
 0x12e   :  { %8385 = vst [vmem:[#allocation21_spill] sm:$0xff] %v7360_v62  ;;  %v7368_v5 = vadd.f32 %v223_v60, %v106_v8  ;;  %8389 = vst [vmem:[#allocation25_spill] sm:$0xff] %v7371_v37  ;;  %v7377_v62 = vadd.f32 %v296_v48, %v7322_v11 }
 0x12f   :  { %8386 = vst [vmem:[#allocation22_spill] sm:$0xff] %v7363_v9  ;;  %8390 = vst [vmem:[#allocation26_spill] sm:$0xff] %v7374_v0 }
 0x130   :  { %8388 = vst [vmem:[#allocation24_spill] sm:$0xff] %v7368_v5  ;;  %8391 = vst [vmem:[#allocation27_spill] sm:$0xff] %v7377_v62 }
 0x132   :  { %v227_v54 = vpop.f32.mrb[12].mxu0  ;;  %v300_v5 = vpop.f32.mrb[12].mxu1 }
 0x133   :  { %v7380_v9 = vadd.f32 %v227_v54, %v7310_v3  ;;  %v229_v61 = vpop.f32.mrb[13].mxu0  ;;  %v7388_v41 = vadd.f32 %v300_v5, %v7316_v7  ;;  %v302_v0 = vpop.f32.mrb[13].mxu1  ;;  %v200_v5 = vadd.f32 %v7312_v6, %v106_v8 }
 0x134   :  { %v7382_v19 = vadd.f32 %v229_v61, %v106_v8  ;;  %v231_v60 = vpop.f32.mrb[14].mxu0  ;;  %v7393_v48 = vadd.f32 %v302_v0, %v7322_v11  ;;  %v304_v54 = vpop.f32.mrb[14].mxu1  ;;  %v273_v0 = vadd.f32 %v272_v14, %v7322_v11 }
 0x135   :  { %8392 = vst [vmem:[#allocation28_spill] sm:$0xff] %v7380_v9  ;;  %v7385_v4 = vadd.f32 %v231_v60, %v7310_v3  ;;  %v233_v37 = vpop.f32.mrb[15].mxu0  ;;  %8395 = vst [vmem:[#allocation31_spill] sm:$0xff] %v7388_v41  ;;  %v7396_v9 = vadd.f32 %v304_v54, %v7316_v7  ;;  %v306_v61 = vpop.f32.mrb[15].mxu1  ;;  %v198_v60 = vadd.f32 %v7306_v2, %v7310_v3 }
 0x136   :  { %8393 = vst [vmem:[#allocation29_spill] sm:$0xff] %v7382_v19  ;;  %v7390_v1 = vadd.f32 %v233_v37, %v106_v8  ;;  %8397 = vst [vmem:[#allocation33_spill] sm:$0xff] %v7393_v48  ;;  %v7399_v19 = vadd.f32 %v306_v61, %v7322_v11  ;;  %v271_v37 = vadd.f32 %v270_v10, %v7316_v7 }
 0x137   :  { %8394 = vst [vmem:[#allocation30_spill] sm:$0xff] %v7385_v4  ;;  %8398 = vst [vmem:[#allocation34_spill] sm:$0xff] %v7396_v9 }
 0x138   :  { %8396 = vst [vmem:[#allocation32_spill] sm:$0xff] %v7390_v1  ;;  %8399 = vst [vmem:[#allocation35_spill] sm:$0xff] %v7399_v19 }
 0x13a   :  { %v576_v4 = vpop.f32.mrb[16].mxu0 }
 0x13b   :  { %v624_v1 = vadd.f32 %v576_v4, %v198_v60  ;;  %v578_v41 = vpop.f32.mrb[17].mxu0 }
 0x13c   :  { %v625_v48 = vadd.f32 %v578_v41, %v200_v5  ;;  %v580_v62 = vpop.f32.mrb[18].mxu0  ;;  %v617_v54 = vpop.f32.mrb[16].mxu1 }
 0x13d   :  { %v5852_v9 = vmul.f32 -1.442695, %v624_v1  ;;  %v626_v13 = vadd.f32 %v617_v54, %v271_v37  ;;  %v581_v27 = vpop.f32.mrb[19].mxu0  ;;  %v619_v61 = vpop.f32.mrb[17].mxu1 }
 0x13e   :  { %v5853_v19 = vmul.f32 -1.442695, %v625_v48  ;;  %v627_v49 = vadd.f32 %v619_v61, %v273_v0  ;;  %v621_v17 = vpop.f32.mrb[18].mxu1  ;;  %v8400_v48 = vmov 0  }
 0x13f   :  { %6664 = vpow2.f32 %v5852_v9  ;;  %v622_v2 = vpop.f32.mrb[19].mxu1 }
 0x140   :  { %6666 = vpow2.f32 %v5853_v19  ;;  %v5854_v3 = vmul.f32 -1.442695, %v627_v49 }
 0x142   :  { %6668 = vpow2.f32 %v5854_v3 }
 0x143   :  { %6670 = vtanh.f32 %v626_v13 }
 0x149   :  { %v6665_v6 = vpop.eup %6664 }
 0x14a   :  { %v6667_v7 = vpop.eup %6666  ;;  %v631_v8 = vadd.f32 1.0, %v6665_v6 }
 0x14b   :  { %v637_v10 = vadd.f32 1.0, %v6667_v7 }
 0x14c   :  { %6672 = vrcp.f32 %v631_v8  ;;  %v6669_v62 = vpop.eup %6668 }
 0x14d   :  { %6674 = vrcp.f32 %v637_v10  ;;  %v6671_v1 = vpop.eup %6670  ;;  %v644_v4 = vadd.f32 1.0, %v6669_v62 }
 0x14f   :  { %6676 = vrcp.f32 %v644_v4 }
 0x156   :  { %v6673_v11 = vpop.eup %6672 }
 0x157   :  { %v6675_v14 = vpop.eup %6674  ;;  %v649_v27 = vmul.f32 %v6673_v11, %v6671_v1 }
 0x158   :  { %v648_v41 = vmul.f32 0.0, %v6675_v14 }
 0x159   :  { %v6677_v49 = vpop.eup %6676 }
 0x15a   :  { %v7406_v17 = vadd.f32 %v649_v27, %v648_v41 }
 0x15c   :  { %6678 = vtanh.f32 %v7406_v17 }
 0x166   :  { %v6679_v9 = vpop.eup %6678 }
 0x167   :  { %v7409_v19 = vmul.f32 %v6679_v9, %v6677_v49 }
 0x169   :  { %v664_v13 = vpack.c.bf16 %v7409_v19, %v7409_v19 }
 0x16b   :  { %890 = vmatmul.mubr.bf16.vlgmr.msra.gmra.mrb[20].mxu0 %v664_v13  ;;  %931 = vmatmul.mubr.bf16.vlgmr.msra.gmra.mrb[20].mxu1 %v664_v13 }
 0x16c   :  { %1174 = vmatpush1.bf16.msra.mxu0 %v7134_v21  ;;  %1215 = vmatpush1.bf16.msra.mxu1 %v7140_v23 }
 0x16d   :  { %1175 = vmatprep.subr.bf16.mxu0 %v7138_v22  ;;  %1216 = vmatprep.subr.bf16.mxu1 %v7146_v25 }
 0x16e   :  { %1205 = vmatprep.mubr.bf16.mxu0 %v8400_v48  ;;  %1246 = vmatprep.mubr.bf16.mxu1 %v8400_v48 }
 0x170   :  { %1176 = vmatpush1.bf16.msra.mxu0 %v7144_v24  ;;  %1217 = vmatpush1.bf16.msra.mxu1 %v7161_v29 }
 0x171   :  { %1177 = vmatprep.subr.bf16.mxu0 %v7158_v28  ;;  %1218 = vmatprep.subr.bf16.mxu1 %v7165_v31 }
 0x174   :  { %1178 = vmatpush1.bf16.msra.mxu0 %v7168_v32  ;;  %1219 = vmatpush1.bf16.msra.mxu1 %v7174_v34 }
 0x175   :  { %1179 = vmatprep.subr.bf16.mxu0 %v7171_v33  ;;  %1220 = vmatprep.subr.bf16.mxu1 %v7178_v35 }
 0x178   :  { %1180 = vmatpush1.bf16.msra.mxu0 %v7181_v36  ;;  %1221 = vmatpush1.bf16.msra.mxu1 %v7195_v40 }
 0x179   :  { %1181 = vmatprep.subr.bf16.mxu0 %v7192_v39  ;;  %1222 = vmatprep.subr.bf16.mxu1 %v7201_v43 }
 0x17c   :  { %1182 = vmatpush1.bf16.msra.mxu0 %v7199_v42  ;;  %1223 = vmatpush1.bf16.msra.mxu1 %v7204_v44 }
 0x17d   :  { %1183 = vmatprep.subr.bf16.mxu0 %v7206_v45  ;;  %1224 = vmatprep.subr.bf16.mxu1 %v7209_v46 }
 0x180   :  { %1184 = vmatpush1.bf16.msra.mxu0 %v7212_v47  ;;  %1225 = vmatpush1.bf16.msra.mxu1 %v7225_v51 }
 0x181   :  { %1185 = vmatprep.subr.bf16.mxu0 %v7222_v50  ;;  %1226 = vmatprep.subr.bf16.mxu1 %v7230_v52 }
 0x184   :  { %1186 = vmatpush1.bf16.msra.mxu0 %v7233_v53  ;;  %1227 = vmatpush1.bf16.msra.mxu1 %v7240_v56 }
 0x185   :  { %1187 = vmatprep.subr.bf16.mxu0 %v7237_v55  ;;  %1228 = vmatprep.subr.bf16.mxu1 %v7243_v57 }
 0x188   :  { %1188 = vmatpush1.bf16.msra.mxu0 %v7246_v58  ;;  %1229 = vmatpush1.bf16.msra.mxu1 %v7251_v59 }
 0x189   :  { %1489 = vmatprep.subr.bf16.mxu0 %v7128_v16  ;;  %1530 = vmatprep.subr.bf16.mxu1 %v7132_v20 }
 0x23e   :  { %v891_v60 = vpop.f32.mrb[20].mxu0  ;;  %v932_v5 = vpop.f32.mrb[20].mxu1 }
 0x23f   :  { %v939_v37 = vadd.f32 %v891_v60, %v7325_v12  ;;  %v941_v0 = vadd.f32 %v932_v5, %v7330_v18  ;;  %v893_v54 = vpop.f32.mrb[21].mxu0  ;;  %v934_v61 = vpop.f32.mrb[21].mxu1 }
 0x240   :  { %v940_v2 = vadd.f32 %v893_v54, %v7327_v15  ;;  %v942_v3 = vadd.f32 %v934_v61, %v7333_v26  ;;  %v895_v6 = vpop.f32.mrb[22].mxu0  ;;  %v936_v7 = vpop.f32.mrb[22].mxu1  ;;  %v7511_v54 = vld [vmem:[#allocation7 + $0x8] ss:$16 sps:$4 sm:$0xff]   ;;  %v7517_v61 = vld [vmem:[#allocation7 + $0x24] ss:$16 sps:$4 sm:$0xff]  }
 0x241   :  { %v5887_v8 = vmul.f32 -1.442695, %v939_v37  ;;  %v896_v10 = vpop.f32.mrb[23].mxu0  ;;  %v937_v62 = vpop.f32.mrb[23].mxu1  ;;  %v7523_v6 = vld [vmem:[#allocation7 + $0x28] ss:$16 sps:$4 sm:$0xff]  }
 0x242   :  { %v5888_v16 = vmul.f32 -1.442695, %v940_v2  ;;  %v5889_v20 = vmul.f32 -1.442695, %v942_v3  ;;  %v7519_v2 = vld [vmem:[#allocation7 + $0x2c] ss:$16 sps:$4 sm:$0xff]  }
 0x243   :  { %6680 = vpow2.f32 %v5887_v8  ;;  %v7521_v3 = vld [vmem:[#allocation7 + $0x20] ss:$16 sps:$4 sm:$0xff]   ;;  %v7529_v7 = vld [vmem:[#allocation7 + $0x44] ss:$16 sps:$4 sm:$0xff]   ;;  %v7531_v8 = vld [vmem:[#allocation7 + $0x4c] ss:$16 sps:$4 sm:$0xff]  }
 0x244   :  { %6682 = vpow2.f32 %v5888_v16  ;;  %v7533_v10 = vld [vmem:[#allocation7 + $0x40] ss:$16 sps:$4 sm:$0xff]   ;;  %v7535_v62 = vld [vmem:[#allocation7 + $0x48] ss:$16 sps:$4 sm:$0xff]   ;;  %v7541_v16 = vld [vmem:[#allocation7 + $0x64] ss:$16 sps:$4 sm:$0xff]  }
 0x245   :  { %6684 = vpow2.f32 %v5889_v20  ;;  %v7543_v20 = vld [vmem:[#allocation7 + $0x6c] ss:$16 sps:$4 sm:$0xff]  }
 0x246   :  { %6686 = vtanh.f32 %v941_v0  ;;  %v7509_v0 = vld [vmem:[#allocation7] ss:$16 sps:$4 sm:$0xff]  }
 0x24d   :  { %v6681_v1 = vpop.eup %6680 }
 0x24e   :  { %v6683_v11 = vpop.eup %6682  ;;  %v946_v12 = vadd.f32 1.0, %v6681_v1  ;;  %v7545_v1 = vld [vmem:[#allocation7 + $0x60] ss:$16 sps:$4 sm:$0xff]  }
 0x24f   :  { %v952_v18 = vadd.f32 1.0, %v6683_v11  ;;  %v6685_v15 = vpop.eup %6684  ;;  %v7547_v11 = vld [vmem:[#allocation7 + $0x68] ss:$16 sps:$4 sm:$0xff]  }
 0x250   :  { %6688 = vrcp.f32 %v946_v12  ;;  %v6687_v14 = vpop.eup %6686  ;;  %v959_v41 = vadd.f32 1.0, %v6685_v15  ;;  %v7553_v12 = vld [vmem:[#allocation7 + $0x84] ss:$16 sps:$4 sm:$0xff]   ;;  %v7557_v15 = vld [vmem:[#allocation7 + $0x80] ss:$16 sps:$4 sm:$0xff]  }
 0x251   :  { %6690 = vrcp.f32 %v952_v18  ;;  %v7555_v18 = vld [vmem:[#allocation7 + $0x8c] ss:$16 sps:$4 sm:$0xff]  }
 0x252   :  { %6692 = vrcp.f32 %v959_v41  ;;  %v7571_v41 = vld [vmem:[#allocation7 + $0xa8] ss:$16 sps:$4 sm:$0xff]  }
 0x25a   :  { %v6689_v26 = vpop.eup %6688 }
 0x25b   :  { %v6691_v27 = vpop.eup %6690  ;;  %v964_v4 = vmul.f32 %v6689_v26, %v6687_v14  ;;  %v7559_v14 = vld [vmem:[#allocation7 + $0x88] ss:$16 sps:$4 sm:$0xff]   ;;  %v7563_v26 = vld [vmem:[#allocation7 + $0xa4] ss:$16 sps:$4 sm:$0xff]  }
 0x25c   :  { %v963_v49 = vmul.f32 %v6691_v27, %v7406_v17  ;;  %v6693_v13 = vpop.eup %6692  ;;  %v7507_v17 = vld [vmem:[#allocation7 + $0xc] ss:$16 sps:$4 sm:$0xff]  }
 0x25d   :  { %v7565_v27 = vld [vmem:[#allocation7 + $0xac] ss:$16 sps:$4 sm:$0xff]  }
 0x25e   :  { %v7452_v9 = vadd.f32 %v964_v4, %v963_v49  ;;  %v7569_v4 = vld [vmem:[#allocation7 + $0xa0] ss:$16 sps:$4 sm:$0xff]   ;;  %v7575_v49 = vld [vmem:[#allocation7 + $0xc4] ss:$16 sps:$4 sm:$0xff]  }
 0x260   :  { %6694 = vtanh.f32 %v7452_v9 }
 0x26a   :  { %v6695_v60 = vpop.eup %6694 }
 0x26b   :  { %v7455_v5 = vmul.f32 %v6695_v60, %v6693_v13  ;;  %v7581_v13 = vld [vmem:[#allocation7 + $0xc0] ss:$16 sps:$4 sm:$0xff]   ;;  %v7583_v60 = vld [vmem:[#allocation7 + $0xc8] ss:$16 sps:$4 sm:$0xff]  }
 0x26d   :  { %v980_v37 = vpack.c.bf16 %v7455_v5, %v7455_v5 }
 0x26f   :  { %1206 = vmatmul.mubr.bf16.vlgmr.msra.gmra.mrb[24].mxu0 %v980_v37  ;;  %1247 = vmatmul.mubr.bf16.vlgmr.msra.gmra.mrb[24].mxu1 %v980_v37  ;;  %v7587_v37 = vld [vmem:[#allocation7 + $0xe4] ss:$16 sps:$4 sm:$0xff]  }
 0x270   :  { %1490 = vmatpush1.bf16.msra.mxu0 %v7134_v21  ;;  %1531 = vmatpush1.bf16.msra.mxu1 %v7140_v23 }
 0x271   :  { %1491 = vmatprep.subr.bf16.mxu0 %v7138_v22  ;;  %1532 = vmatprep.subr.bf16.mxu1 %v7146_v25 }
 0x272   :  { %1521 = vmatprep.mubr.bf16.mxu0 %v8400_v48  ;;  %1562 = vmatprep.mubr.bf16.mxu1 %v8400_v48 }
 0x274   :  { %1492 = vmatpush1.bf16.msra.mxu0 %v7144_v24  ;;  %1533 = vmatpush1.bf16.msra.mxu1 %v7161_v29 }
 0x275   :  { %1493 = vmatprep.subr.bf16.mxu0 %v7158_v28  ;;  %1534 = vmatprep.subr.bf16.mxu1 %v7165_v31  ;;  %v8401_v31 = vld [vmem:[#allocation17_spill] sm:$0xff] }
 0x278   :  { %1494 = vmatpush1.bf16.msra.mxu0 %v7168_v32  ;;  %1535 = vmatpush1.bf16.msra.mxu1 %v7174_v34 }
 0x279   :  { %1495 = vmatprep.subr.bf16.mxu0 %v7171_v33  ;;  %1536 = vmatprep.subr.bf16.mxu1 %v7178_v35 }
 0x27c   :  { %1496 = vmatpush1.bf16.msra.mxu0 %v7181_v36  ;;  %1537 = vmatpush1.bf16.msra.mxu1 %v7195_v40 }
 0x27d   :  { %1497 = vmatprep.subr.bf16.mxu0 %v7192_v39  ;;  %1538 = vmatprep.subr.bf16.mxu1 %v7201_v43 }
 0x280   :  { %1498 = vmatpush1.bf16.msra.mxu0 %v7199_v42  ;;  %1539 = vmatpush1.bf16.msra.mxu1 %v7204_v44 }
 0x281   :  { %1499 = vmatprep.subr.bf16.mxu0 %v7206_v45  ;;  %1540 = vmatprep.subr.bf16.mxu1 %v7209_v46 }
 0x284   :  { %1500 = vmatpush1.bf16.msra.mxu0 %v7212_v47  ;;  %1541 = vmatpush1.bf16.msra.mxu1 %v7225_v51 }
 0x285   :  { %1501 = vmatprep.subr.bf16.mxu0 %v7222_v50  ;;  %1542 = vmatprep.subr.bf16.mxu1 %v7230_v52 }
 0x288   :  { %1502 = vmatpush1.bf16.msra.mxu0 %v7233_v53  ;;  %1543 = vmatpush1.bf16.msra.mxu1 %v7240_v56 }
 0x289   :  { %1503 = vmatprep.subr.bf16.mxu0 %v7237_v55  ;;  %1544 = vmatprep.subr.bf16.mxu1 %v7243_v57 }
 0x28c   :  { %1504 = vmatpush1.bf16.msra.mxu0 %v7246_v58  ;;  %1545 = vmatpush1.bf16.msra.mxu1 %v7251_v59 }
 0x28d   :  { %1846 = vmatprep.subr.bf16.mxu1 %v7507_v17 }
 0x342   :  { %v1207_v21 = vpop.f32.mrb[24].mxu0  ;;  %v1248_v22 = vpop.f32.mrb[24].mxu1 }
 0x343   :  { %v1255_v23 = vadd.f32 %v1207_v21, %v7336_v30  ;;  %v1257_v24 = vadd.f32 %v1248_v22, %v7344_v63  ;;  %v1209_v25 = vpop.f32.mrb[25].mxu0  ;;  %v1250_v28 = vpop.f32.mrb[25].mxu1  ;;  %v7505_v63 = vld [vmem:[#allocation7 + $0x4] ss:$16 sps:$4 sm:$0xff]   ;;  %v7589_v21 = vld [vmem:[#allocation7 + $0xec] ss:$16 sps:$4 sm:$0xff]  }
 0x344   :  { %v1256_v29 = vadd.f32 %v1209_v25, %v7338_v38  ;;  %v1258_v32 = vadd.f32 %v1250_v28, %v8401_v31  ;;  %v1211_v33 = vpop.f32.mrb[26].mxu0  ;;  %v1252_v34 = vpop.f32.mrb[26].mxu1  ;;  %1805 = vmatprep.subr.bf16.mxu0 %v7505_v63  ;;  %v7593_v22 = vld [vmem:[#allocation7 + $0xe0] ss:$16 sps:$4 sm:$0xff]   ;;  %v8402_v28 = vld [vmem:[#allocation15_spill] sm:$0xff] }
 0x345   :  { %v5922_v35 = vmul.f32 -1.442695, %v1255_v23  ;;  %v1212_v36 = vpop.f32.mrb[27].mxu0  ;;  %v1253_v39 = vpop.f32.mrb[27].mxu1  ;;  %v7595_v23 = vld [vmem:[#allocation7 + $0xe8] ss:$16 sps:$4 sm:$0xff]  }
 0x346   :  { %v5923_v40 = vmul.f32 -1.442695, %v1256_v29  ;;  %v5924_v42 = vmul.f32 -1.442695, %v1258_v32  ;;  %v8403_v31 = vld [vmem:[#allocation18_spill] sm:$0xff]  ;;  %v8405_v39 = vld [vmem:[#allocation19_spill] sm:$0xff] }
 0x347   :  { %6696 = vpow2.f32 %v5922_v35  ;;  %v8404_v35 = vld [vmem:[#allocation16_spill] sm:$0xff] }
 0x348   :  { %6698 = vpow2.f32 %v5923_v40 }
 0x349   :  { %6700 = vpow2.f32 %v5924_v42 }
 0x34a   :  { %6702 = vtanh.f32 %v1257_v24 }
 0x351   :  { %v6697_v43 = vpop.eup %6696 }
 0x352   :  { %v6699_v44 = vpop.eup %6698  ;;  %v1262_v45 = vadd.f32 1.0, %v6697_v43 }
 0x353   :  { %v1268_v46 = vadd.f32 1.0, %v6699_v44  ;;  %v6701_v47 = vpop.eup %6700 }
 0x354   :  { %6704 = vrcp.f32 %v1262_v45  ;;  %v6703_v50 = vpop.eup %6702  ;;  %v1275_v55 = vadd.f32 1.0, %v6701_v47 }
 0x355   :  { %6706 = vrcp.f32 %v1268_v46 }
 0x356   :  { %6708 = vrcp.f32 %v1275_v55 }
 0x35e   :  { %v6705_v51 = vpop.eup %6704 }
 0x35f   :  { %v6707_v52 = vpop.eup %6706  ;;  %v1280_v53 = vmul.f32 %v6705_v51, %v6703_v50 }
 0x360   :  { %v1279_v56 = vmul.f32 %v6707_v52, %v7452_v9  ;;  %v6709_v58 = vpop.eup %6708  ;;  %v7577_v9 = vld [vmem:[#allocation7 + $0xcc] ss:$16 sps:$4 sm:$0xff]  }
 0x362   :  { %v7496_v57 = vadd.f32 %v1280_v53, %v1279_v56 }
 0x364   :  { %6710 = vtanh.f32 %v7496_v57 }
 0x36e   :  { %v6711_v59 = vpop.eup %6710 }
 0x36f   :  { %v7499_v30 = vmul.f32 %v6711_v59, %v6709_v58 }
 0x371   :  { %v1296_v38 = vpack.c.bf16 %v7499_v30, %v7499_v30 }
 0x373   :  { %1522 = vmatmul.mubr.bf16.vlgmr.msra.gmra.mrb[28].mxu0 %v1296_v38  ;;  %1563 = vmatmul.mubr.bf16.vlgmr.msra.gmra.mrb[28].mxu1 %v1296_v38 }
 0x374   :  { %1837 = vmatprep.mubr.bf16.mxu0 %v8400_v48  ;;  %1878 = vmatprep.mubr.bf16.mxu1 %v8400_v48 }
 0x375   :  { %1806 = vmatpush1.bf16.msra.mxu0 %v7509_v0  ;;  %1847 = vmatpush1.bf16.msra.mxu1 %v7511_v54 }
 0x376   :  { %1807 = vmatprep.subr.bf16.mxu0 %v7517_v61  ;;  %1848 = vmatprep.subr.bf16.mxu1 %v7519_v2 }
 0x379   :  { %1808 = vmatpush1.bf16.msra.mxu0 %v7521_v3  ;;  %1849 = vmatpush1.bf16.msra.mxu1 %v7523_v6 }
 0x37a   :  { %1809 = vmatprep.subr.bf16.mxu0 %v7529_v7  ;;  %1850 = vmatprep.subr.bf16.mxu1 %v7531_v8 }
 0x37d   :  { %1810 = vmatpush1.bf16.msra.mxu0 %v7533_v10  ;;  %1851 = vmatpush1.bf16.msra.mxu1 %v7535_v62 }
 0x37e   :  { %1811 = vmatprep.subr.bf16.mxu0 %v7541_v16  ;;  %1852 = vmatprep.subr.bf16.mxu1 %v7543_v20 }
 0x381   :  { %1812 = vmatpush1.bf16.msra.mxu0 %v7545_v1  ;;  %1853 = vmatpush1.bf16.msra.mxu1 %v7547_v11 }
 0x382   :  { %1813 = vmatprep.subr.bf16.mxu0 %v7553_v12  ;;  %1854 = vmatprep.subr.bf16.mxu1 %v7555_v18 }
 0x385   :  { %1814 = vmatpush1.bf16.msra.mxu0 %v7557_v15  ;;  %1855 = vmatpush1.bf16.msra.mxu1 %v7559_v14 }
 0x386   :  { %1815 = vmatprep.subr.bf16.mxu0 %v7563_v26  ;;  %1856 = vmatprep.subr.bf16.mxu1 %v7565_v27 }
 0x389   :  { %1816 = vmatpush1.bf16.msra.mxu0 %v7569_v4  ;;  %1857 = vmatpush1.bf16.msra.mxu1 %v7571_v41 }
 0x38a   :  { %1817 = vmatprep.subr.bf16.mxu0 %v7575_v49  ;;  %1858 = vmatprep.subr.bf16.mxu1 %v7577_v9 }
 0x38d   :  { %1818 = vmatpush1.bf16.msra.mxu0 %v7581_v13  ;;  %1859 = vmatpush1.bf16.msra.mxu1 %v7583_v60 }
 0x38e   :  { %1819 = vmatprep.subr.bf16.mxu0 %v7587_v37  ;;  %1860 = vmatprep.subr.bf16.mxu1 %v7589_v21 }
 0x391   :  { %1820 = vmatpush1.bf16.msra.mxu0 %v7593_v22  ;;  %1861 = vmatpush1.bf16.msra.mxu1 %v7595_v23 }
 0x392   :  { %2121 = vmatprep.subr.bf16.mxu0 %v7505_v63  ;;  %2162 = vmatprep.subr.bf16.mxu1 %v7507_v17 }
 0x446   :  { %v1523_v24 = vpop.f32.mrb[28].mxu0  ;;  %v1564_v25 = vpop.f32.mrb[28].mxu1 }
 0x447   :  { %v1571_v29 = vadd.f32 %v1523_v24, %v8402_v28  ;;  %v1573_v32 = vadd.f32 %v1564_v25, %v8403_v31  ;;  %v1525_v33 = vpop.f32.mrb[29].mxu0  ;;  %v1566_v34 = vpop.f32.mrb[29].mxu1 }
 0x448   :  { %v1572_v36 = vadd.f32 %v1525_v33, %v8404_v35  ;;  %v1574_v40 = vadd.f32 %v1566_v34, %v8405_v39  ;;  %v1527_v42 = vpop.f32.mrb[30].mxu0  ;;  %v1568_v43 = vpop.f32.mrb[30].mxu1 }
 0x449   :  { %v5957_v44 = vmul.f32 -1.442695, %v1571_v29  ;;  %v1528_v45 = vpop.f32.mrb[31].mxu0  ;;  %v1569_v46 = vpop.f32.mrb[31].mxu1 }
 0x44a   :  { %v5958_v47 = vmul.f32 -1.442695, %v1572_v36  ;;  %v5959_v50 = vmul.f32 -1.442695, %v1574_v40  ;;  %v8406_v36 = vld [vmem:[#allocation20_spill] sm:$0xff]  ;;  %v8407_v40 = vld [vmem:[#allocation23_spill] sm:$0xff] }
 0x44b   :  { %6712 = vpow2.f32 %v5957_v44  ;;  %v8408_v45 = vld [vmem:[#allocation21_spill] sm:$0xff] }
 0x44c   :  { %6714 = vpow2.f32 %v5958_v47  ;;  %v8409_v47 = vld [vmem:[#allocation25_spill] sm:$0xff] }
 0x44d   :  { %6716 = vpow2.f32 %v5959_v50 }
 0x44e   :  { %6718 = vtanh.f32 %v1573_v32 }
 0x455   :  { %v6713_v51 = vpop.eup %6712 }
 0x456   :  { %v6715_v52 = vpop.eup %6714  ;;  %v1578_v53 = vadd.f32 1.0, %v6713_v51 }
 0x457   :  { %v1584_v55 = vadd.f32 1.0, %v6715_v52  ;;  %v6717_v56 = vpop.eup %6716 }
 0x458   :  { %6720 = vrcp.f32 %v1578_v53  ;;  %v6719_v58 = vpop.eup %6718  ;;  %v1591_v25 = vadd.f32 1.0, %v6717_v56 }
 0x459   :  { %6722 = vrcp.f32 %v1584_v55 }
 0x45a   :  { %6724 = vrcp.f32 %v1591_v25 }
 0x462   :  { %v6721_v59 = vpop.eup %6720 }
 0x463   :  { %v6723_v38 = vpop.eup %6722  ;;  %v1596_v24 = vmul.f32 %v6721_v59, %v6719_v58 }
 0x464   :  { %v1595_v28 = vmul.f32 %v6723_v38, %v7496_v57  ;;  %v6725_v31 = vpop.eup %6724 }
 0x466   :  { %v7608_v29 = vadd.f32 %v1596_v24, %v1595_v28 }
 0x468   :  { %6726 = vtanh.f32 %v7608_v29 }
 0x472   :  { %v6727_v33 = vpop.eup %6726 }
 0x473   :  { %v7611_v34 = vmul.f32 %v6727_v33, %v6725_v31 }
 0x475   :  { %v1612_v32 = vpack.c.bf16 %v7611_v34, %v7611_v34 }
 0x477   :  { %1838 = vmatmul.mubr.bf16.vlgmr.msra.gmra.mrb[32].mxu0 %v1612_v32  ;;  %1879 = vmatmul.mubr.bf16.vlgmr.msra.gmra.mrb[32].mxu1 %v1612_v32 }
 0x478   :  { %2122 = vmatpush1.bf16.msra.mxu0 %v7509_v0  ;;  %2163 = vmatpush1.bf16.msra.mxu1 %v7511_v54 }
 0x479   :  { %2123 = vmatprep.subr.bf16.mxu0 %v7517_v61  ;;  %2164 = vmatprep.subr.bf16.mxu1 %v7519_v2 }
 0x47a   :  { %2153 = vmatprep.mubr.bf16.mxu0 %v8400_v48  ;;  %2194 = vmatprep.mubr.bf16.mxu1 %v8400_v48 }
 0x47c   :  { %2124 = vmatpush1.bf16.msra.mxu0 %v7521_v3  ;;  %2165 = vmatpush1.bf16.msra.mxu1 %v7523_v6 }
 0x47d   :  { %2125 = vmatprep.subr.bf16.mxu0 %v7529_v7  ;;  %2166 = vmatprep.subr.bf16.mxu1 %v7531_v8 }
 0x480   :  { %2126 = vmatpush1.bf16.msra.mxu0 %v7533_v10  ;;  %2167 = vmatpush1.bf16.msra.mxu1 %v7535_v62 }
 0x481   :  { %2127 = vmatprep.subr.bf16.mxu0 %v7541_v16  ;;  %2168 = vmatprep.subr.bf16.mxu1 %v7543_v20 }
 0x484   :  { %2128 = vmatpush1.bf16.msra.mxu0 %v7545_v1  ;;  %2169 = vmatpush1.bf16.msra.mxu1 %v7547_v11 }
 0x485   :  { %2129 = vmatprep.subr.bf16.mxu0 %v7553_v12  ;;  %2170 = vmatprep.subr.bf16.mxu1 %v7555_v18 }
 0x488   :  { %2130 = vmatpush1.bf16.msra.mxu0 %v7557_v15  ;;  %2171 = vmatpush1.bf16.msra.mxu1 %v7559_v14 }
 0x489   :  { %2131 = vmatprep.subr.bf16.mxu0 %v7563_v26  ;;  %2172 = vmatprep.subr.bf16.mxu1 %v7565_v27 }
 0x48c   :  { %2132 = vmatpush1.bf16.msra.mxu0 %v7569_v4  ;;  %2173 = vmatpush1.bf16.msra.mxu1 %v7571_v41 }
 0x48d   :  { %2133 = vmatprep.subr.bf16.mxu0 %v7575_v49  ;;  %2174 = vmatprep.subr.bf16.mxu1 %v7577_v9 }
 0x490   :  { %2134 = vmatpush1.bf16.msra.mxu0 %v7581_v13  ;;  %2175 = vmatpush1.bf16.msra.mxu1 %v7583_v60 }
 0x491   :  { %2135 = vmatprep.subr.bf16.mxu0 %v7587_v37  ;;  %2176 = vmatprep.subr.bf16.mxu1 %v7589_v21 }
 0x494   :  { %2136 = vmatpush1.bf16.msra.mxu0 %v7593_v22  ;;  %2177 = vmatpush1.bf16.msra.mxu1 %v7595_v23 }
 0x495   :  { %2437 = vmatprep.subr.bf16.mxu0 %v7505_v63  ;;  %2478 = vmatprep.subr.bf16.mxu1 %v7507_v17 }
 0x54a   :  { %v1839_v57 = vpop.f32.mrb[32].mxu0  ;;  %v1880_v35 = vpop.f32.mrb[32].mxu1 }
 0x54b   :  { %v1887_v39 = vadd.f32 %v1839_v57, %v8406_v36  ;;  %v1889_v42 = vadd.f32 %v1880_v35, %v8407_v40  ;;  %v1841_v43 = vpop.f32.mrb[33].mxu0  ;;  %v1882_v44 = vpop.f32.mrb[33].mxu1 }
 0x54c   :  { %v1888_v46 = vadd.f32 %v1841_v43, %v8408_v45  ;;  %v1890_v50 = vadd.f32 %v1882_v44, %v8409_v47  ;;  %v1843_v51 = vpop.f32.mrb[34].mxu0  ;;  %v1884_v52 = vpop.f32.mrb[34].mxu1  ;;  %v8410_v47 = vld [vmem:[#allocation22_spill] sm:$0xff] }
 0x54d   :  { %v5992_v53 = vmul.f32 -1.442695, %v1887_v39  ;;  %v1844_v55 = vpop.f32.mrb[35].mxu0  ;;  %v1885_v56 = vpop.f32.mrb[35].mxu1  ;;  %v8411_v51 = vld [vmem:[#allocation26_spill] sm:$0xff] }
 0x54e   :  { %v5993_v58 = vmul.f32 -1.442695, %v1888_v46  ;;  %v5994_v59 = vmul.f32 -1.442695, %v1890_v50  ;;  %v8412_v56 = vld [vmem:[#allocation24_spill] sm:$0xff] }
 0x54f   :  { %6728 = vpow2.f32 %v5992_v53 }
 0x550   :  { %6730 = vpow2.f32 %v5993_v58 }
 0x551   :  { %6732 = vpow2.f32 %v5994_v59  ;;  %v8413_v59 = vld [vmem:[#allocation27_spill] sm:$0xff] }
 0x552   :  { %6734 = vtanh.f32 %v1889_v42 }
 0x559   :  { %v6729_v38 = vpop.eup %6728 }
 0x55a   :  { %v6731_v24 = vpop.eup %6730  ;;  %v1894_v25 = vadd.f32 1.0, %v6729_v38 }
 0x55b   :  { %v1900_v28 = vadd.f32 1.0, %v6731_v24  ;;  %v6733_v31 = vpop.eup %6732 }
 0x55c   :  { %6736 = vrcp.f32 %v1894_v25  ;;  %v6735_v33 = vpop.eup %6734  ;;  %v1907_v36 = vadd.f32 1.0, %v6733_v31 }
 0x55d   :  { %6738 = vrcp.f32 %v1900_v28 }
 0x55e   :  { %6740 = vrcp.f32 %v1907_v36 }
 0x566   :  { %v6737_v32 = vpop.eup %6736 }
 0x567   :  { %v6739_v57 = vpop.eup %6738  ;;  %v1912_v35 = vmul.f32 %v6737_v32, %v6735_v33 }
 0x568   :  { %v1911_v39 = vmul.f32 %v6739_v57, %v7608_v29  ;;  %v6741_v43 = vpop.eup %6740 }
 0x56a   :  { %v7654_v40 = vadd.f32 %v1912_v35, %v1911_v39 }
 0x56c   :  { %6742 = vtanh.f32 %v7654_v40 }
 0x576   :  { %v6743_v44 = vpop.eup %6742 }
 0x577   :  { %v7657_v45 = vmul.f32 %v6743_v44, %v6741_v43 }
 0x579   :  { %v1928_v42 = vpack.c.bf16 %v7657_v45, %v7657_v45 }
 0x57b   :  { %2154 = vmatmul.mubr.bf16.vlgmr.msra.gmra.mrb[36].mxu0 %v1928_v42  ;;  %2195 = vmatmul.mubr.bf16.vlgmr.msra.gmra.mrb[36].mxu1 %v1928_v42 }
 0x57c   :  { %2438 = vmatpush1.bf16.msra.mxu0 %v7509_v0  ;;  %2479 = vmatpush1.bf16.msra.mxu1 %v7511_v54 }
 0x57d   :  { %2439 = vmatprep.subr.bf16.mxu0 %v7517_v61  ;;  %2480 = vmatprep.subr.bf16.mxu1 %v7519_v2 }
 0x57e   :  { %2469 = vmatprep.mubr.bf16.mxu0 %v8400_v48  ;;  %2510 = vmatprep.mubr.bf16.mxu1 %v8400_v48 }
 0x580   :  { %2440 = vmatpush1.bf16.msra.mxu0 %v7521_v3  ;;  %2481 = vmatpush1.bf16.msra.mxu1 %v7523_v6 }
 0x581   :  { %2441 = vmatprep.subr.bf16.mxu0 %v7529_v7  ;;  %2482 = vmatprep.subr.bf16.mxu1 %v7531_v8 }
 0x584   :  { %2442 = vmatpush1.bf16.msra.mxu0 %v7533_v10  ;;  %2483 = vmatpush1.bf16.msra.mxu1 %v7535_v62 }
 0x585   :  { %2443 = vmatprep.subr.bf16.mxu0 %v7541_v16  ;;  %2484 = vmatprep.subr.bf16.mxu1 %v7543_v20 }
 0x588   :  { %2444 = vmatpush1.bf16.msra.mxu0 %v7545_v1  ;;  %2485 = vmatpush1.bf16.msra.mxu1 %v7547_v11 }
 0x589   :  { %2445 = vmatprep.subr.bf16.mxu0 %v7553_v12  ;;  %2486 = vmatprep.subr.bf16.mxu1 %v7555_v18 }
 0x58c   :  { %2446 = vmatpush1.bf16.msra.mxu0 %v7557_v15  ;;  %2487 = vmatpush1.bf16.msra.mxu1 %v7559_v14 }
 0x58d   :  { %2447 = vmatprep.subr.bf16.mxu0 %v7563_v26  ;;  %2488 = vmatprep.subr.bf16.mxu1 %v7565_v27 }
 0x590   :  { %2448 = vmatpush1.bf16.msra.mxu0 %v7569_v4  ;;  %2489 = vmatpush1.bf16.msra.mxu1 %v7571_v41 }
 0x591   :  { %2449 = vmatprep.subr.bf16.mxu0 %v7575_v49  ;;  %2490 = vmatprep.subr.bf16.mxu1 %v7577_v9 }
 0x594   :  { %2450 = vmatpush1.bf16.msra.mxu0 %v7581_v13  ;;  %2491 = vmatpush1.bf16.msra.mxu1 %v7583_v60 }
 0x595   :  { %2451 = vmatprep.subr.bf16.mxu0 %v7587_v37  ;;  %2492 = vmatprep.subr.bf16.mxu1 %v7589_v21 }
 0x598   :  { %2452 = vmatpush1.bf16.msra.mxu0 %v7593_v22  ;;  %2493 = vmatpush1.bf16.msra.mxu1 %v7595_v23 }
 0x599   :  { %2753 = vmatprep.subr.bf16.mxu0 %v7505_v63  ;;  %2794 = vmatprep.subr.bf16.mxu1 %v7507_v17 }
 0x64e   :  { %v2155_v29 = vpop.f32.mrb[36].mxu0  ;;  %v2196_v46 = vpop.f32.mrb[36].mxu1 }
 0x64f   :  { %v2203_v50 = vadd.f32 %v2155_v29, %v8410_v47  ;;  %v2205_v52 = vadd.f32 %v2196_v46, %v8411_v51  ;;  %v2157_v53 = vpop.f32.mrb[37].mxu0  ;;  %v2198_v55 = vpop.f32.mrb[37].mxu1 }
 0x650   :  { %v2204_v58 = vadd.f32 %v2157_v53, %v8412_v56  ;;  %v2206_v38 = vadd.f32 %v2198_v55, %v8413_v59  ;;  %v2159_v24 = vpop.f32.mrb[38].mxu0  ;;  %v2200_v25 = vpop.f32.mrb[38].mxu1 }
 0x651   :  { %v6027_v28 = vmul.f32 -1.442695, %v2203_v50  ;;  %v2160_v31 = vpop.f32.mrb[39].mxu0  ;;  %v2201_v33 = vpop.f32.mrb[39].mxu1  ;;  %v6520_v25 = vld [vmem:[#allocation9] ss:$16 sps:$4 sm:$0xff]  }
 0x652   :  { %v6028_v63 = vmul.f32 -1.442695, %v2204_v58  ;;  %v6029_v17 = vmul.f32 -1.442695, %v2206_v38  ;;  %v6528_v33 = vld [vmem:[#allocation9 + $0x24] ss:$16 sps:$4 sm:$0xff]  }
 0x653   :  { %6744 = vpow2.f32 %v6027_v28  ;;  %v6523_v28 = vld [vmem:[#allocation9 + $0x8] ss:$16 sps:$4 sm:$0xff]  }
 0x654   :  { %6746 = vpow2.f32 %v6028_v63  ;;  %v6531_v63 = vld [vmem:[#allocation9 + $0x2c] ss:$16 sps:$4 sm:$0xff]  }
 0x655   :  { %6748 = vpow2.f32 %v6029_v17  ;;  %v6526_v17 = vld [vmem:[#allocation9 + $0x20] ss:$16 sps:$4 sm:$0xff]  }
 0x656   :  { %6750 = vtanh.f32 %v2205_v52 }
 0x65d   :  { %v6745_v32 = vpop.eup %6744 }
 0x65e   :  { %v6747_v57 = vpop.eup %6746  ;;  %v2210_v35 = vadd.f32 1.0, %v6745_v32  ;;  %v6529_v32 = vld [vmem:[#allocation9 + $0x28] ss:$16 sps:$4 sm:$0xff]  }
 0x65f   :  { %v2216_v36 = vadd.f32 1.0, %v6747_v57  ;;  %v6749_v39 = vpop.eup %6748  ;;  %v6534_v57 = vld [vmem:[#allocation9 + $0x44] ss:$16 sps:$4 sm:$0xff]  }
 0x660   :  { %6752 = vrcp.f32 %v2210_v35  ;;  %v6751_v43 = vpop.eup %6750  ;;  %v2223_v46 = vadd.f32 1.0, %v6749_v39  ;;  %v6537_v35 = vld [vmem:[#allocation9 + $0x4c] ss:$16 sps:$4 sm:$0xff]   ;;  %v6535_v39 = vld [vmem:[#allocation9 + $0x48] ss:$16 sps:$4 sm:$0xff]  }
 0x661   :  { %6754 = vrcp.f32 %v2216_v36  ;;  %v6532_v36 = vld [vmem:[#allocation9 + $0x40] ss:$16 sps:$4 sm:$0xff]  }
 0x662   :  { %6756 = vrcp.f32 %v2223_v46  ;;  %v6546_v46 = vld [vmem:[#allocation9 + $0x84] ss:$16 sps:$4 sm:$0xff]  }
 0x66a   :  { %v6753_v44 = vpop.eup %6752 }
 0x66b   :  { %v6755_v42 = vpop.eup %6754  ;;  %v2228_v29 = vmul.f32 %v6753_v44, %v6751_v43  ;;  %v6540_v43 = vld [vmem:[#allocation9 + $0x64] ss:$16 sps:$4 sm:$0xff]   ;;  %v6543_v44 = vld [vmem:[#allocation9 + $0x6c] ss:$16 sps:$4 sm:$0xff]  }
 0x66c   :  { %v2227_v47 = vmul.f32 %v6755_v42, %v7654_v40  ;;  %v6757_v51 = vpop.eup %6756  ;;  %v6538_v42 = vld [vmem:[#allocation9 + $0x60] ss:$16 sps:$4 sm:$0xff]  }
 0x66e   :  { %v7700_v50 = vadd.f32 %v2228_v29, %v2227_v47  ;;  %v6541_v29 = vld [vmem:[#allocation9 + $0x68] ss:$16 sps:$4 sm:$0xff]   ;;  %v6549_v47 = vld [vmem:[#allocation9 + $0x8c] ss:$16 sps:$4 sm:$0xff]  }
 0x670   :  { %6758 = vtanh.f32 %v7700_v50 }
 0x67a   :  { %v6759_v53 = vpop.eup %6758 }
 0x67b   :  { %v7703_v55 = vmul.f32 %v6759_v53, %v6757_v51  ;;  %v6547_v51 = vld [vmem:[#allocation9 + $0x88] ss:$16 sps:$4 sm:$0xff]   ;;  %v6552_v53 = vld [vmem:[#allocation9 + $0xa4] ss:$16 sps:$4 sm:$0xff]  }
 0x67d   :  { %v2244_v52 = vpack.c.bf16 %v7703_v55, %v7703_v55 }
 0x67f   :  { %2470 = vmatmul.mubr.bf16.vlgmr.msra.gmra.mrb[40].mxu0 %v2244_v52  ;;  %2511 = vmatmul.mubr.bf16.vlgmr.msra.gmra.mrb[40].mxu1 %v2244_v52  ;;  %v6555_v52 = vld [vmem:[#allocation9 + $0xac] ss:$16 sps:$4 sm:$0xff]  }
 0x680   :  { %2754 = vmatpush1.bf16.msra.mxu0 %v7509_v0  ;;  %2795 = vmatpush1.bf16.msra.mxu1 %v7511_v54  ;;  %v6522_v0 = vld [vmem:[#allocation9 + $0x4] ss:$16 sps:$4 sm:$0xff]   ;;  %v6525_v54 = vld [vmem:[#allocation9 + $0xc] ss:$16 sps:$4 sm:$0xff]  }
 0x681   :  { %2755 = vmatprep.subr.bf16.mxu0 %v7517_v61  ;;  %2796 = vmatprep.subr.bf16.mxu1 %v7519_v2 }
 0x682   :  { %2785 = vmatprep.mubr.bf16.mxu0 %v8400_v48  ;;  %2826 = vmatprep.mubr.bf16.mxu1 %v8400_v48 }
 0x684   :  { %2756 = vmatpush1.bf16.msra.mxu0 %v7521_v3  ;;  %2797 = vmatpush1.bf16.msra.mxu1 %v7523_v6  ;;  %v8414_v3 = vld [vmem:[#allocation28_spill] sm:$0xff] }
 0x685   :  { %2757 = vmatprep.subr.bf16.mxu0 %v7529_v7  ;;  %2798 = vmatprep.subr.bf16.mxu1 %v7531_v8  ;;  %v8415_v7 = vld [vmem:[#allocation31_spill] sm:$0xff] }
 0x688   :  { %2758 = vmatpush1.bf16.msra.mxu0 %v7533_v10  ;;  %2799 = vmatpush1.bf16.msra.mxu1 %v7535_v62 }
 0x689   :  { %2759 = vmatprep.subr.bf16.mxu0 %v7541_v16  ;;  %2800 = vmatprep.subr.bf16.mxu1 %v7543_v20  ;;  %v8416_v16 = vld [vmem:[#allocation29_spill] sm:$0xff] }
 0x68c   :  { %2760 = vmatpush1.bf16.msra.mxu0 %v7545_v1  ;;  %2801 = vmatpush1.bf16.msra.mxu1 %v7547_v11  ;;  %v8417_v1 = vld [vmem:[#allocation33_spill] sm:$0xff] }
 0x68d   :  { %2761 = vmatprep.subr.bf16.mxu0 %v7553_v12  ;;  %2802 = vmatprep.subr.bf16.mxu1 %v7555_v18 }
 0x690   :  { %2762 = vmatpush1.bf16.msra.mxu0 %v7557_v15  ;;  %2803 = vmatpush1.bf16.msra.mxu1 %v7559_v14 }
 0x691   :  { %2763 = vmatprep.subr.bf16.mxu0 %v7563_v26  ;;  %2804 = vmatprep.subr.bf16.mxu1 %v7565_v27 }
 0x694   :  { %2764 = vmatpush1.bf16.msra.mxu0 %v7569_v4  ;;  %2805 = vmatpush1.bf16.msra.mxu1 %v7571_v41 }
 0x695   :  { %2765 = vmatprep.subr.bf16.mxu0 %v7575_v49  ;;  %2806 = vmatprep.subr.bf16.mxu1 %v7577_v9 }
 0x698   :  { %2766 = vmatpush1.bf16.msra.mxu0 %v7581_v13  ;;  %2807 = vmatpush1.bf16.msra.mxu1 %v7583_v60 }
 0x699   :  { %2767 = vmatprep.subr.bf16.mxu0 %v7587_v37  ;;  %2808 = vmatprep.subr.bf16.mxu1 %v7589_v21 }
 0x69c   :  { %2768 = vmatpush1.bf16.msra.mxu0 %v7593_v22  ;;  %2809 = vmatpush1.bf16.msra.mxu1 %v7595_v23 }
 0x69d   :  { %3096 = vmatprep.subr.bf16.mxu0 %v6522_v0  ;;  %3169 = vmatprep.subr.bf16.mxu1 %v6525_v54  ;;  %v6550_v0 = vld [vmem:[#allocation9 + $0xa0] ss:$16 sps:$4 sm:$0xff]   ;;  %v6553_v54 = vld [vmem:[#allocation9 + $0xa8] ss:$16 sps:$4 sm:$0xff]  }
 0x752   :  { %v2471_v61 = vpop.f32.mrb[40].mxu0  ;;  %v2512_v2 = vpop.f32.mrb[40].mxu1 }
 0x753   :  { %v2519_v6 = vadd.f32 %v2471_v61, %v8414_v3  ;;  %v2521_v8 = vadd.f32 %v2512_v2, %v8415_v7  ;;  %v2473_v10 = vpop.f32.mrb[41].mxu0  ;;  %v2514_v62 = vpop.f32.mrb[41].mxu1  ;;  %v6558_v61 = vld [vmem:[#allocation9 + $0xc4] ss:$16 sps:$4 sm:$0xff]   ;;  %v6561_v2 = vld [vmem:[#allocation9 + $0xcc] ss:$16 sps:$4 sm:$0xff]  }
 0x754   :  { %v2520_v20 = vadd.f32 %v2473_v10, %v8416_v16  ;;  %v2522_v11 = vadd.f32 %v2514_v62, %v8417_v1  ;;  %v2475_v12 = vpop.f32.mrb[42].mxu0  ;;  %v2516_v18 = vpop.f32.mrb[42].mxu1  ;;  %v6556_v3 = vld [vmem:[#allocation9 + $0xc0] ss:$16 sps:$4 sm:$0xff]   ;;  %v6564_v7 = vld [vmem:[#allocation9 + $0xe4] ss:$16 sps:$4 sm:$0xff]   ;;  %v2878_v16 = vpack.c.bf16 %v7455_v5, %v7409_v19  ;;  %v2880_v1 = vpack.c.bf16 %v7703_v55, %v7657_v45 }
 0x755   :  { %v6062_v15 = vmul.f32 -1.442695, %v2519_v6  ;;  %v2476_v14 = vpop.f32.mrb[43].mxu0  ;;  %v2517_v26 = vpop.f32.mrb[43].mxu1  ;;  %v6559_v6 = vld [vmem:[#allocation9 + $0xc8] ss:$16 sps:$4 sm:$0xff]  }
 0x756   :  { %v6063_v27 = vmul.f32 -1.442695, %v2520_v20  ;;  %v6064_v4 = vmul.f32 -1.442695, %v2522_v11  ;;  %v6562_v10 = vld [vmem:[#allocation9 + $0xe0] ss:$16 sps:$4 sm:$0xff]   ;;  %v2879_v20 = vpack.c.bf16 %v7611_v34, %v7499_v30 }
 0x757   :  { %6760 = vpow2.f32 %v6062_v15  ;;  %v6565_v62 = vld [vmem:[#allocation9 + $0xe8] ss:$16 sps:$4 sm:$0xff]   ;;  %v7765_v19 = vld [vmem:[#allocation11 + $0x4] ss:$16 sps:$4 sm:$0xff]   ;;  %v7767_v5 = vld [vmem:[#allocation11 + $0xc] ss:$16 sps:$4 sm:$0xff]  }
 0x758   :  { %6762 = vpow2.f32 %v6063_v27  ;;  %v7769_v30 = vld [vmem:[#allocation11] ss:$16 sps:$4 sm:$0xff]   ;;  %v7771_v34 = vld [vmem:[#allocation11 + $0x8] ss:$16 sps:$4 sm:$0xff]   ;;  %v7777_v45 = vld [vmem:[#allocation11 + $0x24] ss:$16 sps:$4 sm:$0xff]  }
 0x759   :  { %6764 = vpow2.f32 %v6064_v4  ;;  %v7779_v55 = vld [vmem:[#allocation11 + $0x2c] ss:$16 sps:$4 sm:$0xff]   ;;  %v7781_v11 = vld [vmem:[#allocation11 + $0x20] ss:$16 sps:$4 sm:$0xff]   ;;  %v7783_v12 = vld [vmem:[#allocation11 + $0x28] ss:$16 sps:$4 sm:$0xff]  }
 0x75a   :  { %6766 = vtanh.f32 %v2521_v8  ;;  %v6567_v8 = vld [vmem:[#allocation9 + $0xec] ss:$16 sps:$4 sm:$0xff]   ;;  %v7789_v18 = vld [vmem:[#allocation11 + $0x44] ss:$16 sps:$4 sm:$0xff]   ;;  %v7793_v14 = vld [vmem:[#allocation11 + $0x40] ss:$16 sps:$4 sm:$0xff]  }
 0x75b   :  { %v7791_v15 = vld [vmem:[#allocation11 + $0x4c] ss:$16 sps:$4 sm:$0xff]   ;;  %v7795_v26 = vld [vmem:[#allocation11 + $0x48] ss:$16 sps:$4 sm:$0xff]   ;;  %v7801_v27 = vld [vmem:[#allocation11 + $0x60] ss:$16 sps:$4 sm:$0xff]  }
 0x75c   :  { %v7803_v4 = vld [vmem:[#allocation11 + $0x64] ss:$16 sps:$4 sm:$0xff]  }
 0x761   :  { %v6761_v41 = vpop.eup %6760 }
 0x762   :  { %v6763_v49 = vpop.eup %6762  ;;  %v2526_v9 = vadd.f32 1.0, %v6761_v41  ;;  %v7805_v41 = vld [vmem:[#allocation11 + $0x68] ss:$16 sps:$4 sm:$0xff]  }
 0x763   :  { %v2532_v13 = vadd.f32 1.0, %v6763_v49  ;;  %v6765_v60 = vpop.eup %6764  ;;  %v7807_v49 = vld [vmem:[#allocation11 + $0x6c] ss:$16 sps:$4 sm:$0xff]  }
 0x764   :  { %6768 = vrcp.f32 %v2526_v9  ;;  %v6767_v37 = vpop.eup %6766  ;;  %v2539_v40 = vadd.f32 1.0, %v6765_v60  ;;  %v7813_v9 = vld [vmem:[#allocation11 + $0x84] ss:$16 sps:$4 sm:$0xff]   ;;  %v7817_v60 = vld [vmem:[#allocation11 + $0x80] ss:$16 sps:$4 sm:$0xff]  }
 0x765   :  { %6770 = vrcp.f32 %v2532_v13  ;;  %v7815_v13 = vld [vmem:[#allocation11 + $0x8c] ss:$16 sps:$4 sm:$0xff]  }
 0x766   :  { %6772 = vrcp.f32 %v2539_v40  ;;  %v7831_v40 = vld [vmem:[#allocation11 + $0xac] ss:$16 sps:$4 sm:$0xff]  }
 0x76e   :  { %v6769_v21 = vpop.eup %6768 }
 0x76f   :  { %v6771_v22 = vpop.eup %6770  ;;  %v2544_v23 = vmul.f32 %v6769_v21, %v6767_v37  ;;  %v7819_v37 = vld [vmem:[#allocation11 + $0x88] ss:$16 sps:$4 sm:$0xff]   ;;  %v7825_v21 = vld [vmem:[#allocation11 + $0xa0] ss:$16 sps:$4 sm:$0xff]  }
 0x770   :  { %v2543_v56 = vmul.f32 %v6771_v22, %v7700_v50  ;;  %v6773_v59 = vpop.eup %6772  ;;  %v6544_v50 = vld [vmem:[#allocation9 + $0x80] ss:$16 sps:$4 sm:$0xff]   ;;  %v7827_v22 = vld [vmem:[#allocation11 + $0xa4] ss:$16 sps:$4 sm:$0xff]  }
 0x772   :  { %v7744_v58 = vadd.f32 %v2544_v23, %v2543_v56  ;;  %v7829_v23 = vld [vmem:[#allocation11 + $0xa8] ss:$16 sps:$4 sm:$0xff]   ;;  %v7837_v56 = vld [vmem:[#allocation11 + $0xc4] ss:$16 sps:$4 sm:$0xff]  }
 0x774   :  { %6774 = vtanh.f32 %v7744_v58 }
 0x77e   :  { %v6775_v38 = vpop.eup %6774 }
 0x77f   :  { %v7747_v24 = vmul.f32 %v6775_v38, %v6773_v59  ;;  %v7839_v59 = vld [vmem:[#allocation11 + $0xcc] ss:$16 sps:$4 sm:$0xff]   ;;  %v7841_v38 = vld [vmem:[#allocation11 + $0xc0] ss:$16 sps:$4 sm:$0xff]  }
 0x781   :  { %v2560_v31 = vpack.c.bf16 %v7747_v24, %v7747_v24 }
 0x783   :  { %2786 = vmatmul.mubr.bf16.vlgmr.msra.gmra.mrb[44].mxu0 %v2560_v31  ;;  %2827 = vmatmul.mubr.bf16.vlgmr.msra.gmra.mrb[44].mxu1 %v2560_v31  ;;  %v7851_v31 = vld [vmem:[#allocation11 + $0xe4] ss:$16 sps:$4 sm:$0xff]  }
 0x784   :  { %3097 = vmatpush1.bf16.msra.mxu0 %v6520_v25  ;;  %3170 = vmatpush1.bf16.msra.mxu1 %v6523_v28  ;;  %v7843_v25 = vld [vmem:[#allocation11 + $0xc8] ss:$16 sps:$4 sm:$0xff]   ;;  %v7849_v28 = vld [vmem:[#allocation11 + $0xe0] ss:$16 sps:$4 sm:$0xff]  }
 0x785   :  { %3098 = vmatprep.subr.bf16.mxu0 %v6528_v33  ;;  %3171 = vmatprep.subr.bf16.mxu1 %v6531_v63  ;;  %v7853_v33 = vld [vmem:[#allocation11 + $0xe8] ss:$16 sps:$4 sm:$0xff]   ;;  %v7855_v63 = vld [vmem:[#allocation11 + $0xec] ss:$16 sps:$4 sm:$0xff]  }
 0x786   :  { %3128 = vmatprep.mubr.bf16.mxu0 %v8400_v48  ;;  %3201 = vmatprep.mubr.bf16.mxu1 %v8400_v48 }
 0x788   :  { %3099 = vmatpush1.bf16.msra.mxu0 %v6526_v17  ;;  %3172 = vmatpush1.bf16.msra.mxu1 %v6529_v32 }
 0x789   :  { %3100 = vmatprep.subr.bf16.mxu0 %v6534_v57  ;;  %3173 = vmatprep.subr.bf16.mxu1 %v6537_v35  ;;  %v8418_v57 = vld [vmem:[#allocation30_spill] sm:$0xff] }
 0x78c   :  { %3101 = vmatpush1.bf16.msra.mxu0 %v6532_v36  ;;  %3174 = vmatpush1.bf16.msra.mxu1 %v6535_v39  ;;  %v8419_v36 = vld [vmem:[#allocation34_spill] sm:$0xff] }
 0x78d   :  { %3102 = vmatprep.subr.bf16.mxu0 %v6540_v43  ;;  %3175 = vmatprep.subr.bf16.mxu1 %v6543_v44 }
 0x790   :  { %3103 = vmatpush1.bf16.msra.mxu0 %v6538_v42  ;;  %3176 = vmatpush1.bf16.msra.mxu1 %v6541_v29  ;;  %v8420_v42 = vld [vmem:[#allocation32_spill] sm:$0xff] }
 0x791   :  { %3104 = vmatprep.subr.bf16.mxu0 %v6546_v46  ;;  %3177 = vmatprep.subr.bf16.mxu1 %v6549_v47  ;;  %v8421_v46 = vld [vmem:[#allocation35_spill] sm:$0xff] }
 0x794   :  { %3105 = vmatpush1.bf16.msra.mxu0 %v6544_v50  ;;  %3178 = vmatpush1.bf16.msra.mxu1 %v6547_v51 }
 0x795   :  { %3106 = vmatprep.subr.bf16.mxu0 %v6552_v53  ;;  %3179 = vmatprep.subr.bf16.mxu1 %v6555_v52 }
 0x798   :  { %3107 = vmatpush1.bf16.msra.mxu0 %v6550_v0  ;;  %3180 = vmatpush1.bf16.msra.mxu1 %v6553_v54 }
 0x799   :  { %3108 = vmatprep.subr.bf16.mxu0 %v6558_v61  ;;  %3181 = vmatprep.subr.bf16.mxu1 %v6561_v2 }
 0x79c   :  { %3109 = vmatpush1.bf16.msra.mxu0 %v6556_v3  ;;  %3182 = vmatpush1.bf16.msra.mxu1 %v6559_v6 }
 0x79d   :  { %3110 = vmatprep.subr.bf16.mxu0 %v6564_v7  ;;  %3183 = vmatprep.subr.bf16.mxu1 %v6567_v8 }
 0x7a0   :  { %3111 = vmatpush1.bf16.msra.mxu0 %v6562_v10  ;;  %3184 = vmatpush1.bf16.msra.mxu1 %v6565_v62 }
 0x7a1   :  { %3472 = vmatprep.subr.bf16.mxu0 %v7765_v19  ;;  %3513 = vmatprep.subr.bf16.mxu1 %v7767_v5 }
 0x7a3   :  { %3129 = vmatmul.mubr.bf16.vlgmr.msra.gmra.mrb[48].mxu0 %v2878_v16  ;;  %3202 = vmatmul.mubr.bf16.vlgmr.msra.gmra.mrb[48].mxu1 %v2878_v16 }
 0x7a4   :  { %3138 = vmatprep.mubr.bf16.mxu0 %v8400_v48  ;;  %3211 = vmatprep.mubr.bf16.mxu1 %v8400_v48 }
 0x7a5   :  { %3473 = vmatpush1.bf16.msra.mxu0 %v7769_v30  ;;  %3514 = vmatpush1.bf16.msra.mxu1 %v7771_v34 }
 0x7a6   :  { %3474 = vmatprep.subr.bf16.mxu0 %v7777_v45  ;;  %3515 = vmatprep.subr.bf16.mxu1 %v7779_v55 }
 0x7a9   :  { %3475 = vmatpush1.bf16.msra.mxu0 %v7781_v11  ;;  %3516 = vmatpush1.bf16.msra.mxu1 %v7783_v12 }
 0x7aa   :  { %3476 = vmatprep.subr.bf16.mxu0 %v7789_v18  ;;  %3517 = vmatprep.subr.bf16.mxu1 %v7791_v15 }
 0x7ab   :  { %3139 = vmatmul.mubr.bf16.gmra.mrb[52].mxu0 %v2879_v20  ;;  %3212 = vmatmul.mubr.bf16.gmra.mrb[52].mxu1 %v2879_v20 }
 0x7ac   :  { %3148 = vmatprep.mubr.bf16.mxu0 %v8400_v48  ;;  %3221 = vmatprep.mubr.bf16.mxu1 %v8400_v48 }
 0x7ad   :  { %3477 = vmatpush1.bf16.msra.mxu0 %v7793_v14  ;;  %3518 = vmatpush1.bf16.msra.mxu1 %v7795_v26 }
 0x7ae   :  { %3478 = vmatprep.subr.bf16.mxu0 %v7803_v4  ;;  %3519 = vmatprep.subr.bf16.mxu1 %v7807_v49 }
 0x7b1   :  { %3479 = vmatpush1.bf16.msra.mxu0 %v7801_v27  ;;  %3520 = vmatpush1.bf16.msra.mxu1 %v7805_v41 }
 0x7b2   :  { %3480 = vmatprep.subr.bf16.mxu0 %v7813_v9  ;;  %3521 = vmatprep.subr.bf16.mxu1 %v7815_v13 }
 0x7b3   :  { %3149 = vmatmul.mubr.bf16.gmra.mrb[56].mxu0 %v2880_v1  ;;  %3222 = vmatmul.mubr.bf16.gmra.mrb[56].mxu1 %v2880_v1 }
 0x7b4   :  { %3158 = vmatprep.mubr.bf16.mxu0 %v8400_v48  ;;  %3231 = vmatprep.mubr.bf16.mxu1 %v8400_v48 }
 0x7b5   :  { %3481 = vmatpush1.bf16.msra.mxu0 %v7817_v60  ;;  %3522 = vmatpush1.bf16.msra.mxu1 %v7819_v37 }
 0x7b6   :  { %3482 = vmatprep.subr.bf16.mxu0 %v7827_v22  ;;  %3523 = vmatprep.subr.bf16.mxu1 %v7831_v40 }
 0x7b9   :  { %3483 = vmatpush1.bf16.msra.mxu0 %v7825_v21  ;;  %3524 = vmatpush1.bf16.msra.mxu1 %v7829_v23 }
 0x7ba   :  { %3484 = vmatprep.subr.bf16.mxu0 %v7837_v56  ;;  %3525 = vmatprep.subr.bf16.mxu1 %v7839_v59 }
 0x7bd   :  { %3485 = vmatpush1.bf16.msra.mxu0 %v7841_v38  ;;  %3526 = vmatpush1.bf16.msra.mxu1 %v7843_v25 }
 0x7be   :  { %3486 = vmatprep.subr.bf16.mxu0 %v7851_v31  ;;  %3527 = vmatprep.subr.bf16.mxu1 %v7855_v63 }
 0x7c1   :  { %3487 = vmatpush1.bf16.msra.mxu0 %v7849_v28  ;;  %3528 = vmatpush1.bf16.msra.mxu1 %v7853_v33 }
 0x7c2   :  { %3783 = vmatprep.subr.bf16.mxu0 %v7765_v19  ;;  %3824 = vmatprep.subr.bf16.mxu1 %v7767_v5 }
 0x856   :  { %v2787_v17 = vpop.f32.mrb[44].mxu0  ;;  %v2828_v32 = vpop.f32.mrb[44].mxu1 }
 0x857   :  { %v2835_v35 = vadd.f32 %v2787_v17, %v8418_v57  ;;  %v2837_v39 = vadd.f32 %v2828_v32, %v8419_v36  ;;  %v2789_v43 = vpop.f32.mrb[45].mxu0  ;;  %v2830_v44 = vpop.f32.mrb[45].mxu1 }
 0x858   :  { %v2836_v29 = vadd.f32 %v2789_v43, %v8420_v42  ;;  %v2838_v47 = vadd.f32 %v2830_v44, %v8421_v46  ;;  %v2791_v50 = vpop.f32.mrb[46].mxu0  ;;  %v2832_v51 = vpop.f32.mrb[46].mxu1 }
 0x859   :  { %v6097_v53 = vmul.f32 -1.442695, %v2835_v35  ;;  %v2792_v52 = vpop.f32.mrb[47].mxu0  ;;  %v2833_v0 = vpop.f32.mrb[47].mxu1 }
 0x85a   :  { %v6098_v54 = vmul.f32 -1.442695, %v2836_v29  ;;  %v6099_v61 = vmul.f32 -1.442695, %v2838_v47 }
 0x85b   :  { %6776 = vpow2.f32 %v6097_v53 }
 0x85c   :  { %6778 = vpow2.f32 %v6098_v54 }
 0x85d   :  { %6780 = vpow2.f32 %v6099_v61 }
 0x85e   :  { %6782 = vtanh.f32 %v2837_v39 }
 0x865   :  { %v6777_v2 = vpop.eup %6776 }
 0x866   :  { %v6779_v3 = vpop.eup %6778  ;;  %v2842_v6 = vadd.f32 1.0, %v6777_v2 }
 0x867   :  { %v2848_v7 = vadd.f32 1.0, %v6779_v3  ;;  %v6781_v8 = vpop.eup %6780 }
 0x868   :  { %6784 = vrcp.f32 %v2842_v6  ;;  %v6783_v10 = vpop.eup %6782  ;;  %v2855_v1 = vadd.f32 1.0, %v6781_v8 }
 0x869   :  { %6786 = vrcp.f32 %v2848_v7 }
 0x86a   :  { %6788 = vrcp.f32 %v2855_v1  ;;  %v8437_v1 = vmov 0.0|0.0  }
 0x872   :  { %v6785_v62 = vpop.eup %6784 }
 0x873   :  { %v6787_v16 = vpop.eup %6786  ;;  %v2860_v20 = vmul.f32 %v6785_v62, %v6783_v10 }
 0x874   :  { %v2859_v17 = vmul.f32 %v6787_v16, %v7744_v58  ;;  %v6789_v52 = vpop.eup %6788 }
 0x876   :  { %v7868_v32 = vpop.f32.mrb[48].mxu0  ;;  %v7870_v57 = vpop.f32.mrb[48].mxu1  ;;  %v2861_v35 = vadd.f32 %v2860_v20, %v2859_v17  ;;  %v2914_v17 = vld [vmem:[%s8363_s7] sm:$0xf] }
 0x877   :  { %v7872_v36 = vpop.f32.mrb[49].mxu0  ;;  %v7874_v39 = vpop.f32.mrb[49].mxu1 }
 0x878   :  { %v7876_v43 = vpop.f32.mrb[50].mxu0  ;;  %v7878_v44 = vpop.f32.mrb[50].mxu1  ;;  %6790 = vtanh.f32 %v2861_v35 }
 0x879   :  { %v7880_v42 = vpop.f32.mrb[51].mxu0  ;;  %v7882_v29 = vpop.f32.mrb[51].mxu1 }
 0x87e   :  { %v7884_v58 = vpop.f32.mrb[52].mxu0  ;;  %v7886_v46 = vpop.f32.mrb[52].mxu1 }
 0x87f   :  { %8422 = vst [vmem:[#allocation17_spill] sm:$0xff] %v7886_v46  ;;  %v7888_v47 = vpop.f32.mrb[53].mxu0  ;;  %v7890_v50 = vpop.f32.mrb[53].mxu1 }
 0x880   :  { %8423 = vst [vmem:[#allocation15_spill] sm:$0xff] %v7888_v47  ;;  %8424 = vst [vmem:[#allocation18_spill] sm:$0xff] %v7890_v50  ;;  %v7892_v51 = vpop.f32.mrb[54].mxu0  ;;  %v7894_v53 = vpop.f32.mrb[54].mxu1 }
 0x881   :  { %8425 = vst [vmem:[#allocation16_spill] sm:$0xff] %v7892_v51  ;;  %8426 = vst [vmem:[#allocation19_spill] sm:$0xff] %v7894_v53  ;;  %v7896_v0 = vpop.f32.mrb[55].mxu0  ;;  %v7898_v54 = vpop.f32.mrb[55].mxu1 }
 0x882   :  { %8427 = vst [vmem:[#allocation20_spill] sm:$0xff] %v7896_v0  ;;  %8428 = vst [vmem:[#allocation23_spill] sm:$0xff] %v7898_v54  ;;  %v6791_v61 = vpop.eup %6790 }
 0x883   :  { %v2863_v2 = vmul.f32 %v6791_v61, %v6789_v52 }
 0x885   :  { %v2881_v3 = vpack.c.bf16 %v2863_v2, %v7747_v24 }
 0x886   :  { %v7901_v6 = vpop.f32.mrb[56].mxu0  ;;  %v7903_v7 = vpop.f32.mrb[56].mxu1 }
 0x887   :  { %8429 = vst [vmem:[#allocation21_spill] sm:$0xff] %v7901_v6  ;;  %8430 = vst [vmem:[#allocation25_spill] sm:$0xff] %v7903_v7  ;;  %v7905_v8 = vpop.f32.mrb[57].mxu0  ;;  %v7907_v10 = vpop.f32.mrb[57].mxu1  ;;  %3159 = vmatmul.mubr.bf16.gmra.mrb[60].mxu0 %v2881_v3  ;;  %3232 = vmatmul.mubr.bf16.gmra.mrb[60].mxu1 %v2881_v3 }
 0x888   :  { %8431 = vst [vmem:[#allocation22_spill] sm:$0xff] %v7905_v8  ;;  %8432 = vst [vmem:[#allocation26_spill] sm:$0xff] %v7907_v10  ;;  %v7909_v62 = vpop.f32.mrb[58].mxu0  ;;  %v7911_v16 = vpop.f32.mrb[58].mxu1  ;;  %3504 = vmatprep.mubr.bf16.mxu0 %v8400_v48  ;;  %3545 = vmatprep.mubr.bf16.mxu1 %v8400_v48 }
 0x889   :  { %8433 = vst [vmem:[#allocation24_spill] sm:$0xff] %v7909_v62  ;;  %8434 = vst [vmem:[#allocation27_spill] sm:$0xff] %v7911_v16  ;;  %v7915_v20 = vpop.f32.mrb[59].mxu0  ;;  %v7917_v24 = vpop.f32.mrb[59].mxu1 }
 0x88a   :  { %8435 = vst [vmem:[#allocation28_spill] sm:$0xff] %v7915_v20  ;;  %8436 = vst [vmem:[#allocation31_spill] sm:$0xff] %v7917_v24  ;;  %v8444_v24 = vld [vmem:[#allocation14_spill] sm:$0xff] }
 0x88b   :  { %v8445_v20 = vsub.s32 0, %v8444_v24  ;;  %v8446_v62 = vsub.s32 2, %v8444_v24 }
 0x88d   :  { %v7972_v16 = vrot.slane %v2914_v17, %v8445_v20  ;;  %v7976_v10 = vrot.slane %v2914_v17, %v8446_v62 }
 0x88f   :  { %3505 = vmatmul.mubr.bf16.vlgmr.msra.gmra.mrb[64].mxu0 %v8437_v1  ;;  %3546 = vmatmul.mubr.bf16.vlgmr.msra.gmra.mrb[64].mxu1 %v8437_v1  ;;  %v3131_v20 = vadd.f32 %v7868_v32, %v7972_v16 }
 0x890   :  { %3784 = vmatpush1.bf16.msra.mxu0 %v7769_v30  ;;  %3825 = vmatpush1.bf16.msra.mxu1 %v7771_v34 }
 0x891   :  { %3785 = vmatprep.subr.bf16.mxu0 %v7777_v45  ;;  %3826 = vmatprep.subr.bf16.mxu1 %v7779_v55 }
 0x892   :  { %3815 = vmatprep.mubr.bf16.mxu0 %v8400_v48  ;;  %3856 = vmatprep.mubr.bf16.mxu1 %v8400_v48 }
 0x894   :  { %3786 = vmatpush1.bf16.msra.mxu0 %v7781_v11  ;;  %3827 = vmatpush1.bf16.msra.mxu1 %v7783_v12 }
 0x895   :  { %3787 = vmatprep.subr.bf16.mxu0 %v7789_v18  ;;  %3828 = vmatprep.subr.bf16.mxu1 %v7791_v15 }
 0x898   :  { %3788 = vmatpush1.bf16.msra.mxu0 %v7793_v14  ;;  %3829 = vmatpush1.bf16.msra.mxu1 %v7795_v26 }
 0x899   :  { %3789 = vmatprep.subr.bf16.mxu0 %v7803_v4  ;;  %3830 = vmatprep.subr.bf16.mxu1 %v7807_v49 }
 0x89c   :  { %3790 = vmatpush1.bf16.msra.mxu0 %v7801_v27  ;;  %3831 = vmatpush1.bf16.msra.mxu1 %v7805_v41 }
 0x89d   :  { %3791 = vmatprep.subr.bf16.mxu0 %v7813_v9  ;;  %3832 = vmatprep.subr.bf16.mxu1 %v7815_v13 }
 0x8a0   :  { %3792 = vmatpush1.bf16.msra.mxu0 %v7817_v60  ;;  %3833 = vmatpush1.bf16.msra.mxu1 %v7819_v37 }
 0x8a1   :  { %3793 = vmatprep.subr.bf16.mxu0 %v7827_v22  ;;  %3834 = vmatprep.subr.bf16.mxu1 %v7831_v40 }
 0x8a4   :  { %3794 = vmatpush1.bf16.msra.mxu0 %v7825_v21  ;;  %3835 = vmatpush1.bf16.msra.mxu1 %v7829_v23 }
 0x8a5   :  { %3795 = vmatprep.subr.bf16.mxu0 %v7837_v56  ;;  %3836 = vmatprep.subr.bf16.mxu1 %v7839_v59 }
 0x8a8   :  { %3796 = vmatpush1.bf16.msra.mxu0 %v7841_v38  ;;  %3837 = vmatpush1.bf16.msra.mxu1 %v7843_v25 }
 0x8a9   :  { %3797 = vmatprep.subr.bf16.mxu0 %v7851_v31  ;;  %3838 = vmatprep.subr.bf16.mxu1 %v7855_v63 }
 0x8ac   :  { %3798 = vmatpush1.bf16.msra.mxu0 %v7849_v28  ;;  %3839 = vmatpush1.bf16.msra.mxu1 %v7853_v33 }
 0x8ad   :  { %4094 = vmatprep.subr.bf16.mxu0 %v7765_v19  ;;  %4135 = vmatprep.subr.bf16.mxu1 %v7767_v5 }
 0x95a   :  { %v7958_v35 = vpop.f32.mrb[60].mxu0  ;;  %v7960_v52 = vpop.f32.mrb[60].mxu1 }
 0x95b   :  { %8438 = vst [vmem:[#allocation29_spill] sm:$0xff] %v7958_v35  ;;  %8439 = vst [vmem:[#allocation33_spill] sm:$0xff] %v7960_v52  ;;  %v7962_v61 = vpop.f32.mrb[61].mxu0  ;;  %v7964_v2 = vpop.f32.mrb[61].mxu1 }
 0x95c   :  { %8440 = vst [vmem:[#allocation30_spill] sm:$0xff] %v7962_v61  ;;  %8441 = vst [vmem:[#allocation34_spill] sm:$0xff] %v7964_v2  ;;  %v7966_v3 = vpop.f32.mrb[62].mxu0  ;;  %v7968_v1 = vpop.f32.mrb[62].mxu1  ;;  %v8449_v61 = vsub.s32 1, %v8444_v24 }
 0x95d   :  { %8442 = vst [vmem:[#allocation32_spill] sm:$0xff] %v7966_v3  ;;  %8443 = vst [vmem:[#allocation35_spill] sm:$0xff] %v7968_v1  ;;  %v7978_v8 = vpop.f32.mrb[63].mxu0  ;;  %v7980_v35 = vpop.f32.mrb[63].mxu1  ;;  %v8450_v3 = vsub.s32 3, %v8444_v24  ;;  %v3204_v1 = vadd.f32 %v7870_v57, %v7976_v10 }
 0x95e   :  { %8447 = vst [vmem:[#allocation14_spill] sm:$0xff] %v7978_v8  ;;  %8448 = vst [vmem:[#allocation36_spill] sm:$0xff] %v7980_v35  ;;  %v7984_v52 = vrot.slane %v2914_v17, %v8449_v61 }
 0x95f   :  { %v7988_v2 = vrot.slane %v2914_v17, %v8450_v3 }
 0x960   :  { %v3133_v62 = vadd.f32 %v7872_v36, %v7984_v52 }
 0x961   :  { %v3206_v35 = vadd.f32 %v7874_v39, %v7988_v2 }
 0x962   :  { %v3506_v8 = vpop.f32.mrb[64].mxu0  ;;  %v3547_v7 = vpop.f32.mrb[64].mxu1 }
 0x963   :  { %v3554_v61 = vadd.f32 %v3506_v8, %v3131_v20  ;;  %v3556_v6 = vadd.f32 %v3547_v7, %v3204_v1  ;;  %v3508_v54 = vpop.f32.mrb[65].mxu0  ;;  %v3549_v24 = vpop.f32.mrb[65].mxu1 }
 0x964   :  { %v3555_v17 = vadd.f32 %v3508_v54, %v3133_v62  ;;  %v3557_v3 = vadd.f32 %v3549_v24, %v3206_v35  ;;  %v3510_v0 = vpop.f32.mrb[66].mxu0  ;;  %v3551_v53 = vpop.f32.mrb[66].mxu1  ;;  %v3137_v24 = vadd.f32 %v7880_v42, %v7984_v52 }
 0x965   :  { %v6164_v32 = vmul.f32 -1.442695, %v3554_v61  ;;  %v3511_v51 = vpop.f32.mrb[67].mxu0  ;;  %v3552_v50 = vpop.f32.mrb[67].mxu1 }
 0x966   :  { %v6165_v57 = vmul.f32 -1.442695, %v3555_v17  ;;  %v6166_v36 = vmul.f32 -1.442695, %v3557_v3  ;;  %v3210_v17 = vadd.f32 %v7882_v29, %v7988_v2 }
 0x967   :  { %6792 = vpow2.f32 %v6164_v32 }
 0x968   :  { %6794 = vpow2.f32 %v6165_v57 }
 0x969   :  { %6796 = vpow2.f32 %v6166_v36 }
 0x96a   :  { %6798 = vtanh.f32 %v3556_v6  ;;  %v3208_v6 = vadd.f32 %v7878_v44, %v7976_v10 }
 0x971   :  { %v6793_v47 = vpop.eup %6792 }
 0x972   :  { %v6795_v46 = vpop.eup %6794  ;;  %v3561_v39 = vadd.f32 1.0, %v6793_v47 }
 0x973   :  { %v3567_v8 = vadd.f32 1.0, %v6795_v46  ;;  %v6797_v7 = vpop.eup %6796  ;;  %v3135_v46 = vadd.f32 %v7876_v43, %v7972_v16 }
 0x974   :  { %6800 = vrcp.f32 %v3561_v39  ;;  %v6799_v54 = vpop.eup %6798  ;;  %v3574_v1 = vadd.f32 1.0, %v6797_v7 }
 0x975   :  { %6802 = vrcp.f32 %v3567_v8 }
 0x976   :  { %6804 = vrcp.f32 %v3574_v1 }
 0x97e   :  { %v6801_v35 = vpop.eup %6800 }
 0x97f   :  { %v6803_v0 = vpop.eup %6802  ;;  %v3579_v53 = vmul.f32 %v6801_v35, %v6799_v54 }
 0x980   :  { %v3578_v51 = vmul.f32 0.0, %v6803_v0  ;;  %v6805_v20 = vpop.eup %6804 }
 0x982   :  { %v7998_v50 = vadd.f32 %v3579_v53, %v3578_v51 }
 0x984   :  { %6806 = vtanh.f32 %v7998_v50 }
 0x98e   :  { %v6807_v62 = vpop.eup %6806 }
 0x98f   :  { %v3582_v47 = vmul.f32 %v6807_v62, %v6805_v20 }
 0x991   :  { %v3590_v61 = vpack.c.bf16 %v3582_v47, %v3582_v47 }
 0x993   :  { %3816 = vmatmul.mubr.bf16.vlgmr.msra.gmra.mrb[68].mxu0 %v3590_v61  ;;  %3857 = vmatmul.mubr.bf16.vlgmr.msra.gmra.mrb[68].mxu1 %v3590_v61 }
 0x994   :  { %4095 = vmatpush1.bf16.msra.mxu0 %v7769_v30  ;;  %4136 = vmatpush1.bf16.msra.mxu1 %v7771_v34 }
 0x995   :  { %4096 = vmatprep.subr.bf16.mxu0 %v7777_v45  ;;  %4137 = vmatprep.subr.bf16.mxu1 %v7779_v55 }
 0x996   :  { %4126 = vmatprep.mubr.bf16.mxu0 %v8400_v48  ;;  %4167 = vmatprep.mubr.bf16.mxu1 %v8400_v48 }
 0x998   :  { %4097 = vmatpush1.bf16.msra.mxu0 %v7781_v11  ;;  %4138 = vmatpush1.bf16.msra.mxu1 %v7783_v12 }
 0x999   :  { %4098 = vmatprep.subr.bf16.mxu0 %v7789_v18  ;;  %4139 = vmatprep.subr.bf16.mxu1 %v7791_v15 }
 0x99c   :  { %4099 = vmatpush1.bf16.msra.mxu0 %v7793_v14  ;;  %4140 = vmatpush1.bf16.msra.mxu1 %v7795_v26 }
 0x99d   :  { %4100 = vmatprep.subr.bf16.mxu0 %v7803_v4  ;;  %4141 = vmatprep.subr.bf16.mxu1 %v7807_v49 }
 0x9a0   :  { %4101 = vmatpush1.bf16.msra.mxu0 %v7801_v27  ;;  %4142 = vmatpush1.bf16.msra.mxu1 %v7805_v41 }
 0x9a1   :  { %4102 = vmatprep.subr.bf16.mxu0 %v7813_v9  ;;  %4143 = vmatprep.subr.bf16.mxu1 %v7815_v13 }
 0x9a4   :  { %4103 = vmatpush1.bf16.msra.mxu0 %v7817_v60  ;;  %4144 = vmatpush1.bf16.msra.mxu1 %v7819_v37 }
 0x9a5   :  { %4104 = vmatprep.subr.bf16.mxu0 %v7827_v22  ;;  %4145 = vmatprep.subr.bf16.mxu1 %v7831_v40 }
 0x9a8   :  { %4105 = vmatpush1.bf16.msra.mxu0 %v7825_v21  ;;  %4146 = vmatpush1.bf16.msra.mxu1 %v7829_v23 }
 0x9a9   :  { %4106 = vmatprep.subr.bf16.mxu0 %v7837_v56  ;;  %4147 = vmatprep.subr.bf16.mxu1 %v7839_v59 }
 0x9ac   :  { %4107 = vmatpush1.bf16.msra.mxu0 %v7841_v38  ;;  %4148 = vmatpush1.bf16.msra.mxu1 %v7843_v25 }
 0x9ad   :  { %4108 = vmatprep.subr.bf16.mxu0 %v7851_v31  ;;  %4149 = vmatprep.subr.bf16.mxu1 %v7855_v63 }
 0x9b0   :  { %4109 = vmatpush1.bf16.msra.mxu0 %v7849_v28  ;;  %4150 = vmatpush1.bf16.msra.mxu1 %v7853_v33 }
 0x9b1   :  { %4405 = vmatprep.subr.bf16.mxu0 %v7765_v19  ;;  %4446 = vmatprep.subr.bf16.mxu1 %v7767_v5 }
 0xa66   :  { %v3817_v3 = vpop.f32.mrb[68].mxu0  ;;  %v3858_v32 = vpop.f32.mrb[68].mxu1 }
 0xa67   :  { %v3865_v57 = vadd.f32 %v3817_v3, %v3135_v46  ;;  %v3867_v36 = vadd.f32 %v3858_v32, %v3208_v6  ;;  %v3819_v39 = vpop.f32.mrb[69].mxu0  ;;  %v3860_v19 = vpop.f32.mrb[69].mxu1 }
 0xa68   :  { %v3866_v8 = vadd.f32 %v3819_v39, %v3137_v24  ;;  %v3868_v5 = vadd.f32 %v3860_v19, %v3210_v17  ;;  %v3821_v7 = vpop.f32.mrb[70].mxu0  ;;  %v3862_v54 = vpop.f32.mrb[70].mxu1 }
 0xa69   :  { %v6199_v43 = vmul.f32 -1.442695, %v3865_v57  ;;  %v3822_v35 = vpop.f32.mrb[71].mxu0  ;;  %v3863_v0 = vpop.f32.mrb[71].mxu1 }
 0xa6a   :  { %v6200_v44 = vmul.f32 -1.442695, %v3866_v8  ;;  %v6201_v42 = vmul.f32 -1.442695, %v3868_v5  ;;  %v8095_v35 = vld [vmem:[#allocation11 + $0xc] ss:$16 sps:$4 sm:$0xff]  }
 0xa6b   :  { %6808 = vpow2.f32 %v6199_v43  ;;  %v8093_v43 = vld [vmem:[#allocation11 + $0x4] ss:$16 sps:$4 sm:$0xff]   ;;  %v8097_v0 = vld [vmem:[#allocation11] ss:$16 sps:$4 sm:$0xff]  }
 0xa6c   :  { %6810 = vpow2.f32 %v6200_v44  ;;  %v8099_v44 = vld [vmem:[#allocation11 + $0x8] ss:$16 sps:$4 sm:$0xff]  }
 0xa6d   :  { %6812 = vpow2.f32 %v6201_v42  ;;  %v8105_v42 = vld [vmem:[#allocation11 + $0x24] ss:$16 sps:$4 sm:$0xff]  }
 0xa6e   :  { %6814 = vtanh.f32 %v3867_v36 }
 0xa75   :  { %v6809_v53 = vpop.eup %6808 }
 0xa76   :  { %v6811_v1 = vpop.eup %6810  ;;  %v3872_v29 = vadd.f32 1.0, %v6809_v53  ;;  %v8107_v53 = vld [vmem:[#allocation11 + $0x2c] ss:$16 sps:$4 sm:$0xff]  }
 0xa77   :  { %v3878_v51 = vadd.f32 1.0, %v6811_v1  ;;  %v6813_v20 = vpop.eup %6812  ;;  %v8109_v1 = vld [vmem:[#allocation11 + $0x20] ss:$16 sps:$4 sm:$0xff]  }
 0xa78   :  { %6816 = vrcp.f32 %v3872_v29  ;;  %v6815_v62 = vpop.eup %6814  ;;  %v3885_v6 = vadd.f32 1.0, %v6813_v20  ;;  %v8111_v29 = vld [vmem:[#allocation11 + $0x28] ss:$16 sps:$4 sm:$0xff]   ;;  %v8119_v20 = vld [vmem:[#allocation11 + $0x4c] ss:$16 sps:$4 sm:$0xff]  }
 0xa79   :  { %6818 = vrcp.f32 %v3878_v51  ;;  %v8117_v51 = vld [vmem:[#allocation11 + $0x44] ss:$16 sps:$4 sm:$0xff]  }
 0xa7a   :  { %6820 = vrcp.f32 %v3885_v6  ;;  %v8133_v6 = vld [vmem:[#allocation11 + $0x60] ss:$16 sps:$4 sm:$0xff]  }
 0xa82   :  { %v6817_v47 = vpop.eup %6816 }
 0xa83   :  { %v6819_v61 = vpop.eup %6818  ;;  %v3890_v46 = vmul.f32 %v6817_v47, %v6815_v62  ;;  %v8121_v62 = vld [vmem:[#allocation11 + $0x40] ss:$16 sps:$4 sm:$0xff]   ;;  %v8123_v47 = vld [vmem:[#allocation11 + $0x48] ss:$16 sps:$4 sm:$0xff]  }
 0xa84   :  { %v3889_v24 = vmul.f32 %v6819_v61, %v7998_v50  ;;  %v6821_v3 = vpop.eup %6820  ;;  %v8129_v61 = vld [vmem:[#allocation11 + $0x64] ss:$16 sps:$4 sm:$0xff]  }
 0xa86   :  { %v8044_v17 = vadd.f32 %v3890_v46, %v3889_v24  ;;  %v8131_v46 = vld [vmem:[#allocation11 + $0x6c] ss:$16 sps:$4 sm:$0xff]   ;;  %v8135_v24 = vld [vmem:[#allocation11 + $0x68] ss:$16 sps:$4 sm:$0xff]  }
 0xa88   :  { %6822 = vtanh.f32 %v8044_v17 }
 0xa92   :  { %v6823_v32 = vpop.eup %6822 }
 0xa93   :  { %v3893_v57 = vmul.f32 %v6823_v32, %v6821_v3  ;;  %v8143_v3 = vld [vmem:[#allocation11 + $0x84] ss:$16 sps:$4 sm:$0xff]   ;;  %v8145_v32 = vld [vmem:[#allocation11 + $0x88] ss:$16 sps:$4 sm:$0xff]  }
 0xa95   :  { %v3901_v36 = vpack.c.bf16 %v3893_v57, %v3893_v57  ;;  %v8147_v57 = vld [vmem:[#allocation11 + $0x8c] ss:$16 sps:$4 sm:$0xff]  }
 0xa97   :  { %4127 = vmatmul.mubr.bf16.vlgmr.msra.gmra.mrb[72].mxu0 %v3901_v36  ;;  %4168 = vmatmul.mubr.bf16.vlgmr.msra.gmra.mrb[72].mxu1 %v3901_v36  ;;  %v8149_v36 = vld [vmem:[#allocation11 + $0xa4] ss:$16 sps:$4 sm:$0xff]  }
 0xa98   :  { %4406 = vmatpush1.bf16.msra.mxu0 %v7769_v30  ;;  %4447 = vmatpush1.bf16.msra.mxu1 %v7771_v34  ;;  %v3141_v30 = vadd.f32 %v7884_v58, %v7972_v16  ;;  %v8451_v34 = vld [vmem:[#allocation17_spill] sm:$0xff] }
 0xa99   :  { %4407 = vmatprep.subr.bf16.mxu0 %v7777_v45  ;;  %4448 = vmatprep.subr.bf16.mxu1 %v7779_v55  ;;  %v3214_v45 = vadd.f32 %v8451_v34, %v7976_v10  ;;  %v8452_v55 = vld [vmem:[#allocation15_spill] sm:$0xff]  ;;  %v8157_v34 = vld [vmem:[#allocation11 + $0xa0] ss:$16 sps:$4 sm:$0xff]  }
 0xa9a   :  { %4437 = vmatprep.mubr.bf16.mxu0 %v8400_v48  ;;  %4478 = vmatprep.mubr.bf16.mxu1 %v8400_v48 }
 0xa9c   :  { %4408 = vmatpush1.bf16.msra.mxu0 %v7781_v11  ;;  %4449 = vmatpush1.bf16.msra.mxu1 %v7783_v12  ;;  %v3143_v11 = vadd.f32 %v8452_v55, %v7984_v52  ;;  %v8453_v12 = vld [vmem:[#allocation18_spill] sm:$0xff] }
 0xa9d   :  { %4409 = vmatprep.subr.bf16.mxu0 %v7789_v18  ;;  %4450 = vmatprep.subr.bf16.mxu1 %v7791_v15  ;;  %v3216_v18 = vadd.f32 %v8453_v12, %v7988_v2  ;;  %v8163_v55 = vld [vmem:[#allocation11 + $0xc4] ss:$16 sps:$4 sm:$0xff]   ;;  %v8169_v12 = vld [vmem:[#allocation11 + $0xc0] ss:$16 sps:$4 sm:$0xff]  }
 0xaa0   :  { %4410 = vmatpush1.bf16.msra.mxu0 %v7793_v14  ;;  %4451 = vmatpush1.bf16.msra.mxu1 %v7795_v26 }
 0xaa1   :  { %4411 = vmatprep.subr.bf16.mxu0 %v7803_v4  ;;  %4452 = vmatprep.subr.bf16.mxu1 %v7807_v49 }
 0xaa4   :  { %4412 = vmatpush1.bf16.msra.mxu0 %v7801_v27  ;;  %4453 = vmatpush1.bf16.msra.mxu1 %v7805_v41 }
 0xaa5   :  { %4413 = vmatprep.subr.bf16.mxu0 %v7813_v9  ;;  %4454 = vmatprep.subr.bf16.mxu1 %v7815_v13 }
 0xaa8   :  { %4414 = vmatpush1.bf16.msra.mxu0 %v7817_v60  ;;  %4455 = vmatpush1.bf16.msra.mxu1 %v7819_v37 }
 0xaa9   :  { %4415 = vmatprep.subr.bf16.mxu0 %v7827_v22  ;;  %4456 = vmatprep.subr.bf16.mxu1 %v7831_v40 }
 0xaac   :  { %4416 = vmatpush1.bf16.msra.mxu0 %v7825_v21  ;;  %4457 = vmatpush1.bf16.msra.mxu1 %v7829_v23 }
 0xaad   :  { %4417 = vmatprep.subr.bf16.mxu0 %v7837_v56  ;;  %4458 = vmatprep.subr.bf16.mxu1 %v7839_v59 }
 0xab0   :  { %4418 = vmatpush1.bf16.msra.mxu0 %v7841_v38  ;;  %4459 = vmatpush1.bf16.msra.mxu1 %v7843_v25 }
 0xab1   :  { %4419 = vmatprep.subr.bf16.mxu0 %v7851_v31  ;;  %4460 = vmatprep.subr.bf16.mxu1 %v7855_v63 }
 0xab4   :  { %4420 = vmatpush1.bf16.msra.mxu0 %v7849_v28  ;;  %4461 = vmatpush1.bf16.msra.mxu1 %v7853_v33 }
 0xab5   :  { %4716 = vmatprep.subr.bf16.mxu0 %v8093_v43  ;;  %4757 = vmatprep.subr.bf16.mxu1 %v8095_v35 }
 0xb6a   :  { %v4128_v15 = vpop.f32.mrb[72].mxu0  ;;  %v4169_v14 = vpop.f32.mrb[72].mxu1 }
 0xb6b   :  { %v4176_v26 = vadd.f32 %v4128_v15, %v3141_v30  ;;  %v4178_v27 = vadd.f32 %v4169_v14, %v3214_v45  ;;  %v4130_v4 = vpop.f32.mrb[73].mxu0  ;;  %v4171_v41 = vpop.f32.mrb[73].mxu1  ;;  %v8152_v30 = vld [vmem:[#allocation11 + $0xac] ss:$16 sps:$4 sm:$0xff]   ;;  %v8159_v45 = vld [vmem:[#allocation11 + $0xa8] ss:$16 sps:$4 sm:$0xff]  }
 0xb6c   :  { %v4177_v49 = vadd.f32 %v4130_v4, %v3143_v11  ;;  %v4179_v9 = vadd.f32 %v4171_v41, %v3216_v18  ;;  %v4132_v13 = vpop.f32.mrb[74].mxu0  ;;  %v4173_v60 = vpop.f32.mrb[74].mxu1  ;;  %v8165_v11 = vld [vmem:[#allocation11 + $0xcc] ss:$16 sps:$4 sm:$0xff]   ;;  %v8171_v18 = vld [vmem:[#allocation11 + $0xc8] ss:$16 sps:$4 sm:$0xff]  }
 0xb6d   :  { %v6234_v37 = vmul.f32 -1.442695, %v4176_v26  ;;  %v4133_v21 = vpop.f32.mrb[75].mxu0  ;;  %v4174_v22 = vpop.f32.mrb[75].mxu1  ;;  %v8175_v15 = vld [vmem:[#allocation11 + $0xe4] ss:$16 sps:$4 sm:$0xff]  }
 0xb6e   :  { %v6235_v23 = vmul.f32 -1.442695, %v4177_v49  ;;  %v6236_v40 = vmul.f32 -1.442695, %v4179_v9  ;;  %v8177_v14 = vld [vmem:[#allocation11 + $0xec] ss:$16 sps:$4 sm:$0xff]  }
 0xb6f   :  { %6824 = vpow2.f32 %v6234_v37  ;;  %v8181_v26 = vld [vmem:[#allocation11 + $0xe0] ss:$16 sps:$4 sm:$0xff]   ;;  %v8455_v49 = vld [vmem:[#allocation19_spill] sm:$0xff] }
 0xb70   :  { %6826 = vpow2.f32 %v6235_v23  ;;  %v8454_v4 = vld [vmem:[#allocation16_spill] sm:$0xff]  ;;  %v3218_v9 = vadd.f32 %v8455_v49, %v7976_v10  ;;  %v8457_v37 = vld [vmem:[#allocation23_spill] sm:$0xff] }
 0xb71   :  { %6828 = vpow2.f32 %v6236_v40  ;;  %v3145_v41 = vadd.f32 %v8454_v4, %v7972_v16  ;;  %v8456_v13 = vld [vmem:[#allocation20_spill] sm:$0xff]  ;;  %v3220_v21 = vadd.f32 %v8457_v37, %v7988_v2 }
 0xb72   :  { %6830 = vtanh.f32 %v4178_v27  ;;  %v8183_v27 = vld [vmem:[#allocation11 + $0xe8] ss:$16 sps:$4 sm:$0xff]   ;;  %v3147_v60 = vadd.f32 %v8456_v13, %v7984_v52 }
 0xb79   :  { %v6825_v56 = vpop.eup %6824 }
 0xb7a   :  { %v6827_v59 = vpop.eup %6826  ;;  %v4183_v38 = vadd.f32 1.0, %v6825_v56 }
 0xb7b   :  { %v4189_v25 = vadd.f32 1.0, %v6827_v59  ;;  %v6829_v28 = vpop.eup %6828 }
 0xb7c   :  { %6832 = vrcp.f32 %v4183_v38  ;;  %v6831_v31 = vpop.eup %6830  ;;  %v4196_v50 = vadd.f32 1.0, %v6829_v28 }
 0xb7d   :  { %6834 = vrcp.f32 %v4189_v25 }
 0xb7e   :  { %6836 = vrcp.f32 %v4196_v50 }
 0xb86   :  { %v6833_v33 = vpop.eup %6832 }
 0xb87   :  { %v6835_v63 = vpop.eup %6834  ;;  %v4201_v58 = vmul.f32 %v6833_v33, %v6831_v31 }
 0xb88   :  { %v4200_v39 = vmul.f32 %v6835_v63, %v8044_v17  ;;  %v6837_v8 = vpop.eup %6836  ;;  %v8141_v17 = vld [vmem:[#allocation11 + $0x80] ss:$16 sps:$4 sm:$0xff]  }
 0xb8a   :  { %v8088_v19 = vadd.f32 %v4201_v58, %v4200_v39 }
 0xb8c   :  { %6838 = vtanh.f32 %v8088_v19 }
 0xb96   :  { %v6839_v5 = vpop.eup %6838 }
 0xb97   :  { %v4204_v7 = vmul.f32 %v6839_v5, %v6837_v8 }
 0xb99   :  { %v4212_v54 = vpack.c.bf16 %v4204_v7, %v4204_v7 }
 0xb9b   :  { %4438 = vmatmul.mubr.bf16.vlgmr.msra.gmra.mrb[76].mxu0 %v4212_v54  ;;  %4479 = vmatmul.mubr.bf16.vlgmr.msra.gmra.mrb[76].mxu1 %v4212_v54 }
 0xb9c   :  { %4748 = vmatprep.mubr.bf16.mxu0 %v8400_v48  ;;  %4789 = vmatprep.mubr.bf16.mxu1 %v8400_v48 }
 0xb9d   :  { %4717 = vmatpush1.bf16.msra.mxu0 %v8097_v0  ;;  %4758 = vmatpush1.bf16.msra.mxu1 %v8099_v44 }
 0xb9e   :  { %4718 = vmatprep.subr.bf16.mxu0 %v8105_v42  ;;  %4759 = vmatprep.subr.bf16.mxu1 %v8107_v53 }
 0xba1   :  { %4719 = vmatpush1.bf16.msra.mxu0 %v8109_v1  ;;  %4760 = vmatpush1.bf16.msra.mxu1 %v8111_v29 }
 0xba2   :  { %4720 = vmatprep.subr.bf16.mxu0 %v8117_v51  ;;  %4761 = vmatprep.subr.bf16.mxu1 %v8119_v20 }
 0xba5   :  { %4721 = vmatpush1.bf16.msra.mxu0 %v8121_v62  ;;  %4762 = vmatpush1.bf16.msra.mxu1 %v8123_v47 }
 0xba6   :  { %4722 = vmatprep.subr.bf16.mxu0 %v8129_v61  ;;  %4763 = vmatprep.subr.bf16.mxu1 %v8131_v46 }
 0xba9   :  { %4723 = vmatpush1.bf16.msra.mxu0 %v8133_v6  ;;  %4764 = vmatpush1.bf16.msra.mxu1 %v8135_v24 }
 0xbaa   :  { %4724 = vmatprep.subr.bf16.mxu0 %v8143_v3  ;;  %4765 = vmatprep.subr.bf16.mxu1 %v8147_v57 }
 0xbad   :  { %4725 = vmatpush1.bf16.msra.mxu0 %v8141_v17  ;;  %4766 = vmatpush1.bf16.msra.mxu1 %v8145_v32 }
 0xbae   :  { %4726 = vmatprep.subr.bf16.mxu0 %v8149_v36  ;;  %4767 = vmatprep.subr.bf16.mxu1 %v8152_v30 }
 0xbb1   :  { %4727 = vmatpush1.bf16.msra.mxu0 %v8157_v34  ;;  %4768 = vmatpush1.bf16.msra.mxu1 %v8159_v45 }
 0xbb2   :  { %4728 = vmatprep.subr.bf16.mxu0 %v8163_v55  ;;  %4769 = vmatprep.subr.bf16.mxu1 %v8165_v11 }
 0xbb5   :  { %4729 = vmatpush1.bf16.msra.mxu0 %v8169_v12  ;;  %4770 = vmatpush1.bf16.msra.mxu1 %v8171_v18 }
 0xbb6   :  { %4730 = vmatprep.subr.bf16.mxu0 %v8175_v15  ;;  %4771 = vmatprep.subr.bf16.mxu1 %v8177_v14 }
 0xbb9   :  { %4731 = vmatpush1.bf16.msra.mxu0 %v8181_v26  ;;  %4772 = vmatpush1.bf16.msra.mxu1 %v8183_v27 }
 0xbba   :  { %5027 = vmatprep.subr.bf16.mxu0 %v8093_v43  ;;  %5068 = vmatprep.subr.bf16.mxu1 %v8095_v35 }
 0xc6e   :  { %v4439_v22 = vpop.f32.mrb[76].mxu0  ;;  %v4480_v23 = vpop.f32.mrb[76].mxu1 }
 0xc6f   :  { %v4487_v40 = vadd.f32 %v4439_v22, %v3145_v41  ;;  %v4489_v56 = vadd.f32 %v4480_v23, %v3218_v9  ;;  %v4441_v59 = vpop.f32.mrb[77].mxu0  ;;  %v4482_v38 = vpop.f32.mrb[77].mxu1 }
 0xc70   :  { %v4488_v25 = vadd.f32 %v4441_v59, %v3147_v60  ;;  %v4490_v28 = vadd.f32 %v4482_v38, %v3220_v21  ;;  %v4443_v31 = vpop.f32.mrb[78].mxu0  ;;  %v4484_v33 = vpop.f32.mrb[78].mxu1 }
 0xc71   :  { %v6269_v63 = vmul.f32 -1.442695, %v4487_v40  ;;  %v4444_v58 = vpop.f32.mrb[79].mxu0  ;;  %v4485_v50 = vpop.f32.mrb[79].mxu1  ;;  %v8460_v31 = vld [vmem:[#allocation22_spill] sm:$0xff] }
 0xc72   :  { %v6270_v39 = vmul.f32 -1.442695, %v4488_v25  ;;  %v6271_v8 = vmul.f32 -1.442695, %v4490_v28  ;;  %v8459_v25 = vld [vmem:[#allocation25_spill] sm:$0xff]  ;;  %v3153_v33 = vadd.f32 %v8460_v31, %v7984_v52 }
 0xc73   :  { %6840 = vpow2.f32 %v6269_v63  ;;  %v3224_v28 = vadd.f32 %v8459_v25, %v7976_v10  ;;  %v8461_v63 = vld [vmem:[#allocation26_spill] sm:$0xff] }
 0xc74   :  { %6842 = vpow2.f32 %v6270_v39  ;;  %v3226_v58 = vadd.f32 %v8461_v63, %v7988_v2 }
 0xc75   :  { %6844 = vpow2.f32 %v6271_v8 }
 0xc76   :  { %6846 = vtanh.f32 %v4489_v56 }
 0xc7d   :  { %v6841_v5 = vpop.eup %6840 }
 0xc7e   :  { %v6843_v7 = vpop.eup %6842  ;;  %v4494_v54 = vadd.f32 1.0, %v6841_v5 }
 0xc7f   :  { %v4500_v4 = vadd.f32 1.0, %v6843_v7  ;;  %v6845_v41 = vpop.eup %6844 }
 0xc80   :  { %6848 = vrcp.f32 %v4494_v54  ;;  %v6847_v49 = vpop.eup %6846  ;;  %v4507_v37 = vadd.f32 1.0, %v6845_v41 }
 0xc81   :  { %6850 = vrcp.f32 %v4500_v4 }
 0xc82   :  { %6852 = vrcp.f32 %v4507_v37 }
 0xc8a   :  { %v6849_v9 = vpop.eup %6848 }
 0xc8b   :  { %v6851_v13 = vpop.eup %6850  ;;  %v4512_v60 = vmul.f32 %v6849_v9, %v6847_v49 }
 0xc8c   :  { %v4511_v21 = vmul.f32 %v6851_v13, %v8088_v19  ;;  %v6853_v23 = vpop.eup %6852  ;;  %v8458_v19 = vld [vmem:[#allocation21_spill] sm:$0xff] }
 0xc8d   :  { %v3151_v38 = vadd.f32 %v8458_v19, %v7972_v16 }
 0xc8e   :  { %v8200_v22 = vadd.f32 %v4512_v60, %v4511_v21 }
 0xc90   :  { %6854 = vtanh.f32 %v8200_v22 }
 0xc9a   :  { %v6855_v40 = vpop.eup %6854 }
 0xc9b   :  { %v4515_v59 = vmul.f32 %v6855_v40, %v6853_v23 }
 0xc9d   :  { %v4523_v56 = vpack.c.bf16 %v4515_v59, %v4515_v59 }
 0xc9f   :  { %4749 = vmatmul.mubr.bf16.vlgmr.msra.gmra.mrb[80].mxu0 %v4523_v56  ;;  %4790 = vmatmul.mubr.bf16.vlgmr.msra.gmra.mrb[80].mxu1 %v4523_v56 }
 0xca0   :  { %5028 = vmatpush1.bf16.msra.mxu0 %v8097_v0  ;;  %5069 = vmatpush1.bf16.msra.mxu1 %v8099_v44 }
 0xca1   :  { %5029 = vmatprep.subr.bf16.mxu0 %v8105_v42  ;;  %5070 = vmatprep.subr.bf16.mxu1 %v8107_v53 }
 0xca2   :  { %5059 = vmatprep.mubr.bf16.mxu0 %v8400_v48  ;;  %5100 = vmatprep.mubr.bf16.mxu1 %v8400_v48 }
 0xca4   :  { %5030 = vmatpush1.bf16.msra.mxu0 %v8109_v1  ;;  %5071 = vmatpush1.bf16.msra.mxu1 %v8111_v29 }
 0xca5   :  { %5031 = vmatprep.subr.bf16.mxu0 %v8117_v51  ;;  %5072 = vmatprep.subr.bf16.mxu1 %v8119_v20 }
 0xca8   :  { %5032 = vmatpush1.bf16.msra.mxu0 %v8121_v62  ;;  %5073 = vmatpush1.bf16.msra.mxu1 %v8123_v47 }
 0xca9   :  { %5033 = vmatprep.subr.bf16.mxu0 %v8129_v61  ;;  %5074 = vmatprep.subr.bf16.mxu1 %v8131_v46 }
 0xcac   :  { %5034 = vmatpush1.bf16.msra.mxu0 %v8133_v6  ;;  %5075 = vmatpush1.bf16.msra.mxu1 %v8135_v24 }
 0xcad   :  { %5035 = vmatprep.subr.bf16.mxu0 %v8143_v3  ;;  %5076 = vmatprep.subr.bf16.mxu1 %v8147_v57 }
 0xcb0   :  { %5036 = vmatpush1.bf16.msra.mxu0 %v8141_v17  ;;  %5077 = vmatpush1.bf16.msra.mxu1 %v8145_v32 }
 0xcb1   :  { %5037 = vmatprep.subr.bf16.mxu0 %v8149_v36  ;;  %5078 = vmatprep.subr.bf16.mxu1 %v8152_v30 }
 0xcb4   :  { %5038 = vmatpush1.bf16.msra.mxu0 %v8157_v34  ;;  %5079 = vmatpush1.bf16.msra.mxu1 %v8159_v45 }
 0xcb5   :  { %5039 = vmatprep.subr.bf16.mxu0 %v8163_v55  ;;  %5080 = vmatprep.subr.bf16.mxu1 %v8165_v11 }
 0xcb8   :  { %5040 = vmatpush1.bf16.msra.mxu0 %v8169_v12  ;;  %5081 = vmatpush1.bf16.msra.mxu1 %v8171_v18 }
 0xcb9   :  { %5041 = vmatprep.subr.bf16.mxu0 %v8175_v15  ;;  %5082 = vmatprep.subr.bf16.mxu1 %v8177_v14 }
 0xcbc   :  { %5042 = vmatpush1.bf16.msra.mxu0 %v8181_v26  ;;  %5083 = vmatpush1.bf16.msra.mxu1 %v8183_v27 }
 0xcbd   :  { %5338 = vmatprep.subr.bf16.mxu0 %v8093_v43  ;;  %5379 = vmatprep.subr.bf16.mxu1 %v8095_v35 }
 0xd72   :  { %v4750_v50 = vpop.f32.mrb[80].mxu0  ;;  %v4791_v39 = vpop.f32.mrb[80].mxu1 }
 0xd73   :  { %v4798_v8 = vadd.f32 %v4750_v50, %v3151_v38  ;;  %v4800_v5 = vadd.f32 %v4791_v39, %v3224_v28  ;;  %v4752_v7 = vpop.f32.mrb[81].mxu0  ;;  %v4793_v54 = vpop.f32.mrb[81].mxu1 }
 0xd74   :  { %v4799_v4 = vadd.f32 %v4752_v7, %v3153_v33  ;;  %v4801_v41 = vadd.f32 %v4793_v54, %v3226_v58  ;;  %v4754_v49 = vpop.f32.mrb[82].mxu0  ;;  %v4795_v9 = vpop.f32.mrb[82].mxu1 }
 0xd75   :  { %v6304_v13 = vmul.f32 -1.442695, %v4798_v8  ;;  %v4755_v60 = vpop.f32.mrb[83].mxu0  ;;  %v4796_v37 = vpop.f32.mrb[83].mxu1  ;;  %v8464_v49 = vld [vmem:[#allocation28_spill] sm:$0xff] }
 0xd76   :  { %v6305_v21 = vmul.f32 -1.442695, %v4799_v4  ;;  %v6306_v23 = vmul.f32 -1.442695, %v4801_v41  ;;  %v8463_v4 = vld [vmem:[#allocation27_spill] sm:$0xff]  ;;  %v3157_v9 = vadd.f32 %v8464_v49, %v7984_v52 }
 0xd77   :  { %6856 = vpow2.f32 %v6304_v13  ;;  %v3228_v41 = vadd.f32 %v8463_v4, %v7976_v10  ;;  %v8465_v13 = vld [vmem:[#allocation31_spill] sm:$0xff] }
 0xd78   :  { %6858 = vpow2.f32 %v6305_v21  ;;  %v3230_v60 = vadd.f32 %v8465_v13, %v7988_v2 }
 0xd79   :  { %6860 = vpow2.f32 %v6306_v23 }
 0xd7a   :  { %6862 = vtanh.f32 %v4800_v5 }
 0xd81   :  { %v6857_v40 = vpop.eup %6856 }
 0xd82   :  { %v6859_v59 = vpop.eup %6858  ;;  %v4805_v56 = vadd.f32 1.0, %v6857_v40 }
 0xd83   :  { %v4811_v19 = vadd.f32 1.0, %v6859_v59  ;;  %v6861_v38 = vpop.eup %6860 }
 0xd84   :  { %6864 = vrcp.f32 %v4805_v56  ;;  %v6863_v25 = vpop.eup %6862  ;;  %v4818_v63 = vadd.f32 1.0, %v6861_v38 }
 0xd85   :  { %6866 = vrcp.f32 %v4811_v19 }
 0xd86   :  { %6868 = vrcp.f32 %v4818_v63 }
 0xd8e   :  { %v6865_v28 = vpop.eup %6864 }
 0xd8f   :  { %v6867_v31 = vpop.eup %6866  ;;  %v4823_v33 = vmul.f32 %v6865_v28, %v6863_v25 }
 0xd90   :  { %v4822_v58 = vmul.f32 %v6867_v31, %v8200_v22  ;;  %v6869_v39 = vpop.eup %6868  ;;  %v8462_v22 = vld [vmem:[#allocation24_spill] sm:$0xff] }
 0xd91   :  { %v3155_v54 = vadd.f32 %v8462_v22, %v7972_v16 }
 0xd92   :  { %v8246_v50 = vadd.f32 %v4823_v33, %v4822_v58 }
 0xd94   :  { %6870 = vtanh.f32 %v8246_v50 }
 0xd9e   :  { %v6871_v8 = vpop.eup %6870 }
 0xd9f   :  { %v4826_v7 = vmul.f32 %v6871_v8, %v6869_v39 }
 0xda1   :  { %v4834_v5 = vpack.c.bf16 %v4826_v7, %v4826_v7 }
 0xda3   :  { %5060 = vmatmul.mubr.bf16.vlgmr.msra.gmra.mrb[84].mxu0 %v4834_v5  ;;  %5101 = vmatmul.mubr.bf16.vlgmr.msra.gmra.mrb[84].mxu1 %v4834_v5 }
 0xda4   :  { %5339 = vmatpush1.bf16.msra.mxu0 %v8097_v0  ;;  %5380 = vmatpush1.bf16.msra.mxu1 %v8099_v44 }
 0xda5   :  { %5340 = vmatprep.subr.bf16.mxu0 %v8105_v42  ;;  %5381 = vmatprep.subr.bf16.mxu1 %v8107_v53 }
 0xda6   :  { %5370 = vmatprep.mubr.bf16.mxu0 %v8400_v48  ;;  %5411 = vmatprep.mubr.bf16.mxu1 %v8400_v48 }
 0xda8   :  { %5341 = vmatpush1.bf16.msra.mxu0 %v8109_v1  ;;  %5382 = vmatpush1.bf16.msra.mxu1 %v8111_v29 }
 0xda9   :  { %5342 = vmatprep.subr.bf16.mxu0 %v8117_v51  ;;  %5383 = vmatprep.subr.bf16.mxu1 %v8119_v20 }
 0xdac   :  { %5343 = vmatpush1.bf16.msra.mxu0 %v8121_v62  ;;  %5384 = vmatpush1.bf16.msra.mxu1 %v8123_v47 }
 0xdad   :  { %5344 = vmatprep.subr.bf16.mxu0 %v8129_v61  ;;  %5385 = vmatprep.subr.bf16.mxu1 %v8131_v46 }
 0xdb0   :  { %5345 = vmatpush1.bf16.msra.mxu0 %v8133_v6  ;;  %5386 = vmatpush1.bf16.msra.mxu1 %v8135_v24 }
 0xdb1   :  { %5346 = vmatprep.subr.bf16.mxu0 %v8143_v3  ;;  %5387 = vmatprep.subr.bf16.mxu1 %v8147_v57 }
 0xdb4   :  { %5347 = vmatpush1.bf16.msra.mxu0 %v8141_v17  ;;  %5388 = vmatpush1.bf16.msra.mxu1 %v8145_v32 }
 0xdb5   :  { %5348 = vmatprep.subr.bf16.mxu0 %v8149_v36  ;;  %5389 = vmatprep.subr.bf16.mxu1 %v8152_v30 }
 0xdb8   :  { %5349 = vmatpush1.bf16.msra.mxu0 %v8157_v34  ;;  %5390 = vmatpush1.bf16.msra.mxu1 %v8159_v45 }
 0xdb9   :  { %5350 = vmatprep.subr.bf16.mxu0 %v8163_v55  ;;  %5391 = vmatprep.subr.bf16.mxu1 %v8165_v11 }
 0xdbc   :  { %5351 = vmatpush1.bf16.msra.mxu0 %v8169_v12  ;;  %5392 = vmatpush1.bf16.msra.mxu1 %v8171_v18 }
 0xdbd   :  { %5352 = vmatprep.subr.bf16.mxu0 %v8175_v15  ;;  %5393 = vmatprep.subr.bf16.mxu1 %v8177_v14 }
 0xdc0   :  { %5353 = vmatpush1.bf16.msra.mxu0 %v8181_v26  ;;  %5394 = vmatpush1.bf16.msra.mxu1 %v8183_v27 }
 0xdc1   :  { %5649 = vmatprep.subr.bf16.mxu0 %v8093_v43  ;;  %5690 = vmatprep.subr.bf16.mxu1 %v8095_v35 }
 0xe76   :  { %v5061_v37 = vpop.f32.mrb[84].mxu0  ;;  %v5102_v21 = vpop.f32.mrb[84].mxu1 }
 0xe77   :  { %v5109_v23 = vadd.f32 %v5061_v37, %v3155_v54  ;;  %v5111_v40 = vadd.f32 %v5102_v21, %v3228_v41  ;;  %v5063_v59 = vpop.f32.mrb[85].mxu0  ;;  %v5104_v43 = vpop.f32.mrb[85].mxu1 }
 0xe78   :  { %v5110_v56 = vadd.f32 %v5063_v59, %v3157_v9  ;;  %v5112_v35 = vadd.f32 %v5104_v43, %v3230_v60  ;;  %v5065_v19 = vpop.f32.mrb[86].mxu0  ;;  %v5106_v38 = vpop.f32.mrb[86].mxu1 }
 0xe79   :  { %v6339_v25 = vmul.f32 -1.442695, %v5109_v23  ;;  %v5066_v28 = vpop.f32.mrb[87].mxu0  ;;  %v5107_v31 = vpop.f32.mrb[87].mxu1 }
 0xe7a   :  { %v6340_v33 = vmul.f32 -1.442695, %v5110_v56  ;;  %v6341_v63 = vmul.f32 -1.442695, %v5112_v35  ;;  %v8471_v31 = vld [vmem:[#allocation35_spill] sm:$0xff] }
 0xe7b   :  { %6872 = vpow2.f32 %v6339_v25  ;;  %v8470_v25 = vld [vmem:[#allocation32_spill] sm:$0xff] }
 0xe7c   :  { %6874 = vpow2.f32 %v6340_v33  ;;  %v3165_v28 = vadd.f32 %v8470_v25, %v7972_v16  ;;  %v3238_v33 = vadd.f32 %v8471_v31, %v7976_v10 }
 0xe7d   :  { %6876 = vpow2.f32 %v6341_v63  ;;  %v8472_v63 = vld [vmem:[#allocation14_spill] sm:$0xff] }
 0xe7e   :  { %6878 = vtanh.f32 %v5111_v40 }
 0xe85   :  { %v6873_v58 = vpop.eup %6872 }
 0xe86   :  { %v6875_v39 = vpop.eup %6874  ;;  %v5116_v8 = vadd.f32 1.0, %v6873_v58  ;;  %v3167_v58 = vadd.f32 %v8472_v63, %v7984_v52 }
 0xe87   :  { %v5122_v7 = vadd.f32 1.0, %v6875_v39  ;;  %v6877_v5 = vpop.eup %6876  ;;  %v8473_v39 = vld [vmem:[#allocation36_spill] sm:$0xff] }
 0xe88   :  { %6880 = vrcp.f32 %v5116_v8  ;;  %v6879_v22 = vpop.eup %6878  ;;  %v5129_v49 = vadd.f32 1.0, %v6877_v5  ;;  %v3240_v8 = vadd.f32 %v8473_v39, %v7988_v2 }
 0xe89   :  { %6882 = vrcp.f32 %v5122_v7 }
 0xe8a   :  { %6884 = vrcp.f32 %v5129_v49 }
 0xe92   :  { %v6881_v54 = vpop.eup %6880 }
 0xe93   :  { %v6883_v4 = vpop.eup %6882  ;;  %v5134_v41 = vmul.f32 %v6881_v54, %v6879_v22 }
 0xe94   :  { %v5133_v9 = vmul.f32 %v6883_v4, %v8246_v50  ;;  %v6885_v60 = vpop.eup %6884 }
 0xe96   :  { %v8292_v13 = vadd.f32 %v5134_v41, %v5133_v9 }
 0xe98   :  { %6886 = vtanh.f32 %v8292_v13 }
 0xea2   :  { %v6887_v37 = vpop.eup %6886 }
 0xea3   :  { %v5137_v21 = vmul.f32 %v6887_v37, %v6885_v60 }
 0xea5   :  { %v5145_v23 = vpack.c.bf16 %v5137_v21, %v5137_v21 }
 0xea7   :  { %5371 = vmatmul.mubr.bf16.vlgmr.msra.gmra.mrb[88].mxu0 %v5145_v23  ;;  %5412 = vmatmul.mubr.bf16.vlgmr.msra.gmra.mrb[88].mxu1 %v5145_v23 }
 0xea8   :  { %5650 = vmatpush1.bf16.msra.mxu0 %v8097_v0  ;;  %5691 = vmatpush1.bf16.msra.mxu1 %v8099_v44  ;;  %v8467_v44 = vld [vmem:[#allocation33_spill] sm:$0xff] }
 0xea9   :  { %5651 = vmatprep.subr.bf16.mxu0 %v8105_v42  ;;  %5692 = vmatprep.subr.bf16.mxu1 %v8107_v53  ;;  %v3234_v42 = vadd.f32 %v8467_v44, %v7976_v10  ;;  %v8468_v53 = vld [vmem:[#allocation30_spill] sm:$0xff] }
 0xeaa   :  { %5681 = vmatprep.mubr.bf16.mxu0 %v8400_v48  ;;  %5722 = vmatprep.mubr.bf16.mxu1 %v8400_v48  ;;  %v8466_v48 = vld [vmem:[#allocation29_spill] sm:$0xff] }
 0xeab   :  { %v3161_v0 = vadd.f32 %v8466_v48, %v7972_v16 }
 0xeac   :  { %5652 = vmatpush1.bf16.msra.mxu0 %v8109_v1  ;;  %5693 = vmatpush1.bf16.msra.mxu1 %v8111_v29  ;;  %v3163_v1 = vadd.f32 %v8468_v53, %v7984_v52  ;;  %v8469_v29 = vld [vmem:[#allocation34_spill] sm:$0xff] }
 0xead   :  { %5653 = vmatprep.subr.bf16.mxu0 %v8117_v51  ;;  %5694 = vmatprep.subr.bf16.mxu1 %v8119_v20  ;;  %v3236_v51 = vadd.f32 %v8469_v29, %v7988_v2 }
 0xeb0   :  { %5654 = vmatpush1.bf16.msra.mxu0 %v8121_v62  ;;  %5695 = vmatpush1.bf16.msra.mxu1 %v8123_v47 }
 0xeb1   :  { %5655 = vmatprep.subr.bf16.mxu0 %v8129_v61  ;;  %5696 = vmatprep.subr.bf16.mxu1 %v8131_v46 }
 0xeb4   :  { %5656 = vmatpush1.bf16.msra.mxu0 %v8133_v6  ;;  %5697 = vmatpush1.bf16.msra.mxu1 %v8135_v24 }
 0xeb5   :  { %5657 = vmatprep.subr.bf16.mxu0 %v8143_v3  ;;  %5698 = vmatprep.subr.bf16.mxu1 %v8147_v57 }
 0xeb8   :  { %5658 = vmatpush1.bf16.msra.mxu0 %v8141_v17  ;;  %5699 = vmatpush1.bf16.msra.mxu1 %v8145_v32 }
 0xeb9   :  { %5659 = vmatprep.subr.bf16.mxu0 %v8149_v36  ;;  %5700 = vmatprep.subr.bf16.mxu1 %v8152_v30 }
 0xebc   :  { %5660 = vmatpush1.bf16.msra.mxu0 %v8157_v34  ;;  %5701 = vmatpush1.bf16.msra.mxu1 %v8159_v45 }
 0xebd   :  { %5661 = vmatprep.subr.bf16.mxu0 %v8163_v55  ;;  %5702 = vmatprep.subr.bf16.mxu1 %v8165_v11 }
 0xec0   :  { %5662 = vmatpush1.bf16.msra.mxu0 %v8169_v12  ;;  %5703 = vmatpush1.bf16.msra.mxu1 %v8171_v18 }
 0xec1   :  { %5663 = vmatprep.subr.bf16.mxu0 %v8175_v15  ;;  %5704 = vmatprep.subr.bf16.mxu1 %v8177_v14 }
 0xec4   :  { %5664 = vmatpush1.bf16.msra.mxu0 %v8181_v26  ;;  %5705 = vmatpush1.bf16.msra.mxu1 %v8183_v27 }
 0xf7a   :  { %v5372_v20 = vpop.f32.mrb[88].mxu0  ;;  %v5413_v62 = vpop.f32.mrb[88].mxu1 }
 0xf7b   :  { %v5420_v47 = vadd.f32 %v5372_v20, %v3161_v0  ;;  %v5422_v61 = vadd.f32 %v5413_v62, %v3234_v42  ;;  %v5374_v46 = vpop.f32.mrb[89].mxu0  ;;  %v5415_v6 = vpop.f32.mrb[89].mxu1 }
 0xf7c   :  { %v5421_v24 = vadd.f32 %v5374_v46, %v3163_v1  ;;  %v5423_v17 = vadd.f32 %v5415_v6, %v3236_v51  ;;  %v5376_v3 = vpop.f32.mrb[90].mxu0  ;;  %v5417_v32 = vpop.f32.mrb[90].mxu1  ;;  %v6414_v46 = vld [vmem:[%s8365_s9] ss:$0 sm:$0xff] }
 0xf7d   :  { %v6374_v57 = vmul.f32 -1.442695, %v5420_v47  ;;  %v5377_v36 = vpop.f32.mrb[91].mxu0  ;;  %v5418_v30 = vpop.f32.mrb[91].mxu1 }
 0xf7e   :  { %v6375_v34 = vmul.f32 -1.442695, %v5421_v24  ;;  %v6376_v45 = vmul.f32 -1.442695, %v5423_v17  ;;  %v6412_v24 = vld [vmem:[%s8364_s8] ss:$0 sm:$0xff] }
 0xf7f   :  { %6888 = vpow2.f32 %v6374_v57  ;;  %v6413_v36 = vld [vmem:[#allocation6] ss:$0 sm:$0xff] }
 0xf80   :  { %6890 = vpow2.f32 %v6375_v34 }
 0xf81   :  { %6892 = vpow2.f32 %v6376_v45 }
 0xf82   :  { %6894 = vtanh.f32 %v5422_v61  ;;  %v5781_v61 = vld [vmem:[%s8357_s1] sm:$0xff] }
 0xf83   :  { %v5789_v3 = vmul.f32 %v6414_v46, %v5781_v61 }
 0xf85   :  { %v5791_v57 = vsel %vm5790_vm2, %v5789_v3, 0.0 }
 0xf89   :  { %v6889_v55 = vpop.eup %6888 }
 0xf8a   :  { %v6891_v11 = vpop.eup %6890  ;;  %v5427_v12 = vadd.f32 1.0, %v6889_v55 }
 0xf8b   :  { %v5433_v18 = vadd.f32 1.0, %v6891_v11  ;;  %v6893_v15 = vpop.eup %6892 }
 0xf8c   :  { %6896 = vrcp.f32 %v5427_v12  ;;  %v6895_v14 = vpop.eup %6894  ;;  %v5440_v40 = vadd.f32 1.0, %v6893_v15 }
 0xf8d   :  { %6898 = vrcp.f32 %v5433_v18 }
 0xf8e   :  { %6900 = vrcp.f32 %v5440_v40 }
 0xf96   :  { %v6897_v26 = vpop.eup %6896 }
 0xf97   :  { %v6899_v27 = vpop.eup %6898  ;;  %v5445_v50 = vmul.f32 %v6897_v26, %v6895_v14 }
 0xf98   :  { %v5444_v59 = vmul.f32 %v6899_v27, %v8292_v13  ;;  %v6901_v56 = vpop.eup %6900 }
 0xf9a   :  { %v5446_v43 = vadd.f32 %v5445_v50, %v5444_v59 }
 0xf9c   :  { %6902 = vtanh.f32 %v5446_v43 }
 0xfa6   :  { %v6903_v35 = vpop.eup %6902 }
 0xfa7   :  { %v5448_v19 = vmul.f32 %v6903_v35, %v6901_v56 }
 0xfa9   :  { %v5456_v38 = vpack.c.bf16 %v5448_v19, %v5448_v19 }
 0xfab   :  { %5682 = vmatmul.mubr.bf16.vlgmr.msra.gmra.mrb[92].mxu0 %v5456_v38  ;;  %5723 = vmatmul.mubr.bf16.vlgmr.msra.gmra.mrb[92].mxu1 %v5456_v38 }
0x107e   :  { %v5683_v7 = vpop.f32.mrb[92].mxu0  ;;  %v5724_v5 = vpop.f32.mrb[92].mxu1 }
0x107f   :  { %v5731_v22 = vadd.f32 %v5683_v7, %v3165_v28  ;;  %v5733_v54 = vadd.f32 %v5724_v5, %v3238_v33  ;;  %v5685_v4 = vpop.f32.mrb[93].mxu0  ;;  %v5726_v41 = vpop.f32.mrb[93].mxu1 }
0x1080   :  { %v5732_v49 = vadd.f32 %v5685_v4, %v3167_v58  ;;  %v5734_v9 = vadd.f32 %v5726_v41, %v3240_v8  ;;  %v5687_v13 = vpop.f32.mrb[94].mxu0  ;;  %v5728_v60 = vpop.f32.mrb[94].mxu1 }
0x1081   :  { %v6409_v16 = vmul.f32 -1.442695, %v5731_v22  ;;  %v5688_v37 = vpop.f32.mrb[95].mxu0  ;;  %v5729_v21 = vpop.f32.mrb[95].mxu1 }
0x1082   :  { %v6410_v10 = vmul.f32 -1.442695, %v5732_v49  ;;  %v6411_v52 = vmul.f32 -1.442695, %v5734_v9 }
0x1083   :  { %6904 = vpow2.f32 %v6409_v16 }
0x1084   :  { %6906 = vpow2.f32 %v6410_v10 }
0x1085   :  { %6908 = vpow2.f32 %v6411_v52 }
0x1086   :  { %6910 = vtanh.f32 %v5733_v54 }
0x108d   :  { %v6905_v23 = vpop.eup %6904 }
0x108e   :  { %v6907_v48 = vpop.eup %6906  ;;  %v5738_v2 = vadd.f32 1.0, %v6905_v23 }
0x108f   :  { %v5744_v0 = vadd.f32 1.0, %v6907_v48  ;;  %v6909_v44 = vpop.eup %6908 }
0x1090   :  { %6912 = vrcp.f32 %v5738_v2  ;;  %v6911_v42 = vpop.eup %6910  ;;  %v5751_v51 = vadd.f32 1.0, %v6909_v44 }
0x1091   :  { %6914 = vrcp.f32 %v5744_v0 }
0x1092   :  { %6916 = vrcp.f32 %v5751_v51 }
0x109a   :  { %v6913_v53 = vpop.eup %6912 }
0x109b   :  { %v6915_v1 = vpop.eup %6914  ;;  %v5756_v29 = vmul.f32 %v6913_v53, %v6911_v42 }
0x109c   :  { %v5755_v20 = vmul.f32 %v6915_v1, %v5446_v43  ;;  %v6917_v47 = vpop.eup %6916 }
0x109e   :  { %v5757_v62 = vadd.f32 %v5756_v29, %v5755_v20 }
0x10a0   :  { %6918 = vtanh.f32 %v5757_v62 }
0x10aa   :  { %v6919_v6 = vpop.eup %6918 }
0x10ab   :  { %v5759_v17 = vmul.f32 %v6919_v6, %v6917_v47 }
0x10ad   :  { %v5770_v32 = vmul.f32 %v6412_v24, %v5759_v17 }
0x10af   :  { %5771 = vadd.xlane.f32.xlu0 %v5770_v32 }
0x10b3   :  { %5792 = vadd.xlane.f32.xlu0 %v5791_v57 }
0x113c   :  { %v5772_v30 = vpop.xlane.xlu0 %5771 }
0x113d   :  { %v5780_v34 = vadd.f32 %v6413_v36, %v5772_v30 }
0x1140   :  { %v5793_v45 = vpop.xlane.xlu0 %5792 }
0x1141   :  { %v5794_v55 = vadd.f32 %v5793_v45, %v5780_v34 }
0x1143   :  { %5796 = vst.msk [vmem:[%s8367_s11] sm:$0xff] %vm5795_vm3, %v5794_v55 }
0x1144   :  { %5801 = vsyncpa [#allocation8], 1 }
0x1145   :  { %5802 = vsyncpa [#allocation10], 1 }

</bundles_post_ra>
